<compile_context>
chip_gen: v7x
topology: tpu7x:2x2x1
jax: 0.10.0
libtpu: 0.0.40
codegen_flags: <defaults>
</compile_context>

<pallas_src>
import numpy as np
import jax
import jax.numpy as jnp
from jax import lax
from jax.experimental import pallas as pl
from jax.experimental.pallas import tpu as pltpu

# ----------------------------- configuration -------------------------------
IMG_SHAPE = (1, 16, 16)          # (C, H, W)
LATENT = 22                      # latent_size
NUM_CLASSES = 10
EMB_DIM = NUM_CLASSES            # reference only shape-checks if equal
HIDDEN = (128, 256, 512, 1024)
OUT_DIM = int(np.prod(IMG_SHAPE))
BN_EPS = 0.8                     # BatchNorm1d(out_features, 0.8) -> eps=0.8
LEAKY_SLOPE = 0.2
PACK_W = max(HIDDEN)             # packed-param row width (1024)

# Row layout of the packed BN/bias array.  b2/b3/b4 are gone (canceled by the
# BN mean subtraction); b1 is folded into ew1 at prep time.
(ROW_G2, ROW_BE2, ROW_G3, ROW_BE3, ROW_G4, ROW_BE4, ROW_B5) = range(7)
N_PACK_ROWS = 8                  # 7 used + 1 zero row (sublane-aligned)


# ------------------------------ Pallas kernel ------------------------------
def generator_mlp_kernel(labels_ref, noise_ref, ew1_ref, w1n_ref,
                         w2_ref, w3_ref, w4_ref, w5_ref, pvec_ref,
                         out_ref):
    """Full MLP hot path: 5 bf16 MXU matmuls, 3 fused BNs, LeakyReLU, Tanh."""
    B = noise_ref.shape[0]

    def leaky(h):
        # max(h, 0.2*h) == LeakyReLU(0.2) for slope < 1; 2 VALU ops.
        return jnp.maximum(h, LEAKY_SLOPE * h)

    def bn_leaky(h, g, be):
        # Training-mode BN (batch mean, biased variance), fused scale/shift.
        # One-pass variance E[x^2]-E[x]^2 is numerically safe here only
        # because eps = 0.8 dwarfs the cancellation error.
        mean = jnp.mean(h, axis=0, keepdims=True)
        var = jnp.mean(h * h, axis=0, keepdims=True) - mean * mean
        scale = lax.rsqrt(var + BN_EPS) * g
        shift = be - mean * scale
        return leaky(h * scale + shift)

    def mm(h, w_ref):
        # bf16 MXU inputs, f32 accumulation.
        return jnp.dot(h.astype(jnp.bfloat16), w_ref[...],
                       preferred_element_type=jnp.float32)

    # --- unpack the coalesced BN params / head bias (one small f32 DMA) ----
    p = pvec_ref[...]                                         # [8, 1024] f32
    g2 = p[ROW_G2:ROW_G2 + 1, :HIDDEN[1]]
    be2 = p[ROW_BE2:ROW_BE2 + 1, :HIDDEN[1]]
    g3 = p[ROW_G3:ROW_G3 + 1, :HIDDEN[2]]
    be3 = p[ROW_BE3:ROW_BE3 + 1, :HIDDEN[2]]
    g4 = p[ROW_G4:ROW_G4 + 1, :HIDDEN[3]]
    be4 = p[ROW_BE4:ROW_BE4 + 1, :HIDDEN[3]]
    b5 = p[ROW_B5:ROW_B5 + 1, :OUT_DIM]

    # --- block 1: embedding lookup + concat folded into a split matmul -----
    #   one_hot(labels) @ (embedding @ W1[:E] + b1)  +  noises @ W1[E:]
    # NOTE: out-of-range labels produce an all-zero one-hot row (embedding
    # and b1 contributions dropped) rather than erroring like nn.Embedding.
    onehot = (labels_ref[...] ==
              lax.broadcasted_iota(jnp.int32, (B, NUM_CLASSES), 1)
              ).astype(jnp.bfloat16)                           # [B, NC] bf16
    h = leaky(jnp.dot(onehot, ew1_ref[...],
                      preferred_element_type=jnp.float32)
              + mm(noise_ref[...], w1n_ref))
    # --- blocks 2-4 (pre-BN biases dropped: canceled by mean subtraction) --
    h = bn_leaky(mm(h, w2_ref), g2, be2)
    h = bn_leaky(mm(h, w3_ref), g3, be3)
    h = bn_leaky(mm(h, w4_ref), g4, be4)
    # --- head + Tanh ---------------------------------------------------------
    out_ref[...] = jnp.tanh(mm(h, w5_ref) + b5).astype(out_ref.dtype)


# ------------------------------ JAX wrapper --------------------------------
def generator_forward(noises, labels, kp):
    B = noises.shape[0]
    labels2d = labels.astype(jnp.int32).reshape(B, 1)

    vmem = pl.BlockSpec(memory_space=pltpu.MemorySpace.VMEM)

    flops = 2 * B * (NUM_CLASSES * HIDDEN[0]      # one-hot "gather" matmul
                     + LATENT * HIDDEN[0]
                     + HIDDEN[0] * HIDDEN[1]
                     + HIDDEN[1] * HIDDEN[2]
                     + HIDDEN[2] * HIDDEN[3]
                     + HIDDEN[3] * OUT_DIM)
    transcendentals = B * OUT_DIM + sum(HIDDEN[1:])           # tanh + BN rsqrt
    bytes_accessed = (
        B * 4 + B * LATENT * 4
        + (kp["ew1"].size + kp["w1n"].size + kp["w2"].size + kp["w3"].size
           + kp["w4"].size + kp["w5"].size) * 2                # bf16 weights
        + kp["pvec"].size * 4
        + B * OUT_DIM * 4)

    flat_img = pl.pallas_call(
        generator_mlp_kernel,
        out_shape=jax.ShapeDtypeStruct((B, OUT_DIM), jnp.float32),
        in_specs=[vmem] * 9,
        out_specs=vmem,
        cost_estimate=pl.CostEstimate(flops=flops,
                                      transcendentals=transcendentals,
                                      bytes_accessed=bytes_accessed),
    )(labels2d, noises,
      kp["ew1"], kp["w1n"], kp["w2"], kp["w3"], kp["w4"], kp["w5"],
      kp["pvec"])

    return flat_img.reshape(B, *IMG_SHAPE)                     # NCHW


# ---------------------------- deterministic init ---------------------------
def init_params(key):
    dims = [EMB_DIM + LATENT, *HIDDEN, OUT_DIM]
    params = {}
    key, ek = jax.random.split(key)
    # nn.Embedding default init ~ N(0, 1)
    params["embedding"] = jax.random.normal(ek, (NUM_CLASSES, EMB_DIM),
                                            jnp.float32)

    for li in range(5):
        fan_in, fan_out = dims[li], dims[li + 1]
        key, wk, bk = jax.random.split(key, 3)
        bound = 1.0 / np.sqrt(fan_in)            # PyTorch Linear default init
        params[f"w{li + 1}"] = jax.random.uniform(
            wk, (fan_in, fan_out), jnp.float32, -bound, bound)
        params[f"b{li + 1}"] = jax.random.uniform(
            bk, (1, fan_out), jnp.float32, -bound, bound)

    # BatchNorm affine params for blocks 2..4: gamma=1, beta=0 (PyTorch default)
    for li, width in zip((2, 3, 4), HIDDEN[1:]):
        params[f"g{li}"] = jnp.ones((1, width), jnp.float32)
        params[f"be{li}"] = jnp.zeros((1, width), jnp.float32)
    return params


def prepare_kernel_params(params):
    """One-time packing / casting of parameters into kernel-ready form."""
    def pad_row(v):
        return jnp.pad(v, ((0, 0), (0, PACK_W - v.shape[1])))

    rows = [params["g2"], params["be2"],
            params["g3"], params["be3"],
            params["g4"], params["be4"],
            params["b5"]]
    pvec = jnp.concatenate(
        [pad_row(r) for r in rows]
        + [jnp.zeros((N_PACK_ROWS - len(rows), PACK_W), jnp.float32)], axis=0)
    assert pvec.shape == (N_PACK_ROWS, PACK_W)

    w1 = params["w1"]
    # Fold layer-1 bias into the embedding-side product: exactly one one-hot
    # element is 1, so onehot @ (emb @ W1[:E] + b1) == emb[label] @ W1[:E] + b1.
    ew1 = jnp.dot(params["embedding"], w1[:EMB_DIM]) + params["b1"]
    return dict(
        ew1=ew1.astype(jnp.bfloat16),
        w1n=w1[EMB_DIM:].astype(jnp.bfloat16),
        w2=params["w2"].astype(jnp.bfloat16),
        w3=params["w3"].astype(jnp.bfloat16),
        w4=params["w4"].astype(jnp.bfloat16),
        w5=params["w5"].astype(jnp.bfloat16),
        pvec=pvec,
    )


# ---------------------------- pure-JAX references ---------------------------
def reference_forward(noises, labels, params):
    """Full-precision reference matching the PyTorch module (train mode)."""
    emb = jnp.take(params["embedding"], labels, axis=0)
    x = jnp.concatenate([emb, noises], axis=-1)

    def leaky(h):
        return jnp.where(h > 0, h, LEAKY_SLOPE * h)

    def bn(h, g, be):
        m = jnp.mean(h, axis=0, keepdims=True)
        v = jnp.mean((h - m) ** 2, axis=0, keepdims=True)
        return (h - m) * lax.rsqrt(v + BN_EPS) * g + be

    h = leaky(x @ params["w1"] + params["b1"])
    h = leaky(bn(h @ params["w2"] + params["b2"], params["g2"], params["be2"]))
    h = leaky(bn(h @ params["w3"] + params["b3"], params["g3"], params["be3"]))
    h = leaky(bn(h @ params["w4"] + params["b4"], params["g4"], params["be4"]))
    h = jnp.tanh(h @ params["w5"] + params["b5"])
    return h.reshape(h.shape[0], *IMG_SHAPE)


def matched_reference(noises, labels, kp, params):
    """Op-for-op reference using the SAME bf16 weights / fused math as the
    kernel — isolates kernel-math bugs from weight-quantization noise."""
    def leaky(h):
        return jnp.maximum(h, LEAKY_SLOPE * h)

    def bn_leaky(h, g, be):
        m = jnp.mean(h, axis=0, keepdims=True)
        v = jnp.mean(h * h, axis=0, keepdims=True) - m * m
        s = lax.rsqrt(v + BN_EPS) * g
        return leaky(h * s + (be - m * s))

    def mm(h, w):
        return jnp.dot(h.astype(jnp.bfloat16), w,
                       preferred_element_type=jnp.float32)

    onehot = (labels[:, None] ==
              jnp.arange(NUM_CLASSES)[None, :]).astype(jnp.bfloat16)
    h = leaky(jnp.dot(onehot, kp["ew1"], preferred_element_type=jnp.float32)
              + mm(noises, kp["w1n"]))
    h = bn_leaky(mm(h, kp["w2"]), params["g2"], params["be2"])
    h = bn_leaky(mm(h, kp["w3"]), params["g3"], params["be3"])
    h = bn_leaky(mm(h, kp["w4"]), params["g4"], params["be4"])
    h = jnp.tanh(mm(h, kp["w5"]) + params["b5"])
    return h.reshape(h.shape[0], *IMG_SHAPE)


# ---------------------------------- main -----------------------------------
if __name__ == "__main__":
    key = jax.random.PRNGKey(0)
    k_param, k_noise, k_label = jax.random.split(key, 3)

    params = init_params(k_param)
    kparams = prepare_kernel_params(params)

    B = 8
    noises = jax.random.normal(k_noise, (B, LATENT), jnp.float32)
    labels = jax.random.randint(k_label, (B,), 0, NUM_CLASSES)

    fwd = jax.jit(lambda n, l: generator_forward(n, l, kparams))
    img = fwd(noises, labels)
    jax.block_until_ready(img)

    ref = reference_forward(noises, labels, params)
    matched = matched_reference(noises, labels, kparams, params)

    assert img.shape == (B,) + IMG_SHAPE, img.shape
    assert img.dtype == jnp.float32
    assert bool(jnp.all(jnp.isfinite(img)))
    assert bool(jnp.all(jnp.abs(img) <= 1.0))                  # Tanh range
    # Tight bound vs an op-matched bf16 reference (kernel math correctness).
    assert float(jnp.max(jnp.abs(img - matched))) < 2e-3
    # Loose bound vs the full-precision reference (bf16 weight-quant noise).
    assert float(jnp.max(jnp.abs(img - ref))) < 1e-1
    print("KERNEL_OK")
</pallas_src>

<mosaic_0001>
module attributes {stable_mosaic.version = 11 : i64} {
  func.func @generator_mlp_kernel(%arg0: memref<8x1xi32, #tpu.memory_space<vmem>>, %arg1: memref<8x22xf32, #tpu.memory_space<vmem>>, %arg2: memref<10x128xbf16, #tpu.memory_space<vmem>>, %arg3: memref<22x128xbf16, #tpu.memory_space<vmem>>, %arg4: memref<128x256xbf16, #tpu.memory_space<vmem>>, %arg5: memref<256x512xbf16, #tpu.memory_space<vmem>>, %arg6: memref<512x1024xbf16, #tpu.memory_space<vmem>>, %arg7: memref<1024x256xbf16, #tpu.memory_space<vmem>>, %arg8: memref<8x1024xf32, #tpu.memory_space<vmem>>, %arg9: memref<8x256xf32, #tpu.memory_space<vmem>>) attributes {dimension_semantics = [], scalar_prefetch = 0 : i64, scratch_operands = 0 : i64, tpu.core_type = #tpu.core_type<tc>} {
    %c0 = arith.constant 0 : index
    %c0_0 = arith.constant 0 : index
    %0 = vector.load %arg8[%c0, %c0_0] : memref<8x1024xf32, #tpu.memory_space<vmem>>, vector<8x1024xf32>
    %1 = vector.extract_strided_slice %0 {offsets = [0, 0], sizes = [1, 256], strides = [1, 1]} : vector<8x1024xf32> to vector<1x256xf32>
    %2 = vector.extract_strided_slice %0 {offsets = [1, 0], sizes = [1, 256], strides = [1, 1]} : vector<8x1024xf32> to vector<1x256xf32>
    %3 = vector.extract_strided_slice %0 {offsets = [2, 0], sizes = [1, 512], strides = [1, 1]} : vector<8x1024xf32> to vector<1x512xf32>
    %4 = vector.extract_strided_slice %0 {offsets = [3, 0], sizes = [1, 512], strides = [1, 1]} : vector<8x1024xf32> to vector<1x512xf32>
    %5 = vector.extract_strided_slice %0 {offsets = [4, 0], sizes = [1, 1024], strides = [1, 1]} : vector<8x1024xf32> to vector<1x1024xf32>
    %6 = vector.extract_strided_slice %0 {offsets = [5, 0], sizes = [1, 1024], strides = [1, 1]} : vector<8x1024xf32> to vector<1x1024xf32>
    %7 = vector.extract_strided_slice %0 {offsets = [6, 0], sizes = [1, 256], strides = [1, 1]} : vector<8x1024xf32> to vector<1x256xf32>
    %c0_1 = arith.constant 0 : index
    %c0_2 = arith.constant 0 : index
    %8 = vector.load %arg0[%c0_1, %c0_2] : memref<8x1xi32, #tpu.memory_space<vmem>>, vector<8x1xi32>
    %9 = tpu.iota {dimensions = array<i32: 1>} : vector<8x10xi32>
    %10 = vector.broadcast %8 : vector<8x1xi32> to vector<8x10xi32>
    %11 = arith.cmpi eq, %10, %9 : vector<8x10xi32>
    %12 = arith.extui %11 : vector<8x10xi1> to vector<8x10xi32>
    %13 = arith.sitofp %12 : vector<8x10xi32> to vector<8x10xf32>
    %14 = arith.truncf %13 : vector<8x10xf32> to vector<8x10xbf16>
    %c0_3 = arith.constant 0 : index
    %c0_4 = arith.constant 0 : index
    %15 = vector.load %arg2[%c0_3, %c0_4] : memref<10x128xbf16, #tpu.memory_space<vmem>>, vector<10x128xbf16>
    %cst = arith.constant dense<0.000000e+00> : vector<8x128xf32>
    %16 = tpu.matmul %14, %15, %cst {dimension_numbers = #tpu.dot_dimension_numbers<[1], [0], [0], [1], [0, 0, 1, 1], [], []>} : vector<8x10xbf16>, vector<10x128xbf16>, vector<8x128xf32> -> vector<8x128xf32>
    %c0_5 = arith.constant 0 : index
    %c0_6 = arith.constant 0 : index
    %17 = vector.load %arg1[%c0_5, %c0_6] : memref<8x22xf32, #tpu.memory_space<vmem>>, vector<8x22xf32>
    %18 = arith.truncf %17 : vector<8x22xf32> to vector<8x22xbf16>
    %c0_7 = arith.constant 0 : index
    %c0_8 = arith.constant 0 : index
    %19 = vector.load %arg3[%c0_7, %c0_8] : memref<22x128xbf16, #tpu.memory_space<vmem>>, vector<22x128xbf16>
    %cst_9 = arith.constant dense<0.000000e+00> : vector<8x128xf32>
    %20 = tpu.matmul %18, %19, %cst_9 {dimension_numbers = #tpu.dot_dimension_numbers<[1], [0], [0], [1], [0, 0, 1, 1], [], []>} : vector<8x22xbf16>, vector<22x128xbf16>, vector<8x128xf32> -> vector<8x128xf32>
    %21 = arith.addf %16, %20 : vector<8x128xf32>
    %cst_10 = arith.constant 2.000000e-01 : f32
    %22 = vector.broadcast %cst_10 : f32 to vector<8x128xf32>
    %23 = arith.mulf %22, %21 : vector<8x128xf32>
    %24 = arith.maximumf %21, %23 : vector<8x128xf32>
    %25 = arith.truncf %24 : vector<8x128xf32> to vector<8x128xbf16>
    %c0_11 = arith.constant 0 : index
    %c0_12 = arith.constant 0 : index
    %26 = vector.load %arg4[%c0_11, %c0_12] : memref<128x256xbf16, #tpu.memory_space<vmem>>, vector<128x256xbf16>
    %cst_13 = arith.constant dense<0.000000e+00> : vector<8x256xf32>
    %27 = tpu.matmul %25, %26, %cst_13 {dimension_numbers = #tpu.dot_dimension_numbers<[1], [0], [0], [1], [0, 0, 1, 1], [], []>} : vector<8x128xbf16>, vector<128x256xbf16>, vector<8x256xf32> -> vector<8x256xf32>
    %cst_14 = arith.constant dense<0.000000e+00> : vector<256xf32>
    %28 = vector.multi_reduction <add>, %27, %cst_14 [0] : vector<8x256xf32> to vector<256xf32>
    %29 = vector.shape_cast %28 : vector<256xf32> to vector<1x256xf32>
    %cst_15 = arith.constant 8.000000e+00 : f32
    %30 = vector.broadcast %cst_15 : f32 to vector<1x256xf32>
    %31 = arith.divf %29, %30 : vector<1x256xf32>
    %32 = arith.mulf %27, %27 : vector<8x256xf32>
    %cst_16 = arith.constant dense<0.000000e+00> : vector<256xf32>
    %33 = vector.multi_reduction <add>, %32, %cst_16 [0] : vector<8x256xf32> to vector<256xf32>
    %34 = vector.shape_cast %33 : vector<256xf32> to vector<1x256xf32>
    %cst_17 = arith.constant 8.000000e+00 : f32
    %35 = vector.broadcast %cst_17 : f32 to vector<1x256xf32>
    %36 = arith.divf %34, %35 : vector<1x256xf32>
    %37 = arith.mulf %31, %31 : vector<1x256xf32>
    %38 = arith.subf %36, %37 : vector<1x256xf32>
    %cst_18 = arith.constant 8.000000e-01 : f32
    %39 = vector.broadcast %cst_18 : f32 to vector<1x256xf32>
    %40 = arith.addf %38, %39 : vector<1x256xf32>
    %41 = math.rsqrt %40 : vector<1x256xf32>
    %42 = arith.mulf %41, %1 : vector<1x256xf32>
    %43 = arith.mulf %31, %42 : vector<1x256xf32>
    %44 = arith.subf %2, %43 : vector<1x256xf32>
    %45 = vector.broadcast %42 : vector<1x256xf32> to vector<8x256xf32>
    %46 = arith.mulf %27, %45 : vector<8x256xf32>
    %47 = vector.broadcast %44 : vector<1x256xf32> to vector<8x256xf32>
    %48 = arith.addf %46, %47 : vector<8x256xf32>
    %cst_19 = arith.constant 2.000000e-01 : f32
    %49 = vector.broadcast %cst_19 : f32 to vector<8x256xf32>
    %50 = arith.mulf %49, %48 : vector<8x256xf32>
    %51 = arith.maximumf %48, %50 : vector<8x256xf32>
    %52 = arith.truncf %51 : vector<8x256xf32> to vector<8x256xbf16>
    %c0_20 = arith.constant 0 : index
    %c0_21 = arith.constant 0 : index
    %53 = vector.load %arg5[%c0_20, %c0_21] : memref<256x512xbf16, #tpu.memory_space<vmem>>, vector<256x512xbf16>
    %cst_22 = arith.constant dense<0.000000e+00> : vector<8x512xf32>
    %54 = tpu.matmul %52, %53, %cst_22 {dimension_numbers = #tpu.dot_dimension_numbers<[1], [0], [0], [1], [0, 0, 1, 1], [], []>} : vector<8x256xbf16>, vector<256x512xbf16>, vector<8x512xf32> -> vector<8x512xf32>
    %cst_23 = arith.constant dense<0.000000e+00> : vector<512xf32>
    %55 = vector.multi_reduction <add>, %54, %cst_23 [0] : vector<8x512xf32> to vector<512xf32>
    %56 = vector.shape_cast %55 : vector<512xf32> to vector<1x512xf32>
    %cst_24 = arith.constant 8.000000e+00 : f32
    %57 = vector.broadcast %cst_24 : f32 to vector<1x512xf32>
    %58 = arith.divf %56, %57 : vector<1x512xf32>
    %59 = arith.mulf %54, %54 : vector<8x512xf32>
    %cst_25 = arith.constant dense<0.000000e+00> : vector<512xf32>
    %60 = vector.multi_reduction <add>, %59, %cst_25 [0] : vector<8x512xf32> to vector<512xf32>
    %61 = vector.shape_cast %60 : vector<512xf32> to vector<1x512xf32>
    %cst_26 = arith.constant 8.000000e+00 : f32
    %62 = vector.broadcast %cst_26 : f32 to vector<1x512xf32>
    %63 = arith.divf %61, %62 : vector<1x512xf32>
    %64 = arith.mulf %58, %58 : vector<1x512xf32>
    %65 = arith.subf %63, %64 : vector<1x512xf32>
    %cst_27 = arith.constant 8.000000e-01 : f32
    %66 = vector.broadcast %cst_27 : f32 to vector<1x512xf32>
    %67 = arith.addf %65, %66 : vector<1x512xf32>
    %68 = math.rsqrt %67 : vector<1x512xf32>
    %69 = arith.mulf %68, %3 : vector<1x512xf32>
    %70 = arith.mulf %58, %69 : vector<1x512xf32>
    %71 = arith.subf %4, %70 : vector<1x512xf32>
    %72 = vector.broadcast %69 : vector<1x512xf32> to vector<8x512xf32>
    %73 = arith.mulf %54, %72 : vector<8x512xf32>
    %74 = vector.broadcast %71 : vector<1x512xf32> to vector<8x512xf32>
    %75 = arith.addf %73, %74 : vector<8x512xf32>
    %cst_28 = arith.constant 2.000000e-01 : f32
    %76 = vector.broadcast %cst_28 : f32 to vector<8x512xf32>
    %77 = arith.mulf %76, %75 : vector<8x512xf32>
    %78 = arith.maximumf %75, %77 : vector<8x512xf32>
    %79 = arith.truncf %78 : vector<8x512xf32> to vector<8x512xbf16>
    %c0_29 = arith.constant 0 : index
    %c0_30 = arith.constant 0 : index
    %80 = vector.load %arg6[%c0_29, %c0_30] : memref<512x1024xbf16, #tpu.memory_space<vmem>>, vector<512x1024xbf16>
    %cst_31 = arith.constant dense<0.000000e+00> : vector<8x1024xf32>
    %81 = tpu.matmul %79, %80, %cst_31 {dimension_numbers = #tpu.dot_dimension_numbers<[1], [0], [0], [1], [0, 0, 1, 1], [], []>} : vector<8x512xbf16>, vector<512x1024xbf16>, vector<8x1024xf32> -> vector<8x1024xf32>
    %cst_32 = arith.constant dense<0.000000e+00> : vector<1024xf32>
    %82 = vector.multi_reduction <add>, %81, %cst_32 [0] : vector<8x1024xf32> to vector<1024xf32>
    %83 = vector.shape_cast %82 : vector<1024xf32> to vector<1x1024xf32>
    %cst_33 = arith.constant 8.000000e+00 : f32
    %84 = vector.broadcast %cst_33 : f32 to vector<1x1024xf32>
    %85 = arith.divf %83, %84 : vector<1x1024xf32>
    %86 = arith.mulf %81, %81 : vector<8x1024xf32>
    %cst_34 = arith.constant dense<0.000000e+00> : vector<1024xf32>
    %87 = vector.multi_reduction <add>, %86, %cst_34 [0] : vector<8x1024xf32> to vector<1024xf32>
    %88 = vector.shape_cast %87 : vector<1024xf32> to vector<1x1024xf32>
    %cst_35 = arith.constant 8.000000e+00 : f32
    %89 = vector.broadcast %cst_35 : f32 to vector<1x1024xf32>
    %90 = arith.divf %88, %89 : vector<1x1024xf32>
    %91 = arith.mulf %85, %85 : vector<1x1024xf32>
    %92 = arith.subf %90, %91 : vector<1x1024xf32>
    %cst_36 = arith.constant 8.000000e-01 : f32
    %93 = vector.broadcast %cst_36 : f32 to vector<1x1024xf32>
    %94 = arith.addf %92, %93 : vector<1x1024xf32>
    %95 = math.rsqrt %94 : vector<1x1024xf32>
    %96 = arith.mulf %95, %5 : vector<1x1024xf32>
    %97 = arith.mulf %85, %96 : vector<1x1024xf32>
    %98 = arith.subf %6, %97 : vector<1x1024xf32>
    %99 = vector.broadcast %96 : vector<1x1024xf32> to vector<8x1024xf32>
    %100 = arith.mulf %81, %99 : vector<8x1024xf32>
    %101 = vector.broadcast %98 : vector<1x1024xf32> to vector<8x1024xf32>
    %102 = arith.addf %100, %101 : vector<8x1024xf32>
    %cst_37 = arith.constant 2.000000e-01 : f32
    %103 = vector.broadcast %cst_37 : f32 to vector<8x1024xf32>
    %104 = arith.mulf %103, %102 : vector<8x1024xf32>
    %105 = arith.maximumf %102, %104 : vector<8x1024xf32>
    %106 = arith.truncf %105 : vector<8x1024xf32> to vector<8x1024xbf16>
    %c0_38 = arith.constant 0 : index
    %c0_39 = arith.constant 0 : index
    %107 = vector.load %arg7[%c0_38, %c0_39] : memref<1024x256xbf16, #tpu.memory_space<vmem>>, vector<1024x256xbf16>
    %cst_40 = arith.constant dense<0.000000e+00> : vector<8x256xf32>
    %108 = tpu.matmul %106, %107, %cst_40 {dimension_numbers = #tpu.dot_dimension_numbers<[1], [0], [0], [1], [0, 0, 1, 1], [], []>} : vector<8x1024xbf16>, vector<1024x256xbf16>, vector<8x256xf32> -> vector<8x256xf32>
    %109 = vector.broadcast %7 : vector<1x256xf32> to vector<8x256xf32>
    %110 = arith.addf %108, %109 : vector<8x256xf32>
    %111 = math.tanh %110 : vector<8x256xf32>
    %c0_41 = arith.constant 0 : index
    %c0_42 = arith.constant 0 : index
    %112 = vector.load %arg9[%c0_41, %c0_42] : memref<8x256xf32, #tpu.memory_space<vmem>>, vector<8x256xf32>
    tpu.vector_store %arg9[%c0_41, %c0_42], %111 {strides = array<i32>} : memref<8x256xf32, #tpu.memory_space<vmem>>, vector<8x256xf32>,
    return
  }
}

</mosaic_0001>

<bundles_post_ra>
// kernel: _lambda_.1
= control target key start
LH: loop header
LB: loop body
LE: loop exit
PB: predicated region body
PF: predicated region fallthrough
CT: control target
= control target key end

     0   :  { %v4995_v0 = vmov 0   ;;  %v4996_v2 = vmov 0.0   ;;  %vm71_vm0 = vcmask 1042432   ;;  %vm4997_vm1 = vmmov 0   ;;  %s6676_s0 = inlined_call_operand.vmem [shape: s32[8,1], index: 0, kind: input, shape index: {}]   ;;  %s6677_s3 = inlined_call_operand.vmem [shape: bf16[22,128], index: 3, kind: input, shape index: {}]   ;;  %s6678_s1 = inlined_call_operand.vmem [shape: f32[8,22], index: 1, kind: input, shape index: {}]   ;;  %s6679_s2 = inlined_call_operand.vmem [shape: bf16[10,128], index: 2, kind: input, shape index: {}]   ;;  %s6680_s4 = inlined_call_operand.vmem [shape: bf16[128,256], index: 4, kind: input, shape index: {}]   ;;  %s6681_s5 = inlined_call_operand.vmem [shape: bf16[256,512], index: 5, kind: input, shape index: {}]   ;;  %s6682_s8 = inlined_call_operand.vmem [shape: f32[8,1024], index: 8, kind: input, shape index: {}]   ;;  %s6683_s6 = inlined_call_operand.vmem [shape: bf16[512,1024], index: 6, kind: input, shape index: {}]   ;;  %s6684_s7 = inlined_call_operand.vmem [shape: bf16[1024,256], index: 7, kind: input, shape index: {}]   ;;  %s6685_s9 = inlined_call_operand.vmem [shape: f32[8,256], index: 9, kind: output, shape index: {}]  }
   0x1   :  { %4643 = vset.pattern.permute.xlu0 %v4995_v0  ;;  %v41_v1 = vld [vmem:[%s6676_s0] sm:$0xff]  ;;  %4594 = vmatprep.subr.bf16.mxu0 %v4996_v2  ;;  %v4645_v4 = vld [vmem:[%s6677_s3 + $0x8] ss:$0 sps:$4 sm:$0x77]   ;;  %vm124_vm2 = vcmask 1044480   ;;  %vm67_vm3 = vcmask 179200   ;;  %v42_v23 = vlaneseq }
   0x2   :  { %45 = vperm.xlu0 %4643, %v41_v1   ;;  %v4644_v3 = vld [vmem:[%s6677_s3] sm:$0xff]   ;;  %4598 = vmatprep.mubr.msk.bf16.mxu0 %vm4997_vm1, %v4996_v2  ;;  %v73_v6 = vsel %vm71_vm0, %v4645_v4, 0  ;;  %v4650_v12 = vld [vmem:[%s6680_s4 + $0x14] ss:$8 sps:$4 sm:$0xff]   ;;  %v4652_v13 = vld [vmem:[%s6680_s4 + $0x10] ss:$8 sps:$4 sm:$0xff]  }
   0x3   :  { %299 = vmatprep.mubr.bf16.mxu1 %v4995_v0  ;;  %4595 = vmatpush3.bf16.msra.mxu0 %v4644_v3  ;;  %v53_v5 = vld [vmem:[%s6678_s1] sm:$0xff]  ;;  %v4656_v16 = vld [vmem:[%s6680_s4 + $0x34] ss:$8 sps:$4 sm:$0xff]   ;;  %v4658_v17 = vld [vmem:[%s6680_s4 + $0x30] ss:$8 sps:$4 sm:$0xff]   ;;  %v43_v24 = vand.u32 127, %v42_v23 }
   0x4   :  { %4596 = vmatprep.subr.bf16.mxu0 %v4996_v2  ;;  %v4646_v7 = vld [vmem:[%s6679_s2] sm:$0x1f]   ;;  %v54_v8 = vpack.c.bf16 %v53_v5, %v53_v5  ;;  %v4662_v20 = vld [vmem:[%s6680_s4 + $0x54] ss:$8 sps:$4 sm:$0xff]   ;;  %v4664_v21 = vld [vmem:[%s6680_s4 + $0x50] ss:$8 sps:$4 sm:$0xff]  }
   0x5   :  { %v4647_v9 = vld [vmem:[%s6680_s4 + $0x4] ss:$8 sps:$4 sm:$0xff]   ;;  %v4649_v10 = vld [vmem:[%s6680_s4] ss:$8 sps:$4 sm:$0xff]   ;;  %v126_v11 = vsel %vm124_vm2, %v4646_v7, 0  ;;  %vm120_vm5 = vcmask 80896  }
   0x6   :  { %267 = vmatprep.subr.bf16.mxu1 %v4647_v9  ;;  %v4653_v14 = vld [vmem:[%s6680_s4 + $0x24] ss:$8 sps:$4 sm:$0xff]   ;;  %v4655_v15 = vld [vmem:[%s6680_s4 + $0x20] ss:$8 sps:$4 sm:$0xff]   ;;  %v4668_v29 = vld [vmem:[%s6680_s4 + $0x74] ss:$8 sps:$4 sm:$0xff]  }
   0x7   :  { %4597 = vmatpush3.bf16.msra.mxu0 %v73_v6  ;;  %268 = vmatpush1.bf16.msra.mxu1 %v4649_v10  ;;  %v4659_v18 = vld [vmem:[%s6680_s4 + $0x44] ss:$8 sps:$4 sm:$0xff]   ;;  %v4661_v19 = vld [vmem:[%s6680_s4 + $0x40] ss:$8 sps:$4 sm:$0xff]   ;;  %v4670_v30 = vld [vmem:[%s6680_s4 + $0x70] ss:$8 sps:$4 sm:$0xff]  }
   0x8   :  { %4602 = vmatprep.subr.bf16.mxu0 %v4996_v2  ;;  %269 = vmatprep.subr.bf16.mxu1 %v4650_v12  ;;  %v4665_v22 = vld [vmem:[%s6680_s4 + $0x64] ss:$8 sps:$4 sm:$0xff]   ;;  %v4667_v28 = vld [vmem:[%s6680_s4 + $0x60] ss:$8 sps:$4 sm:$0xff]  }
   0x9   :  { %v4673_v31 = vld [vmem:[%s6681_s5 + $0x4] ss:$16 sps:$4 sm:$0xff]   ;;  %v4671_v38 = vld [vmem:[%s6681_s5] ss:$16 sps:$4 sm:$0xff]   ;;  %v4721_v6 = vld [vmem:[%s6681_s5 + $0xc] ss:$16 sps:$4 sm:$0xff]  }
   0xa   :  { %4599 = vmatmul.mubr.msk.bf16.vlgmr.msra.gmra.mrb[0].mxu0 %vm67_vm3, %v54_v8  ;;  %v4676_v40 = vld [vmem:[%s6681_s5 + $0x24] ss:$16 sps:$4 sm:$0xff]   ;;  %v4674_v41 = vld [vmem:[%s6681_s5 + $0x20] ss:$16 sps:$4 sm:$0xff]  }
   0xb   :  { %4603 = vmatpush3.bf16.msra.mxu0 %v126_v11  ;;  %4604 = vmatprep.mubr.msk.bf16.mxu0 %vm4997_vm1, %v4996_v2  ;;  %v4679_v42 = vld [vmem:[%s6681_s5 + $0x44] ss:$16 sps:$4 sm:$0xff]   ;;  %v4677_v43 = vld [vmem:[%s6681_s5 + $0x40] ss:$16 sps:$4 sm:$0xff]  }
   0xc   :  { %270 = vmatpush1.bf16.msra.mxu1 %v4652_v13  ;;  %v4682_v44 = vld [vmem:[%s6681_s5 + $0x64] ss:$16 sps:$4 sm:$0xff]   ;;  %v4680_v45 = vld [vmem:[%s6681_s5 + $0x60] ss:$16 sps:$4 sm:$0xff]  }
   0xd   :  { %271 = vmatprep.subr.bf16.mxu1 %v4653_v14  ;;  %v4685_v46 = vld [vmem:[%s6681_s5 + $0x84] ss:$16 sps:$4 sm:$0xff]   ;;  %v4683_v47 = vld [vmem:[%s6681_s5 + $0x80] ss:$16 sps:$4 sm:$0xff]  }
   0xe   :  { %v4688_v48 = vld [vmem:[%s6681_s5 + $0xa4] ss:$16 sps:$4 sm:$0xff]   ;;  %v4686_v49 = vld [vmem:[%s6681_s5 + $0xa0] ss:$16 sps:$4 sm:$0xff]  }
   0xf   :  { %v4691_v50 = vld [vmem:[%s6681_s5 + $0xc4] ss:$16 sps:$4 sm:$0xff]   ;;  %v4689_v51 = vld [vmem:[%s6681_s5 + $0xc0] ss:$16 sps:$4 sm:$0xff]  }
  0x10   :  { %272 = vmatpush1.bf16.msra.mxu1 %v4655_v15  ;;  %v4694_v52 = vld [vmem:[%s6681_s5 + $0xe4] ss:$16 sps:$4 sm:$0xff]   ;;  %v4692_v53 = vld [vmem:[%s6681_s5 + $0xe0] ss:$16 sps:$4 sm:$0xff]  }
  0x11   :  { %273 = vmatprep.subr.bf16.mxu1 %v4656_v16  ;;  %v4697_v54 = vld [vmem:[%s6681_s5 + $0x104] ss:$16 sps:$4 sm:$0xff]   ;;  %v4695_v55 = vld [vmem:[%s6681_s5 + $0x100] ss:$16 sps:$4 sm:$0xff]  }
  0x12   :  { %v4700_v56 = vld [vmem:[%s6681_s5 + $0x124] ss:$16 sps:$4 sm:$0xff]   ;;  %v4698_v57 = vld [vmem:[%s6681_s5 + $0x120] ss:$16 sps:$4 sm:$0xff]  }
  0x13   :  { %v4703_v58 = vld [vmem:[%s6681_s5 + $0x144] ss:$16 sps:$4 sm:$0xff]   ;;  %v4701_v59 = vld [vmem:[%s6681_s5 + $0x140] ss:$16 sps:$4 sm:$0xff]  }
  0x14   :  { %274 = vmatpush1.bf16.msra.mxu1 %v4658_v17  ;;  %v4706_v60 = vld [vmem:[%s6681_s5 + $0x164] ss:$16 sps:$4 sm:$0xff]   ;;  %v4704_v61 = vld [vmem:[%s6681_s5 + $0x160] ss:$16 sps:$4 sm:$0xff]  }
  0x15   :  { %275 = vmatprep.subr.bf16.mxu1 %v4659_v18  ;;  %v4709_v62 = vld [vmem:[%s6681_s5 + $0x184] ss:$16 sps:$4 sm:$0xff]   ;;  %v4707_v63 = vld [vmem:[%s6681_s5 + $0x180] ss:$16 sps:$4 sm:$0xff]  }
  0x16   :  { %v4712_v0 = vld [vmem:[%s6681_s5 + $0x1a4] ss:$16 sps:$4 sm:$0xff]   ;;  %v4710_v1 = vld [vmem:[%s6681_s5 + $0x1a0] ss:$16 sps:$4 sm:$0xff]  }
  0x17   :  { %v4713_v3 = vld [vmem:[%s6681_s5 + $0x1c0] ss:$16 sps:$4 sm:$0xff]   ;;  %v4718_v5 = vld [vmem:[%s6681_s5 + $0x1e4] ss:$16 sps:$4 sm:$0xff]  }
  0x18   :  { %276 = vmatpush1.bf16.msra.mxu1 %v4661_v19  ;;  %v4716_v4 = vld [vmem:[%s6681_s5 + $0x1e0] ss:$16 sps:$4 sm:$0xff]  }
  0x19   :  { %277 = vmatprep.subr.bf16.mxu1 %v4662_v20 }
  0x1c   :  { %278 = vmatpush1.bf16.msra.mxu1 %v4664_v21 }
  0x1d   :  { %279 = vmatprep.subr.bf16.mxu1 %v4665_v22 }
  0x20   :  { %280 = vmatpush1.bf16.msra.mxu1 %v4667_v28 }
  0x21   :  { %281 = vmatprep.subr.bf16.mxu1 %v4668_v29 }
  0x24   :  { %282 = vmatpush1.bf16.msra.mxu1 %v4670_v30 }
  0x25   :  { %769 = vmatprep.subr.bf16.mxu1 %v4673_v31 }
  0x81   :  { %v46_v25 = vpop.permute.xlu0 %45 }
  0x82   :  { %vm47_vm4 = vcmp.eq.s32.totalorder %v46_v25, %v43_v24 }
  0x83   :  { %v4119_v26 = vsel %vm47_vm4, 1.0, %v4996_v2  ;;  %v4715_v2 = vld [vmem:[%s6681_s5 + $0x1c4] ss:$16 sps:$4 sm:$0xff]  }
  0x84   :  { %v50_v27 = vpack.c.bf16 %v4119_v26, %v4119_v26 }
  0x86   :  { %4605 = vmatmul.mubr.msk.bf16.vlgmr.msra.gmra.mrb[0].mxu0 %vm120_vm5, %v50_v27 }
 0x159   :  { %v162_v32 = vpop.f32.mrb[0].mxu0 }
 0x15a   :  { %v168_v33 = vmul.f32 0.2, %v162_v32  ;;  %v4606_v34 = vpop.f32.mrb[1].mxu0 }
 0x15b   :  { %v165_v35 = vpop.f32.mrb[2].mxu0 }
 0x15c   :  { %v169_v36 = vmax.f32 %v162_v32, %v168_v33  ;;  %v4607_v37 = vpop.f32.mrb[3].mxu0 }
 0x15e   :  { %v170_v39 = vpack.c.bf16 %v169_v36, %v169_v36 }
 0x160   :  { %300 = vmatmul.mubr.bf16.vlgmr.msra.gmra.mrb[0].mxu1 %v170_v39 }
 0x161   :  { %770 = vmatpush1.bf16.msra.mxu1 %v4671_v38 }
 0x162   :  { %771 = vmatprep.subr.bf16.mxu1 %v4676_v40 }
 0x165   :  { %772 = vmatpush1.bf16.msra.mxu1 %v4674_v41 }
 0x166   :  { %773 = vmatprep.subr.bf16.mxu1 %v4679_v42 }
 0x169   :  { %774 = vmatpush1.bf16.msra.mxu1 %v4677_v43 }
 0x16a   :  { %775 = vmatprep.subr.bf16.mxu1 %v4682_v44 }
 0x16d   :  { %776 = vmatpush1.bf16.msra.mxu1 %v4680_v45 }
 0x16e   :  { %777 = vmatprep.subr.bf16.mxu1 %v4685_v46 }
 0x171   :  { %778 = vmatpush1.bf16.msra.mxu1 %v4683_v47 }
 0x172   :  { %779 = vmatprep.subr.bf16.mxu1 %v4688_v48  ;;  %v5214_v48 = vshrl.u32 %v42_v23, 7 }
 0x175   :  { %780 = vmatpush1.bf16.msra.mxu1 %v4686_v49  ;;  %v5219_v49 = vld [vmem:[%s6682_s8] sm:$0xff] }
 0x176   :  { %781 = vmatprep.subr.bf16.mxu1 %v4691_v50  ;;  %v5224_v50 = vld [vmem:[%s6682_s8 + $0x8] sm:$0xff] }
 0x179   :  { %782 = vmatpush1.bf16.msra.mxu1 %v4689_v51 }
 0x17a   :  { %783 = vmatprep.subr.bf16.mxu1 %v4694_v52 }
 0x17d   :  { %784 = vmatpush1.bf16.msra.mxu1 %v4692_v53 }
 0x17e   :  { %785 = vmatprep.subr.bf16.mxu1 %v4697_v54  ;;  %v361_v54 = vsub.s32 0, %v5214_v48 }
 0x181   :  { %786 = vmatpush1.bf16.msra.mxu1 %v4695_v55 }
 0x182   :  { %787 = vmatprep.subr.bf16.mxu1 %v4700_v56 }
 0x185   :  { %788 = vmatpush1.bf16.msra.mxu1 %v4698_v57 }
 0x186   :  { %789 = vmatprep.subr.bf16.mxu1 %v4703_v58 }
 0x189   :  { %790 = vmatpush1.bf16.msra.mxu1 %v4701_v59  ;;  %v371_v59 = vsub.s32 1, %v5214_v48 }
 0x18a   :  { %791 = vmatprep.subr.bf16.mxu1 %v4706_v60 }
 0x18d   :  { %792 = vmatpush1.bf16.msra.mxu1 %v4704_v61 }
 0x18e   :  { %793 = vmatprep.subr.bf16.mxu1 %v4709_v62 }
 0x191   :  { %794 = vmatpush1.bf16.msra.mxu1 %v4707_v63 }
 0x192   :  { %795 = vmatprep.subr.bf16.mxu1 %v4712_v0 }
 0x195   :  { %796 = vmatpush1.bf16.msra.mxu1 %v4710_v1 }
 0x196   :  { %797 = vmatprep.subr.bf16.mxu1 %v4715_v2 }
 0x199   :  { %798 = vmatpush1.bf16.msra.mxu1 %v4713_v3 }
 0x19a   :  { %799 = vmatprep.subr.bf16.mxu1 %v4718_v5 }
 0x19d   :  { %800 = vmatpush1.bf16.msra.mxu1 %v4716_v4 }
 0x19e   :  { %810 = vmatprep.subr.bf16.mxu1 %v4721_v6 }
 0x233   :  { %v301_v7 = vpop.f32.mrb[0].mxu1 }
 0x234   :  { %v308_v8 = vrot.slane %v301_v7, 4  ;;  %v323_v9 = vmul.f32 %v301_v7, %v301_v7  ;;  %v303_v10 = vpop.f32.mrb[1].mxu1 }
 0x235   :  { %v314_v11 = vrot.slane %v303_v10, 4  ;;  %v324_v12 = vmul.f32 %v303_v10, %v303_v10  ;;  %v305_v13 = vpop.f32.mrb[2].mxu1 }
 0x236   :  { %v309_v14 = vadd.f32 %v308_v8, %v301_v7  ;;  %v325_v15 = vrot.slane %v323_v9, 4  ;;  %v306_v16 = vpop.f32.mrb[3].mxu1  ;;  %v4719_v13 = vld [vmem:[%s6681_s5 + $0x8] ss:$16 sps:$4 sm:$0xff]  }
 0x237   :  { %v315_v17 = vadd.f32 %v314_v11, %v303_v10  ;;  %v331_v18 = vrot.slane %v324_v12, 4  ;;  %v4725_v16 = vld [vmem:[%s6681_s5 + $0x48] ss:$16 sps:$4 sm:$0xff]  }
 0x238   :  { %v310_v19 = vrot.slane %v309_v14, 2  ;;  %v326_v20 = vadd.f32 %v325_v15, %v323_v9  ;;  %v4727_v15 = vld [vmem:[%s6681_s5 + $0x4c] ss:$16 sps:$4 sm:$0xff]  }
 0x239   :  { %v316_v21 = vrot.slane %v315_v17, 2  ;;  %v332_v22 = vadd.f32 %v331_v18, %v324_v12  ;;  %v4728_v18 = vld [vmem:[%s6681_s5 + $0x68] ss:$16 sps:$4 sm:$0xff]  }
 0x23a   :  { %v311_v24 = vadd.f32 %v310_v19, %v309_v14  ;;  %v327_v25 = vrot.slane %v326_v20, 2  ;;  %v4733_v19 = vld [vmem:[%s6681_s5 + $0x8c] ss:$16 sps:$4 sm:$0xff]  }
 0x23b   :  { %v317_v26 = vadd.f32 %v316_v21, %v315_v17  ;;  %v333_v27 = vrot.slane %v332_v22, 2  ;;  %v4730_v17 = vld [vmem:[%s6681_s5 + $0x6c] ss:$16 sps:$4 sm:$0xff]  }
 0x23c   :  { %v312_v28 = vrot.slane %v311_v24, 1  ;;  %v328_v29 = vadd.f32 %v327_v25, %v326_v20  ;;  %v4731_v20 = vld [vmem:[%s6681_s5 + $0x88] ss:$16 sps:$4 sm:$0xff]   ;;  %v4736_v21 = vld [vmem:[%s6681_s5 + $0xac] ss:$16 sps:$4 sm:$0xff]  }
 0x23d   :  { %v318_v30 = vrot.slane %v317_v26, 1  ;;  %v334_v31 = vadd.f32 %v333_v27, %v332_v22  ;;  %v4734_v22 = vld [vmem:[%s6681_s5 + $0xa8] ss:$16 sps:$4 sm:$0xff]  }
 0x23e   :  { %v313_v32 = vadd.f32 %v312_v28, %v311_v24  ;;  %v329_v33 = vrot.slane %v328_v29, 1  ;;  %v4739_v24 = vld [vmem:[%s6681_s5 + $0xcc] ss:$16 sps:$4 sm:$0xff]   ;;  %v4737_v25 = vld [vmem:[%s6681_s5 + $0xc8] ss:$16 sps:$4 sm:$0xff]  }
 0x23f   :  { %v319_v34 = vadd.f32 %v318_v30, %v317_v26  ;;  %v335_v35 = vrot.slane %v334_v31, 1  ;;  %v4742_v26 = vld [vmem:[%s6681_s5 + $0xec] ss:$16 sps:$4 sm:$0xff]   ;;  %v4740_v27 = vld [vmem:[%s6681_s5 + $0xe8] ss:$16 sps:$4 sm:$0xff]  }
 0x240   :  { %v321_v36 = vmul.f32 0.125, %v313_v32  ;;  %v330_v37 = vadd.f32 %v329_v33, %v328_v29  ;;  %v4745_v28 = vld [vmem:[%s6681_s5 + $0x10c] ss:$16 sps:$4 sm:$0xff]   ;;  %v4743_v29 = vld [vmem:[%s6681_s5 + $0x108] ss:$16 sps:$4 sm:$0xff]  }
 0x241   :  { %v322_v38 = vmul.f32 0.125, %v319_v34  ;;  %v336_v39 = vadd.f32 %v335_v35, %v334_v31  ;;  %v4748_v30 = vld [vmem:[%s6681_s5 + $0x12c] ss:$16 sps:$4 sm:$0xff]   ;;  %v4746_v31 = vld [vmem:[%s6681_s5 + $0x128] ss:$16 sps:$4 sm:$0xff]  }
 0x242   :  { %v337_v40 = vmul.f32 0.125, %v330_v37  ;;  %v339_v41 = vmul.f32 %v321_v36, %v321_v36  ;;  %v4751_v32 = vld [vmem:[%s6681_s5 + $0x14c] ss:$16 sps:$4 sm:$0xff]   ;;  %v4749_v33 = vld [vmem:[%s6681_s5 + $0x148] ss:$16 sps:$4 sm:$0xff]  }
 0x243   :  { %v338_v42 = vmul.f32 0.125, %v336_v39  ;;  %v340_v43 = vmul.f32 %v322_v38, %v322_v38  ;;  %v4754_v34 = vld [vmem:[%s6681_s5 + $0x16c] ss:$16 sps:$4 sm:$0xff]   ;;  %v4752_v35 = vld [vmem:[%s6681_s5 + $0x168] ss:$16 sps:$4 sm:$0xff]  }
 0x244   :  { %v341_v44 = vsub.f32 %v337_v40, %v339_v41  ;;  %v4755_v37 = vld [vmem:[%s6681_s5 + $0x188] ss:$16 sps:$4 sm:$0xff]   ;;  %v4763_v40 = vld [vmem:[%s6681_s5 + $0x1cc] ss:$16 sps:$4 sm:$0xff]  }
 0x245   :  { %v342_v45 = vsub.f32 %v338_v42, %v340_v43  ;;  %v4758_v39 = vld [vmem:[%s6681_s5 + $0x1a8] ss:$16 sps:$4 sm:$0xff]   ;;  %v4766_v42 = vld [vmem:[%s6681_s5 + $0x1ec] ss:$16 sps:$4 sm:$0xff]   ;;  %v1003_v43 = vld [vmem:[%s6683_s6] sm:$0xff] }
 0x246   :  { %v343_v46 = vadd.f32 0.8, %v341_v44  ;;  %v4761_v41 = vld [vmem:[%s6681_s5 + $0x1c8] ss:$16 sps:$4 sm:$0xff]   ;;  %v1007_v44 = vld [vmem:[%s6683_s6 + $0x20] sm:$0xff] }
 0x247   :  { %v344_v47 = vadd.f32 0.8, %v342_v45  ;;  %v4764_v45 = vld [vmem:[%s6681_s5 + $0x1e8] ss:$16 sps:$4 sm:$0xff]  }
 0x248   :  { %4959 = vrsqrt.f32 %v343_v46  ;;  %v4206_v46 = vcombine.high %v1003_v43, %v1007_v44 }
 0x249   :  { %4961 = vrsqrt.f32 %v344_v47  ;;  %v1011_v47 = vld [vmem:[%s6683_s6 + $0x40] sm:$0xff] }
 0x252   :  { %v4960_v51 = vpop.eup %4959 }
 0x253   :  { %v4962_v52 = vpop.eup %4961  ;;  %v347_v53 = vmul.f32 %v4960_v51, %v5219_v49  ;;  %v1015_v51 = vld [vmem:[%s6683_s6 + $0x60] sm:$0xff] }
 0x254   :  { %v348_v55 = vmul.f32 %v4962_v52, %v5224_v50  ;;  %v4205_v52 = vcombine.low %v1003_v43, %v1007_v44  ;;  %v1123_v43 = vld [vmem:[%s6683_s6 + $0x3c0] sm:$0xff] }
 0x255   :  { %v349_v23 = vmul.f32 %v347_v53, %v321_v36  ;;  %v362_v58 = vrot.slane %v347_v53, %v361_v54  ;;  %v4757_v36 = vld [vmem:[%s6681_s5 + $0x18c] ss:$16 sps:$4 sm:$0xff]   ;;  %v4214_v53 = vcombine.high %v1011_v47, %v1015_v51  ;;  %v1127_v44 = vld [vmem:[%s6683_s6 + $0x3e0] sm:$0xff] }
 0x256   :  { %v350_v56 = vmul.f32 %v348_v55, %v322_v38  ;;  %v366_v61 = vrot.slane %v348_v55, %v361_v54  ;;  %v4760_v38 = vld [vmem:[%s6681_s5 + $0x1ac] ss:$16 sps:$4 sm:$0xff]   ;;  %v1019_v54 = vld [vmem:[%s6683_s6 + $0x80] sm:$0xff] }
 0x257   :  { %v353_v57 = vrot.slane %v349_v23, 7  ;;  %v367_v0 = vmul.f32 %v362_v58, %v301_v7  ;;  %v4724_v7 = vld [vmem:[%s6681_s5 + $0x2c] ss:$16 sps:$4 sm:$0xff]   ;;  %v1023_v55 = vld [vmem:[%s6683_s6 + $0xa0] sm:$0xff]  ;;  %v4213_v23 = vcombine.low %v1011_v47, %v1015_v51  ;;  %v4326_v47 = vcombine.high %v1123_v43, %v1127_v44 }
 0x258   :  { %v354_v60 = vrot.slane %v350_v56, 7  ;;  %v368_v2 = vmul.f32 %v366_v61, %v303_v10  ;;  %v4722_v10 = vld [vmem:[%s6681_s5 + $0x28] ss:$16 sps:$4 sm:$0xff]   ;;  %v4222_v56 = vcombine.high %v1019_v54, %v1023_v55  ;;  %v1031_v58 = vld [vmem:[%s6683_s6 + $0xe0] sm:$0xff] }
 0x259   :  { %v357_v62 = vsub.f32 %v5219_v49, %v353_v57  ;;  %v1027_v57 = vld [vmem:[%s6683_s6 + $0xc0] sm:$0xff] }
 0x25a   :  { %v358_v63 = vsub.f32 %v5224_v50, %v354_v60  ;;  %v4230_v60 = vcombine.high %v1027_v57, %v1031_v58  ;;  %v4229_v61 = vcombine.low %v1027_v57, %v1031_v58  ;;  %v1135_v51 = vld [vmem:[%s6683_s6 + $0x420] sm:$0xff] }
 0x25b   :  { %v372_v1 = vrot.slane %v357_v62, %v371_v59  ;;  %v1035_v62 = vld [vmem:[%s6683_s6 + $0x100] sm:$0xff] }
 0x25c   :  { %v376_v3 = vrot.slane %v358_v63, %v371_v59  ;;  %v4221_v59 = vcombine.low %v1019_v54, %v1023_v55  ;;  %v1039_v63 = vld [vmem:[%s6683_s6 + $0x120] sm:$0xff]  ;;  %v5434_v54 = vld [vmem:[%s6683_s6 + $0x8] sm:$0xff] }
 0x25d   :  { %v377_v4 = vadd.f32 %v372_v1, %v367_v0  ;;  %v4238_v0 = vcombine.high %v1035_v62, %v1039_v63  ;;  %v4237_v1 = vcombine.low %v1035_v62, %v1039_v63  ;;  %v5439_v55 = vld [vmem:[%s6683_s6 + $0x28] sm:$0xff]  ;;  %v1139_v57 = vld [vmem:[%s6683_s6 + $0x440] sm:$0xff] }
 0x25e   :  { %v378_v5 = vadd.f32 %v376_v3, %v368_v2  ;;  %v1043_v2 = vld [vmem:[%s6683_s6 + $0x140] sm:$0xff] }
 0x25f   :  { %v379_v6 = vmul.f32 0.2, %v377_v4  ;;  %v1047_v3 = vld [vmem:[%s6683_s6 + $0x160] sm:$0xff] }
 0x260   :  { %v380_v8 = vmul.f32 0.2, %v378_v5  ;;  %v1143_v58 = vld [vmem:[%s6683_s6 + $0x460] sm:$0xff] }
 0x261   :  { %v381_v9 = vmax.f32 %v377_v4, %v379_v6  ;;  %v4246_v4 = vcombine.high %v1043_v2, %v1047_v3  ;;  %v1051_v6 = vld [vmem:[%s6683_s6 + $0x180] sm:$0xff] }
 0x262   :  { %v382_v11 = vmax.f32 %v378_v5, %v380_v8  ;;  %v4245_v5 = vcombine.low %v1043_v2, %v1047_v3  ;;  %v1055_v8 = vld [vmem:[%s6683_s6 + $0x1a0] sm:$0xff] }
 0x263   :  { %v5235_v14 = vpack.c.bf16 %v381_v9, %v381_v9  ;;  %v4254_v9 = vcombine.high %v1051_v6, %v1055_v8  ;;  %v1151_v62 = vld [vmem:[%s6683_s6 + $0x4a0] sm:$0xff] }
 0x264   :  { %v384_v12 = vpack.c.bf16 %v382_v11, %v382_v11  ;;  %v4253_v11 = vcombine.low %v1051_v6, %v1055_v8  ;;  %v1159_v2 = vld [vmem:[%s6683_s6 + $0x4e0] sm:$0xff] }
 0x265   :  { %v1167_v6 = vld [vmem:[%s6683_s6 + $0x520] sm:$0xff] }
 0x266   :  { %801 = vmatprep.mubr.bf16.mxu1 %v384_v12 }
 0x267   :  { %802 = vmatmul.mubr.bf16.vlgmr.msra.gmra.mrb[4].mxu1 %v5235_v14 }
 0x268   :  { %811 = vmatpush1.bf16.msra.mxu1 %v4719_v13  ;;  %842 = vmatprep.mubr.bf16.mxu1 %v384_v12  ;;  %v1059_v12 = vld [vmem:[%s6683_s6 + $0x1c0] sm:$0xff] }
 0x269   :  { %812 = vmatprep.subr.bf16.mxu1 %v4724_v7  ;;  %v1063_v13 = vld [vmem:[%s6683_s6 + $0x1e0] sm:$0xff] }
 0x26a   :  { %v4261_v7 = vcombine.low %v1059_v12, %v1063_v13 }
 0x26c   :  { %813 = vmatpush1.bf16.msra.mxu1 %v4722_v10  ;;  %v1067_v10 = vld [vmem:[%s6683_s6 + $0x200] sm:$0xff] }
 0x26d   :  { %814 = vmatprep.subr.bf16.mxu1 %v4727_v15  ;;  %v1071_v15 = vld [vmem:[%s6683_s6 + $0x220] sm:$0xff] }
 0x270   :  { %815 = vmatpush1.bf16.msra.mxu1 %v4725_v16  ;;  %v4270_v16 = vcombine.high %v1067_v10, %v1071_v15 }
 0x271   :  { %816 = vmatprep.subr.bf16.mxu1 %v4730_v17  ;;  %v4269_v17 = vcombine.low %v1067_v10, %v1071_v15  ;;  %v1183_v10 = vld [vmem:[%s6683_s6 + $0x5a0] sm:$0xff] }
 0x274   :  { %817 = vmatpush1.bf16.msra.mxu1 %v4728_v18  ;;  %v1075_v18 = vld [vmem:[%s6683_s6 + $0x240] sm:$0xff] }
 0x275   :  { %818 = vmatprep.subr.bf16.mxu1 %v4733_v19  ;;  %v1079_v19 = vld [vmem:[%s6683_s6 + $0x260] sm:$0xff] }
 0x278   :  { %819 = vmatpush1.bf16.msra.mxu1 %v4731_v20  ;;  %v4278_v20 = vcombine.high %v1075_v18, %v1079_v19 }
 0x279   :  { %820 = vmatprep.subr.bf16.mxu1 %v4736_v21  ;;  %v4277_v21 = vcombine.low %v1075_v18, %v1079_v19  ;;  %v1191_v18 = vld [vmem:[%s6683_s6 + $0x5e0] sm:$0xff] }
 0x27c   :  { %821 = vmatpush1.bf16.msra.mxu1 %v4734_v22  ;;  %v1083_v22 = vld [vmem:[%s6683_s6 + $0x280] sm:$0xff] }
 0x27d   :  { %822 = vmatprep.subr.bf16.mxu1 %v4739_v24  ;;  %v1087_v24 = vld [vmem:[%s6683_s6 + $0x2a0] sm:$0xff] }
 0x280   :  { %823 = vmatpush1.bf16.msra.mxu1 %v4737_v25  ;;  %v4286_v25 = vcombine.high %v1083_v22, %v1087_v24 }
 0x281   :  { %824 = vmatprep.subr.bf16.mxu1 %v4742_v26  ;;  %v4285_v26 = vcombine.low %v1083_v22, %v1087_v24  ;;  %v1199_v22 = vld [vmem:[%s6683_s6 + $0x620] sm:$0xff] }
 0x284   :  { %825 = vmatpush1.bf16.msra.mxu1 %v4740_v27  ;;  %v1091_v27 = vld [vmem:[%s6683_s6 + $0x2c0] sm:$0xff] }
 0x285   :  { %826 = vmatprep.subr.bf16.mxu1 %v4745_v28  ;;  %v1095_v28 = vld [vmem:[%s6683_s6 + $0x2e0] sm:$0xff] }
 0x288   :  { %827 = vmatpush1.bf16.msra.mxu1 %v4743_v29  ;;  %v4294_v29 = vcombine.high %v1091_v27, %v1095_v28 }
 0x289   :  { %828 = vmatprep.subr.bf16.mxu1 %v4748_v30  ;;  %v4293_v30 = vcombine.low %v1091_v27, %v1095_v28  ;;  %v1207_v27 = vld [vmem:[%s6683_s6 + $0x660] sm:$0xff] }
 0x28c   :  { %829 = vmatpush1.bf16.msra.mxu1 %v4746_v31  ;;  %v1099_v31 = vld [vmem:[%s6683_s6 + $0x300] sm:$0xff] }
 0x28d   :  { %830 = vmatprep.subr.bf16.mxu1 %v4751_v32  ;;  %v1103_v32 = vld [vmem:[%s6683_s6 + $0x320] sm:$0xff] }
 0x290   :  { %831 = vmatpush1.bf16.msra.mxu1 %v4749_v33  ;;  %v4302_v33 = vcombine.high %v1099_v31, %v1103_v32 }
 0x291   :  { %832 = vmatprep.subr.bf16.mxu1 %v4754_v34  ;;  %v4301_v34 = vcombine.low %v1099_v31, %v1103_v32  ;;  %v1215_v31 = vld [vmem:[%s6683_s6 + $0x6a0] sm:$0xff] }
 0x294   :  { %833 = vmatpush1.bf16.msra.mxu1 %v4752_v35  ;;  %v1107_v35 = vld [vmem:[%s6683_s6 + $0x340] sm:$0xff] }
 0x295   :  { %834 = vmatprep.subr.bf16.mxu1 %v4757_v36  ;;  %v1111_v36 = vld [vmem:[%s6683_s6 + $0x360] sm:$0xff] }
 0x298   :  { %835 = vmatpush1.bf16.msra.mxu1 %v4755_v37  ;;  %v4310_v37 = vcombine.high %v1107_v35, %v1111_v36 }
 0x299   :  { %836 = vmatprep.subr.bf16.mxu1 %v4760_v38  ;;  %v4309_v38 = vcombine.low %v1107_v35, %v1111_v36  ;;  %v1223_v35 = vld [vmem:[%s6683_s6 + $0x6e0] sm:$0xff] }
 0x29c   :  { %837 = vmatpush1.bf16.msra.mxu1 %v4758_v39  ;;  %v1115_v39 = vld [vmem:[%s6683_s6 + $0x380] sm:$0xff] }
 0x29d   :  { %838 = vmatprep.subr.bf16.mxu1 %v4763_v40  ;;  %v1119_v40 = vld [vmem:[%s6683_s6 + $0x3a0] sm:$0xff] }
 0x2a0   :  { %839 = vmatpush1.bf16.msra.mxu1 %v4761_v41  ;;  %v4318_v41 = vcombine.high %v1115_v39, %v1119_v40 }
 0x2a1   :  { %840 = vmatprep.subr.bf16.mxu1 %v4766_v42  ;;  %v4317_v42 = vcombine.low %v1115_v39, %v1119_v40  ;;  %v1231_v39 = vld [vmem:[%s6683_s6 + $0x720] sm:$0xff] }
 0x2a4   :  { %841 = vmatpush1.bf16.msra.mxu1 %v4764_v45  ;;  %v1131_v45 = vld [vmem:[%s6683_s6 + $0x400] sm:$0xff] }
 0x2a5   :  { %2539 = vmatprep.subr.bf16.mxu1 %v4206_v46  ;;  %v4325_v46 = vcombine.low %v1123_v43, %v1127_v44  ;;  %v1239_v43 = vld [vmem:[%s6683_s6 + $0x760] sm:$0xff] }
 0x2a7   :  { %843 = vmatmul.mubr.bf16.vlgmr.msra.gmra.mrb[8].mxu1 %v5235_v14  ;;  %v4262_v14 = vcombine.high %v1059_v12, %v1063_v13  ;;  %v1175_v12 = vld [vmem:[%s6683_s6 + $0x560] sm:$0xff] }
 0x2a8   :  { %2540 = vmatpush1.bf16.msra.mxu1 %v4205_v52  ;;  %v4333_v52 = vcombine.low %v1131_v45, %v1135_v51 }
 0x2a9   :  { %2541 = vmatprep.subr.bf16.mxu1 %v4214_v53  ;;  %v4334_v53 = vcombine.high %v1131_v45, %v1135_v51 }
 0x2ab   :  { %2580 = vmatprep.subr.bf16.mxu0 %v4334_v53  ;;  %v1251_v53 = vld [vmem:[%s6683_s6 + $0x7c0] sm:$0xff] }
 0x2ac   :  { %2542 = vmatpush1.bf16.msra.mxu1 %v4213_v23  ;;  %2581 = vmatpush1.bf16.msra.mxu0 %v4333_v52  ;;  %v4208_v23 = vcombine.high %v5434_v54, %v5439_v55 }
 0x2ad   :  { %2543 = vmatprep.subr.bf16.mxu1 %v4222_v56  ;;  %v4207_v56 = vcombine.low %v5434_v54, %v5439_v55  ;;  %v1036_v54 = vld [vmem:[%s6683_s6 + $0x108] sm:$0xff] }
 0x2ae   :  { %v1040_v55 = vld [vmem:[%s6683_s6 + $0x128] sm:$0xff] }
 0x2b0   :  { %2544 = vmatpush1.bf16.msra.mxu1 %v4221_v59  ;;  %v4341_v59 = vcombine.low %v1139_v57, %v1143_v58 }
 0x2b1   :  { %2545 = vmatprep.subr.bf16.mxu1 %v4230_v60  ;;  %v4342_v60 = vcombine.high %v1139_v57, %v1143_v58 }
 0x2b3   :  { %2582 = vmatprep.subr.bf16.mxu0 %v4342_v60  ;;  %v5543_v60 = vld [vmem:[%s6683_s6 + $0x30] sm:$0xff] }
 0x2b4   :  { %2546 = vmatpush1.bf16.msra.mxu1 %v4229_v61  ;;  %2583 = vmatpush1.bf16.msra.mxu0 %v4341_v59  ;;  %v1147_v61 = vld [vmem:[%s6683_s6 + $0x480] sm:$0xff]  ;;  %v5538_v59 = vld [vmem:[%s6683_s6 + $0x10] sm:$0xff] }
 0x2b5   :  { %2547 = vmatprep.subr.bf16.mxu1 %v4238_v0  ;;  %v4349_v63 = vcombine.low %v1147_v61, %v1151_v62  ;;  %v4350_v0 = vcombine.high %v1147_v61, %v1151_v62  ;;  %v4210_v61 = vcombine.high %v5538_v59, %v5543_v60  ;;  %v4209_v62 = vcombine.low %v5538_v59, %v5543_v60  ;;  %v1033_v59 = vld [vmem:[%s6683_s6 + $0xf0] sm:$0xff]  ;;  %v1156_v60 = vld [vmem:[%s6683_s6 + $0x4c8] sm:$0xff] }
 0x2b7   :  { %2584 = vmatprep.subr.bf16.mxu0 %v4350_v0 }
 0x2b8   :  { %2548 = vmatpush1.bf16.msra.mxu1 %v4237_v1  ;;  %2585 = vmatpush1.bf16.msra.mxu0 %v4349_v63  ;;  %v1155_v1 = vld [vmem:[%s6683_s6 + $0x4c0] sm:$0xff] }
 0x2b9   :  { %2549 = vmatprep.subr.bf16.mxu1 %v4246_v4  ;;  %v4357_v3 = vcombine.low %v1155_v1, %v1159_v2  ;;  %v4358_v4 = vcombine.high %v1155_v1, %v1159_v2 }
 0x2bb   :  { %2586 = vmatprep.subr.bf16.mxu0 %v4358_v4 }
 0x2bc   :  { %2550 = vmatpush1.bf16.msra.mxu1 %v4245_v5  ;;  %2587 = vmatpush1.bf16.msra.mxu0 %v4357_v3  ;;  %v1163_v5 = vld [vmem:[%s6683_s6 + $0x500] sm:$0xff] }
 0x2bd   :  { %2551 = vmatprep.subr.bf16.mxu1 %v4254_v9  ;;  %v4366_v8 = vcombine.high %v1163_v5, %v1167_v6  ;;  %v4365_v9 = vcombine.low %v1163_v5, %v1167_v6 }
 0x2bf   :  { %2588 = vmatprep.subr.bf16.mxu0 %v4366_v8 }
 0x2c0   :  { %2552 = vmatpush1.bf16.msra.mxu1 %v4253_v11  ;;  %2589 = vmatpush1.bf16.msra.mxu0 %v4365_v9  ;;  %v1171_v11 = vld [vmem:[%s6683_s6 + $0x540] sm:$0xff] }
 0x2c1   :  { %2553 = vmatprep.subr.bf16.mxu1 %v4262_v14  ;;  %v4374_v13 = vcombine.high %v1171_v11, %v1175_v12  ;;  %v4373_v14 = vcombine.low %v1171_v11, %v1175_v12 }
 0x2c3   :  { %2590 = vmatprep.subr.bf16.mxu0 %v4374_v13 }
 0x2c4   :  { %2554 = vmatpush1.bf16.msra.mxu1 %v4261_v7  ;;  %2591 = vmatpush1.bf16.msra.mxu0 %v4373_v14  ;;  %v1179_v7 = vld [vmem:[%s6683_s6 + $0x580] sm:$0xff] }
 0x2c5   :  { %2555 = vmatprep.subr.bf16.mxu1 %v4270_v16  ;;  %v4382_v15 = vcombine.high %v1179_v7, %v1183_v10  ;;  %v4381_v16 = vcombine.low %v1179_v7, %v1183_v10 }
 0x2c7   :  { %2592 = vmatprep.subr.bf16.mxu0 %v4382_v15 }
 0x2c8   :  { %2556 = vmatpush1.bf16.msra.mxu1 %v4269_v17  ;;  %2593 = vmatpush1.bf16.msra.mxu0 %v4381_v16  ;;  %v1187_v17 = vld [vmem:[%s6683_s6 + $0x5c0] sm:$0xff] }
 0x2c9   :  { %2557 = vmatprep.subr.bf16.mxu1 %v4278_v20  ;;  %v4390_v19 = vcombine.high %v1187_v17, %v1191_v18  ;;  %v4389_v20 = vcombine.low %v1187_v17, %v1191_v18 }
 0x2cb   :  { %2594 = vmatprep.subr.bf16.mxu0 %v4390_v19 }
 0x2cc   :  { %2558 = vmatpush1.bf16.msra.mxu1 %v4277_v21  ;;  %2595 = vmatpush1.bf16.msra.mxu0 %v4389_v20  ;;  %v1195_v21 = vld [vmem:[%s6683_s6 + $0x600] sm:$0xff] }
 0x2cd   :  { %2559 = vmatprep.subr.bf16.mxu1 %v4286_v25  ;;  %v4398_v24 = vcombine.high %v1195_v21, %v1199_v22  ;;  %v4397_v25 = vcombine.low %v1195_v21, %v1199_v22 }
 0x2cf   :  { %2596 = vmatprep.subr.bf16.mxu0 %v4398_v24 }
 0x2d0   :  { %2560 = vmatpush1.bf16.msra.mxu1 %v4285_v26  ;;  %2597 = vmatpush1.bf16.msra.mxu0 %v4397_v25  ;;  %v1203_v26 = vld [vmem:[%s6683_s6 + $0x640] sm:$0xff] }
 0x2d1   :  { %2561 = vmatprep.subr.bf16.mxu1 %v4294_v29  ;;  %v4406_v28 = vcombine.high %v1203_v26, %v1207_v27  ;;  %v4405_v29 = vcombine.low %v1203_v26, %v1207_v27 }
 0x2d3   :  { %2598 = vmatprep.subr.bf16.mxu0 %v4406_v28 }
 0x2d4   :  { %2562 = vmatpush1.bf16.msra.mxu1 %v4293_v30  ;;  %2599 = vmatpush1.bf16.msra.mxu0 %v4405_v29  ;;  %v1211_v30 = vld [vmem:[%s6683_s6 + $0x680] sm:$0xff] }
 0x2d5   :  { %2563 = vmatprep.subr.bf16.mxu1 %v4302_v33  ;;  %v4414_v32 = vcombine.high %v1211_v30, %v1215_v31  ;;  %v4413_v33 = vcombine.low %v1211_v30, %v1215_v31 }
 0x2d7   :  { %2600 = vmatprep.subr.bf16.mxu0 %v4414_v32 }
 0x2d8   :  { %2564 = vmatpush1.bf16.msra.mxu1 %v4301_v34  ;;  %2601 = vmatpush1.bf16.msra.mxu0 %v4413_v33  ;;  %v1219_v34 = vld [vmem:[%s6683_s6 + $0x6c0] sm:$0xff] }
 0x2d9   :  { %2565 = vmatprep.subr.bf16.mxu1 %v4310_v37  ;;  %v4422_v36 = vcombine.high %v1219_v34, %v1223_v35  ;;  %v4421_v37 = vcombine.low %v1219_v34, %v1223_v35 }
 0x2db   :  { %2602 = vmatprep.subr.bf16.mxu0 %v4422_v36 }
 0x2dc   :  { %2566 = vmatpush1.bf16.msra.mxu1 %v4309_v38  ;;  %2603 = vmatpush1.bf16.msra.mxu0 %v4421_v37  ;;  %v1227_v38 = vld [vmem:[%s6683_s6 + $0x700] sm:$0xff] }
 0x2dd   :  { %2567 = vmatprep.subr.bf16.mxu1 %v4318_v41  ;;  %v4430_v40 = vcombine.high %v1227_v38, %v1231_v39  ;;  %v4429_v41 = vcombine.low %v1227_v38, %v1231_v39 }
 0x2df   :  { %2604 = vmatprep.subr.bf16.mxu0 %v4430_v40 }
 0x2e0   :  { %2568 = vmatpush1.bf16.msra.mxu1 %v4317_v42  ;;  %2605 = vmatpush1.bf16.msra.mxu0 %v4429_v41  ;;  %v1235_v42 = vld [vmem:[%s6683_s6 + $0x740] sm:$0xff] }
 0x2e1   :  { %2569 = vmatprep.subr.bf16.mxu1 %v4326_v47  ;;  %v4438_v44 = vcombine.high %v1235_v42, %v1239_v43  ;;  %v4437_v45 = vcombine.low %v1235_v42, %v1239_v43  ;;  %v1247_v47 = vld [vmem:[%s6683_s6 + $0x7a0] sm:$0xff]  ;;  %v5551_v43 = vsub.s32 2, %v5214_v48 }
 0x2e3   :  { %2606 = vmatprep.subr.bf16.mxu0 %v4438_v44 }
 0x2e4   :  { %2570 = vmatpush1.bf16.msra.mxu1 %v4325_v46  ;;  %2607 = vmatpush1.bf16.msra.mxu0 %v4437_v45  ;;  %v1243_v46 = vld [vmem:[%s6683_s6 + $0x780] sm:$0xff] }
 0x2e5   :  { %2621 = vmatprep.subr.bf16.mxu1 %v4208_v23  ;;  %v4446_v51 = vcombine.high %v1243_v46, %v1247_v47  ;;  %v4445_v52 = vcombine.low %v1243_v46, %v1247_v47  ;;  %v1255_v23 = vld [vmem:[%s6683_s6 + $0x7e0] sm:$0xff] }
 0x2e6   :  { %v4453_v57 = vcombine.low %v1251_v53, %v1255_v23  ;;  %v4454_v58 = vcombine.high %v1251_v53, %v1255_v23 }
 0x2e7   :  { %2608 = vmatprep.subr.bf16.mxu0 %v4446_v51 }
 0x2e8   :  { %2609 = vmatpush1.bf16.msra.mxu0 %v4445_v52  ;;  %v5556_v52 = vsub.s32 3, %v5214_v48 }
 0x2e9   :  { %2610 = vmatprep.subr.bf16.mxu0 %v4454_v58 }
 0x2ec   :  { %2611 = vmatpush1.bf16.msra.mxu0 %v4453_v57 }
 0x2ed   :  { %2703 = vmatprep.subr.bf16.mxu0 %v4210_v61 }
 0x33a   :  { %v803_v63 = vpop.f32.mrb[4].mxu1 }
 0x33b   :  { %v851_v0 = vrot.slane %v803_v63, 4  ;;  %v879_v1 = vmul.f32 %v803_v63, %v803_v63  ;;  %v805_v2 = vpop.f32.mrb[5].mxu1 }
 0x33c   :  { %v857_v3 = vrot.slane %v805_v2, 4  ;;  %v880_v4 = vmul.f32 %v805_v2, %v805_v2  ;;  %v807_v5 = vpop.f32.mrb[6].mxu1 }
 0x33d   :  { %v852_v6 = vadd.f32 %v851_v0, %v803_v63  ;;  %v883_v8 = vrot.slane %v879_v1, 4  ;;  %v808_v9 = vpop.f32.mrb[7].mxu1 }
 0x33e   :  { %v858_v11 = vadd.f32 %v857_v3, %v805_v2  ;;  %v889_v12 = vrot.slane %v880_v4, 4 }
 0x33f   :  { %v853_v13 = vrot.slane %v852_v6, 2  ;;  %v884_v14 = vadd.f32 %v883_v8, %v879_v1 }
 0x340   :  { %v859_v7 = vrot.slane %v858_v11, 2  ;;  %v890_v10 = vadd.f32 %v889_v12, %v880_v4  ;;  %v1012_v12 = vld [vmem:[%s6683_s6 + $0x48] sm:$0xff] }
 0x341   :  { %v854_v15 = vadd.f32 %v853_v13, %v852_v6  ;;  %v885_v16 = vrot.slane %v884_v14, 2  ;;  %v1020_v13 = vld [vmem:[%s6683_s6 + $0x88] sm:$0xff] }
 0x342   :  { %v860_v17 = vadd.f32 %v859_v7, %v858_v11  ;;  %v891_v18 = vrot.slane %v890_v10, 2 }
 0x343   :  { %v855_v19 = vrot.slane %v854_v15, 1  ;;  %v886_v20 = vadd.f32 %v885_v16, %v884_v14  ;;  %v1024_v14 = vld [vmem:[%s6683_s6 + $0xa8] sm:$0xff] }
 0x344   :  { %v861_v21 = vrot.slane %v860_v17, 1  ;;  %v892_v22 = vadd.f32 %v891_v18, %v890_v10  ;;  %v4224_v10 = vcombine.high %v1020_v13, %v1024_v14  ;;  %v1032_v16 = vld [vmem:[%s6683_s6 + $0xe8] sm:$0xff] }
 0x345   :  { %v856_v24 = vadd.f32 %v855_v19, %v854_v15  ;;  %v887_v25 = vrot.slane %v886_v20, 1  ;;  %v1028_v15 = vld [vmem:[%s6683_s6 + $0xc8] sm:$0xff]  ;;  %v4240_v19 = vcombine.high %v1036_v54, %v1040_v55 }
 0x346   :  { %v862_v26 = vadd.f32 %v861_v21, %v860_v17  ;;  %v893_v27 = vrot.slane %v892_v22, 1  ;;  %v4223_v17 = vcombine.low %v1020_v13, %v1024_v14  ;;  %v4232_v18 = vcombine.high %v1028_v15, %v1032_v16  ;;  %v1048_v21 = vld [vmem:[%s6683_s6 + $0x168] sm:$0xff] }
 0x347   :  { %v875_v28 = vmul.f32 0.125, %v856_v24  ;;  %v888_v29 = vadd.f32 %v887_v25, %v886_v20  ;;  %v1044_v20 = vld [vmem:[%s6683_s6 + $0x148] sm:$0xff] }
 0x348   :  { %v876_v30 = vmul.f32 0.125, %v862_v26  ;;  %v894_v31 = vadd.f32 %v893_v27, %v892_v22  ;;  %v4239_v27 = vcombine.low %v1036_v54, %v1040_v55 }
 0x349   :  { %v907_v32 = vmul.f32 0.125, %v888_v29  ;;  %v911_v33 = vmul.f32 %v875_v28, %v875_v28 }
 0x34a   :  { %v908_v34 = vmul.f32 0.125, %v894_v31  ;;  %v912_v35 = vmul.f32 %v876_v30, %v876_v30  ;;  %v4248_v31 = vcombine.high %v1044_v20, %v1048_v21 }
 0x34b   :  { %v915_v36 = vsub.f32 %v907_v32, %v911_v33 }
 0x34c   :  { %v916_v37 = vsub.f32 %v908_v34, %v912_v35  ;;  %v1052_v35 = vld [vmem:[%s6683_s6 + $0x188] sm:$0xff] }
 0x34d   :  { %v919_v38 = vadd.f32 0.8, %v915_v36  ;;  %v1056_v36 = vld [vmem:[%s6683_s6 + $0x1a8] sm:$0xff] }
 0x34e   :  { %v920_v39 = vadd.f32 0.8, %v916_v37 }
 0x34f   :  { %4963 = vrsqrt.f32 %v919_v38 }
 0x350   :  { %4965 = vrsqrt.f32 %v920_v39 }
 0x359   :  { %v4964_v40 = vpop.eup %4963 }
 0x35a   :  { %v4966_v41 = vpop.eup %4965  ;;  %v927_v42 = vmul.f32 %v4964_v40, %v5219_v49 }
 0x35b   :  { %v928_v44 = vmul.f32 %v4966_v41, %v5224_v50  ;;  %v4247_v41 = vcombine.low %v1044_v20, %v1048_v21 }
 0x35c   :  { %v931_v45 = vmul.f32 %v927_v42, %v875_v28  ;;  %v954_v51 = vrot.slane %v927_v42, %v5551_v43 }
 0x35d   :  { %v932_v46 = vmul.f32 %v928_v44, %v876_v30  ;;  %v958_v23 = vrot.slane %v928_v44, %v5551_v43 }
 0x35e   :  { %v939_v47 = vrot.slane %v931_v45, 7  ;;  %v967_v61 = vmul.f32 %v954_v51, %v803_v63  ;;  %v4256_v45 = vcombine.high %v1052_v35, %v1056_v36  ;;  %v1060_v51 = vld [vmem:[%s6683_s6 + $0x1c8] sm:$0xff] }
 0x35f   :  { %v940_v53 = vrot.slane %v932_v46, 7  ;;  %v968_v1 = vmul.f32 %v958_v23, %v805_v2 }
 0x360   :  { %v947_v57 = vsub.f32 %v5219_v49, %v939_v47  ;;  %v1016_v49 = vld [vmem:[%s6683_s6 + $0x68] sm:$0xff] }
 0x361   :  { %v948_v58 = vsub.f32 %v5224_v50, %v940_v53  ;;  %v4216_v2 = vcombine.high %v1012_v12, %v1016_v49  ;;  %v4215_v7 = vcombine.low %v1012_v12, %v1016_v49  ;;  %v1064_v53 = vld [vmem:[%s6683_s6 + $0x1e8] sm:$0xff] }
 0x362   :  { %v974_v0 = vrot.slane %v947_v57, %v5556_v52  ;;  %v4263_v13 = vcombine.low %v1060_v51, %v1064_v53 }
 0x363   :  { %v978_v3 = vrot.slane %v948_v58, %v5556_v52 }
 0x364   :  { %v987_v4 = vadd.f32 %v974_v0, %v967_v61  ;;  %v4255_v0 = vcombine.low %v1052_v35, %v1056_v36  ;;  %v1100_v35 = vld [vmem:[%s6683_s6 + $0x308] sm:$0xff] }
 0x365   :  { %v988_v5 = vadd.f32 %v978_v3, %v968_v1  ;;  %v1104_v36 = vld [vmem:[%s6683_s6 + $0x328] sm:$0xff] }
 0x366   :  { %v991_v6 = vmul.f32 0.2, %v987_v4 }
 0x367   :  { %v992_v8 = vmul.f32 0.2, %v988_v5 }
 0x368   :  { %v995_v9 = vmax.f32 %v987_v4, %v991_v6  ;;  %v4264_v4 = vcombine.high %v1060_v51, %v1064_v53  ;;  %v4303_v51 = vcombine.low %v1100_v35, %v1104_v36 }
 0x369   :  { %v996_v11 = vmax.f32 %v988_v5, %v992_v8  ;;  %v1068_v8 = vld [vmem:[%s6683_s6 + $0x208] sm:$0xff] }
 0x36a   :  { %v5571_v63 = vpack.c.bf16 %v995_v9, %v995_v9  ;;  %v1072_v9 = vld [vmem:[%s6683_s6 + $0x228] sm:$0xff] }
 0x36b   :  { %v5569_v50 = vpack.c.bf16 %v996_v11, %v996_v11 }
 0x36d   :  { %2571 = vmatprep.mubr.bf16.mxu1 %v5569_v50 }
 0x36e   :  { %2572 = vmatmul.mubr.bf16.vlgmr.msra.gmra.mrb[12].mxu1 %v5571_v63 }
 0x36f   :  { %2622 = vmatpush1.bf16.msra.mxu1 %v4207_v56  ;;  %2653 = vmatprep.mubr.bf16.mxu1 %v5569_v50  ;;  %v4231_v56 = vcombine.low %v1028_v15, %v1032_v16 }
 0x370   :  { %2623 = vmatprep.subr.bf16.mxu1 %v4216_v2 }
 0x373   :  { %2624 = vmatpush1.bf16.msra.mxu1 %v4215_v7 }
 0x374   :  { %2625 = vmatprep.subr.bf16.mxu1 %v4224_v10  ;;  %v4272_v10 = vcombine.high %v1068_v8, %v1072_v9 }
 0x377   :  { %2626 = vmatpush1.bf16.msra.mxu1 %v4223_v17  ;;  %v1076_v17 = vld [vmem:[%s6683_s6 + $0x248] sm:$0xff] }
 0x378   :  { %2627 = vmatprep.subr.bf16.mxu1 %v4232_v18  ;;  %v1080_v18 = vld [vmem:[%s6683_s6 + $0x268] sm:$0xff] }
 0x379   :  { %v4280_v21 = vcombine.high %v1076_v17, %v1080_v18 }
 0x37a   :  { %v5603_v22 = vpop.f32.mrb[8].mxu1 }
 0x37b   :  { %v863_v24 = vrot.slane %v5603_v22, 4  ;;  %v881_v25 = vmul.f32 %v5603_v22, %v5603_v22  ;;  %v5608_v26 = vpop.f32.mrb[9].mxu1  ;;  %2628 = vmatpush1.bf16.msra.mxu1 %v4231_v56 }
 0x37c   :  { %v869_v28 = vrot.slane %v5608_v26, 4  ;;  %v882_v29 = vmul.f32 %v5608_v26, %v5608_v26  ;;  %v848_v30 = vpop.f32.mrb[10].mxu1  ;;  %2629 = vmatprep.subr.bf16.mxu1 %v4240_v19  ;;  %v4271_v19 = vcombine.low %v1068_v8, %v1072_v9 }
 0x37d   :  { %v864_v32 = vadd.f32 %v863_v24, %v5603_v22  ;;  %v895_v33 = vrot.slane %v881_v25, 4  ;;  %v849_v34 = vpop.f32.mrb[11].mxu1 }
 0x37e   :  { %v870_v37 = vadd.f32 %v869_v28, %v5608_v26  ;;  %v901_v38 = vrot.slane %v882_v29, 4 }
 0x37f   :  { %v865_v39 = vrot.slane %v864_v32, 2  ;;  %v896_v40 = vadd.f32 %v895_v33, %v881_v25  ;;  %2630 = vmatpush1.bf16.msra.mxu1 %v4239_v27  ;;  %v1084_v25 = vld [vmem:[%s6683_s6 + $0x288] sm:$0xff] }
 0x380   :  { %v871_v42 = vrot.slane %v870_v37, 2  ;;  %v902_v44 = vadd.f32 %v901_v38, %v882_v29  ;;  %2631 = vmatprep.subr.bf16.mxu1 %v4248_v31  ;;  %v1088_v27 = vld [vmem:[%s6683_s6 + $0x2a8] sm:$0xff]  ;;  %v4279_v29 = vcombine.low %v1076_v17, %v1080_v18 }
 0x381   :  { %v866_v46 = vadd.f32 %v865_v39, %v864_v32  ;;  %v897_v47 = vrot.slane %v896_v40, 2  ;;  %v4288_v30 = vcombine.high %v1084_v25, %v1088_v27  ;;  %v1092_v31 = vld [vmem:[%s6683_s6 + $0x2c8] sm:$0xff]  ;;  %v4287_v33 = vcombine.low %v1084_v25, %v1088_v27  ;;  %v36_v39 = vld [vmem:[%s6682_s8 + $0x18] sm:$0xff] }
 0x382   :  { %v872_v23 = vadd.f32 %v871_v42, %v870_v37  ;;  %v903_v57 = vrot.slane %v902_v44, 2  ;;  %v1096_v32 = vld [vmem:[%s6683_s6 + $0x2e8] sm:$0xff]  ;;  %v35_v37 = vld [vmem:[%s6682_s8 + $0x10] sm:$0xff] }
 0x383   :  { %v867_v58 = vrot.slane %v866_v46, 1  ;;  %v898_v61 = vadd.f32 %v897_v47, %v896_v40  ;;  %2632 = vmatpush1.bf16.msra.mxu1 %v4247_v41  ;;  %v4296_v34 = vcombine.high %v1092_v31, %v1096_v32  ;;  %v4295_v38 = vcombine.low %v1092_v31, %v1096_v32  ;;  %v1108_v42 = vld [vmem:[%s6683_s6 + $0x348] sm:$0xff]  ;;  %v1025_v31 = vld [vmem:[%s6683_s6 + $0xb0] sm:$0xff] }
 0x384   :  { %v873_v1 = vrot.slane %v872_v23, 1  ;;  %v904_v3 = vadd.f32 %v903_v57, %v902_v44  ;;  %2633 = vmatprep.subr.bf16.mxu1 %v4256_v45  ;;  %v4304_v40 = vcombine.high %v1100_v35, %v1104_v36  ;;  %v1112_v44 = vld [vmem:[%s6683_s6 + $0x368] sm:$0xff] }
 0x385   :  { %v868_v5 = vadd.f32 %v867_v58, %v866_v46  ;;  %v899_v6 = vrot.slane %v898_v61, 1  ;;  %v1116_v58 = vld [vmem:[%s6683_s6 + $0x388] sm:$0xff] }
 0x386   :  { %v874_v11 = vadd.f32 %v873_v1, %v872_v23  ;;  %v905_v12 = vrot.slane %v904_v3, 1  ;;  %v4312_v23 = vcombine.high %v1108_v42, %v1112_v44  ;;  %v1148_v32 = vld [vmem:[%s6683_s6 + $0x488] sm:$0xff] }
 0x387   :  { %v877_v49 = vmul.f32 0.125, %v868_v5  ;;  %v900_v2 = vadd.f32 %v899_v6, %v898_v61  ;;  %2634 = vmatpush1.bf16.msra.mxu1 %v4255_v0  ;;  %v1120_v61 = vld [vmem:[%s6683_s6 + $0x3a8] sm:$0xff]  ;;  %v4311_v5 = vcombine.low %v1108_v42, %v1112_v44  ;;  %v1037_v44 = vld [vmem:[%s6683_s6 + $0x110] sm:$0xff] }
 0x388   :  { %v878_v14 = vmul.f32 0.125, %v874_v11  ;;  %v906_v7 = vadd.f32 %v905_v12, %v904_v3  ;;  %2635 = vmatprep.subr.bf16.mxu1 %v4264_v4  ;;  %v4320_v8 = vcombine.high %v1116_v58, %v1120_v61  ;;  %v1124_v11 = vld [vmem:[%s6683_s6 + $0x3c8] sm:$0xff] }
 0x389   :  { %v909_v15 = vmul.f32 0.125, %v900_v2  ;;  %v913_v16 = vmul.f32 %v877_v49, %v877_v49  ;;  %v1128_v12 = vld [vmem:[%s6683_s6 + $0x3e8] sm:$0xff] }
 0x38a   :  { %v910_v54 = vmul.f32 0.125, %v906_v7  ;;  %v914_v55 = vmul.f32 %v878_v14, %v878_v14 }
 0x38b   :  { %v917_v56 = vsub.f32 %v909_v15, %v913_v16  ;;  %2636 = vmatpush1.bf16.msra.mxu1 %v4263_v13  ;;  %v1132_v16 = vld [vmem:[%s6683_s6 + $0x408] sm:$0xff] }
 0x38c   :  { %v918_v20 = vsub.f32 %v910_v54, %v914_v55  ;;  %2637 = vmatprep.subr.bf16.mxu1 %v4272_v10  ;;  %v4328_v10 = vcombine.high %v1124_v11, %v1128_v12 }
 0x38d   :  { %v921_v24 = vadd.f32 0.8, %v917_v56  ;;  %v1013_v56 = vld [vmem:[%s6683_s6 + $0x50] sm:$0xff] }
 0x38e   :  { %v922_v28 = vadd.f32 0.8, %v918_v20  ;;  %v1140_v20 = vld [vmem:[%s6683_s6 + $0x448] sm:$0xff] }
 0x38f   :  { %4967 = vrsqrt.f32 %v921_v24  ;;  %2638 = vmatpush1.bf16.msra.mxu1 %v4271_v19  ;;  %v1017_v19 = vld [vmem:[%s6683_s6 + $0x70] sm:$0xff] }
 0x390   :  { %4969 = vrsqrt.f32 %v922_v28  ;;  %2639 = vmatprep.subr.bf16.mxu1 %v4280_v21  ;;  %v1144_v21 = vld [vmem:[%s6683_s6 + $0x468] sm:$0xff]  ;;  %v1021_v28 = vld [vmem:[%s6683_s6 + $0x90] sm:$0xff] }
 0x391   :  { %v4343_v35 = vcombine.low %v1140_v20, %v1144_v21  ;;  %v4226_v36 = vcombine.high %v1021_v28, %v1025_v31 }
 0x393   :  { %2640 = vmatpush1.bf16.msra.mxu1 %v4279_v29  ;;  %v4218_v29 = vcombine.high %v1013_v56, %v1017_v19 }
 0x394   :  { %2641 = vmatprep.subr.bf16.mxu1 %v4288_v30  ;;  %v4344_v30 = vcombine.high %v1140_v20, %v1144_v21 }
 0x397   :  { %2642 = vmatpush1.bf16.msra.mxu1 %v4287_v33  ;;  %v1152_v33 = vld [vmem:[%s6683_s6 + $0x4a8] sm:$0xff] }
 0x398   :  { %2643 = vmatprep.subr.bf16.mxu1 %v4296_v34  ;;  %v4217_v34 = vcombine.low %v1013_v56, %v1017_v19 }
 0x399   :  { %v4968_v41 = vpop.eup %4967 }
 0x39a   :  { %v4970_v45 = vpop.eup %4969  ;;  %v929_v46 = vmul.f32 %v4968_v41, %v35_v37 }
 0x39b   :  { %v930_v47 = vmul.f32 %v4970_v45, %v36_v39  ;;  %2644 = vmatpush1.bf16.msra.mxu1 %v4295_v38  ;;  %v1029_v38 = vld [vmem:[%s6683_s6 + $0xd0] sm:$0xff] }
 0x39c   :  { %v933_v53 = vmul.f32 %v929_v46, %v877_v49  ;;  %2645 = vmatprep.subr.bf16.mxu1 %v4304_v40  ;;  %v962_v1 = vrot.slane %v929_v46, %v5551_v43  ;;  %v4351_v40 = vcombine.low %v1148_v32, %v1152_v33  ;;  %v4234_v41 = vcombine.high %v1029_v38, %v1033_v59  ;;  %v1041_v45 = vld [vmem:[%s6683_s6 + $0x130] sm:$0xff]  ;;  %v1164_v46 = vld [vmem:[%s6683_s6 + $0x508] sm:$0xff] }
 0x39d   :  { %v934_v57 = vmul.f32 %v930_v47, %v878_v14  ;;  %v966_v4 = vrot.slane %v930_v47, %v5551_v43  ;;  %v4319_v14 = vcombine.low %v1116_v58, %v1120_v61  ;;  %v1168_v47 = vld [vmem:[%s6683_s6 + $0x528] sm:$0xff]  ;;  %v1045_v58 = vld [vmem:[%s6683_s6 + $0x150] sm:$0xff] }
 0x39e   :  { %v941_v0 = vrot.slane %v933_v53, 7  ;;  %v969_v49 = vmul.f32 %v962_v1, %v5603_v22  ;;  %v1136_v22 = vld [vmem:[%s6683_s6 + $0x428] sm:$0xff]  ;;  %v1049_v61 = vld [vmem:[%s6683_s6 + $0x170] sm:$0xff] }
 0x39f   :  { %v942_v3 = vrot.slane %v934_v57, 7  ;;  %2646 = vmatpush1.bf16.msra.mxu1 %v4303_v51  ;;  %v970_v43 = vmul.f32 %v966_v4, %v5608_v26  ;;  %v4327_v26 = vcombine.low %v1124_v11, %v1128_v12  ;;  %v4336_v54 = vcombine.high %v1132_v16, %v1136_v22  ;;  %v1176_v1 = vld [vmem:[%s6683_s6 + $0x568] sm:$0xff] }
 0x3a0   :  { %v949_v6 = vsub.f32 %v35_v37, %v941_v0  ;;  %2647 = vmatprep.subr.bf16.mxu1 %v4312_v23  ;;  %v4335_v25 = vcombine.low %v1132_v16, %v1136_v22  ;;  %v4352_v37 = vcombine.high %v1148_v32, %v1152_v33  ;;  %v4233_v51 = vcombine.low %v1029_v38, %v1033_v59  ;;  %v1172_v0 = vld [vmem:[%s6683_s6 + $0x548] sm:$0xff] }
 0x3a1   :  { %v950_v9 = vsub.f32 %v36_v39, %v942_v3  ;;  %v4225_v39 = vcombine.low %v1021_v28, %v1025_v31  ;;  %v4242_v23 = vcombine.high %v1037_v44, %v1041_v45  ;;  %v4368_v57 = vcombine.high %v1164_v46, %v1168_v47  ;;  %v1180_v11 = vld [vmem:[%s6683_s6 + $0x588] sm:$0xff]  ;;  %v1081_v28 = vld [vmem:[%s6683_s6 + $0x270] sm:$0xff] }
 0x3a2   :  { %v982_v2 = vrot.slane %v949_v6, %v5556_v52  ;;  %v4241_v3 = vcombine.low %v1037_v44, %v1041_v45  ;;  %v4367_v4 = vcombine.low %v1164_v46, %v1168_v47  ;;  %v4376_v6 = vcombine.high %v1172_v0, %v1176_v1  ;;  %v1184_v12 = vld [vmem:[%s6683_s6 + $0x5a8] sm:$0xff] }
 0x3a3   :  { %v986_v13 = vrot.slane %v950_v9, %v5556_v52  ;;  %2648 = vmatpush1.bf16.msra.mxu1 %v4311_v5  ;;  %v4250_v5 = vcombine.high %v1045_v58, %v1049_v61  ;;  %v1057_v9 = vld [vmem:[%s6683_s6 + $0x1b0] sm:$0xff]  ;;  %v4383_v22 = vcombine.low %v1180_v11, %v1184_v12  ;;  %v1216_v38 = vld [vmem:[%s6683_s6 + $0x6a8] sm:$0xff] }
 0x3a4   :  { %v989_v7 = vadd.f32 %v982_v2, %v969_v49  ;;  %2649 = vmatprep.subr.bf16.mxu1 %v4320_v8  ;;  %v1053_v8 = vld [vmem:[%s6683_s6 + $0x190] sm:$0xff]  ;;  %v4249_v49 = vcombine.low %v1045_v58, %v1049_v61  ;;  %v4375_v2 = vcombine.low %v1172_v0, %v1176_v1  ;;  %v1224_v44 = vld [vmem:[%s6683_s6 + $0x6e8] sm:$0xff] }
 0x3a5   :  { %v990_v15 = vadd.f32 %v986_v13, %v970_v43  ;;  %v4258_v43 = vcombine.high %v1053_v8, %v1057_v9  ;;  %v4384_v13 = vcombine.high %v1180_v11, %v1184_v12  ;;  %v4257_v16 = vcombine.low %v1053_v8, %v1057_v9  ;;  %v1232_v58 = vld [vmem:[%s6683_s6 + $0x728] sm:$0xff] }
 0x3a6   :  { %v993_v17 = vmul.f32 0.2, %v989_v7  ;;  %v1240_v8 = vld [vmem:[%s6683_s6 + $0x768] sm:$0xff] }
 0x3a7   :  { %v994_v18 = vmul.f32 0.2, %v990_v15  ;;  %2650 = vmatpush1.bf16.msra.mxu1 %v4319_v14  ;;  %v1061_v14 = vld [vmem:[%s6683_s6 + $0x1d0] sm:$0xff] }
 0x3a8   :  { %2651 = vmatprep.subr.bf16.mxu1 %v4328_v10  ;;  %v997_v52 = vmax.f32 %v989_v7, %v993_v17  ;;  %v1065_v7 = vld [vmem:[%s6683_s6 + $0x1f0] sm:$0xff]  ;;  %v1188_v10 = vld [vmem:[%s6683_s6 + $0x5c8] sm:$0xff] }
 0x3a9   :  { %v998_v55 = vmax.f32 %v990_v15, %v994_v18  ;;  %v1192_v15 = vld [vmem:[%s6683_s6 + $0x5e8] sm:$0xff]  ;;  %v4266_v17 = vcombine.high %v1061_v14, %v1065_v7  ;;  %v4265_v56 = vcombine.low %v1061_v14, %v1065_v7 }
 0x3aa   :  { %v5707_v27 = vpack.c.bf16 %v997_v52, %v997_v52  ;;  %v4392_v18 = vcombine.high %v1188_v10, %v1192_v15  ;;  %v1073_v52 = vld [vmem:[%s6683_s6 + $0x230] sm:$0xff]  ;;  %v4391_v19 = vcombine.low %v1188_v10, %v1192_v15  ;;  %v1248_v14 = vld [vmem:[%s6683_s6 + $0x7a8] sm:$0xff] }
 0x3ab   :  { %2652 = vmatpush1.bf16.msra.mxu1 %v4327_v26  ;;  %v5705_v24 = vpack.c.bf16 %v998_v55, %v998_v55  ;;  %v1069_v26 = vld [vmem:[%s6683_s6 + $0x210] sm:$0xff]  ;;  %v1200_v55 = vld [vmem:[%s6683_s6 + $0x628] sm:$0xff] }
 0x3ac   :  { %2662 = vmatprep.subr.bf16.mxu1 %v4336_v54  ;;  %v1196_v54 = vld [vmem:[%s6683_s6 + $0x608] sm:$0xff]  ;;  %v4274_v20 = vcombine.high %v1069_v26, %v1073_v52  ;;  %v4273_v31 = vcombine.low %v1069_v26, %v1073_v52 }
 0x3ad   :  { %2612 = vmatprep.mubr.bf16.mxu0 %v5705_v24  ;;  %v4400_v21 = vcombine.high %v1196_v54, %v1200_v55  ;;  %v4399_v32 = vcombine.low %v1196_v54, %v1200_v55  ;;  %v1256_v26 = vld [vmem:[%s6683_s6 + $0x7e8] sm:$0xff] }
 0x3ae   :  { %2613 = vmatmul.mubr.bf16.vlgmr.msra.gmra.mrb[4].mxu0 %v5707_v27  ;;  %2654 = vmatmul.mubr.bf16.vlgmr.msra.gmra.mrb[16].mxu1 %v5571_v63 }
 0x3af   :  { %2704 = vmatpush1.bf16.msra.mxu0 %v4209_v62  ;;  %2663 = vmatpush1.bf16.msra.mxu1 %v4335_v25  ;;  %v1160_v62 = vld [vmem:[%s6683_s6 + $0x4e8] sm:$0xff]  ;;  %v1077_v25 = vld [vmem:[%s6683_s6 + $0x250] sm:$0xff] }
 0x3b0   :  { %2694 = vmatprep.mubr.bf16.mxu1 %v5705_v24  ;;  %2735 = vmatprep.mubr.bf16.mxu0 %v5569_v50  ;;  %v4360_v42 = vcombine.high %v1156_v60, %v1160_v62  ;;  %v4359_v53 = vcombine.low %v1156_v60, %v1160_v62  ;;  %v4282_v33 = vcombine.high %v1077_v25, %v1081_v28 }
 0x3b1   :  { %2705 = vmatprep.subr.bf16.mxu0 %v4218_v29  ;;  %2664 = vmatprep.subr.bf16.mxu1 %v4344_v30  ;;  %v1204_v29 = vld [vmem:[%s6683_s6 + $0x648] sm:$0xff]  ;;  %v4281_v59 = vcombine.low %v1077_v25, %v1081_v28  ;;  %v1010_v25 = vld [vmem:[%s6683_s6 + $0x38] sm:$0xff] }
 0x3b2   :  { %v1208_v30 = vld [vmem:[%s6683_s6 + $0x668] sm:$0xff] }
 0x3b3   :  { %2706 = vmatpush1.bf16.msra.mxu0 %v4217_v34  ;;  %2665 = vmatpush1.bf16.msra.mxu1 %v4343_v35  ;;  %v4408_v34 = vcombine.high %v1204_v29, %v1208_v30  ;;  %v1085_v35 = vld [vmem:[%s6683_s6 + $0x290] sm:$0xff]  ;;  %v4407_v60 = vcombine.low %v1204_v29, %v1208_v30 }
 0x3b4   :  { %2707 = vmatprep.subr.bf16.mxu0 %v4226_v36  ;;  %2666 = vmatprep.subr.bf16.mxu1 %v4352_v37  ;;  %v1089_v36 = vld [vmem:[%s6683_s6 + $0x2b0] sm:$0xff]  ;;  %v1212_v37 = vld [vmem:[%s6683_s6 + $0x688] sm:$0xff] }
 0x3b5   :  { %v4290_v62 = vcombine.high %v1085_v35, %v1089_v36  ;;  %v4289_v45 = vcombine.low %v1085_v35, %v1089_v36  ;;  %v4415_v46 = vcombine.low %v1212_v37, %v1216_v38  ;;  %v1018_v35 = vld [vmem:[%s6683_s6 + $0x78] sm:$0xff] }
 0x3b7   :  { %2708 = vmatpush1.bf16.msra.mxu0 %v4225_v39  ;;  %2667 = vmatpush1.bf16.msra.mxu1 %v4351_v40  ;;  %v4416_v39 = vcombine.high %v1212_v37, %v1216_v38  ;;  %v1093_v40 = vld [vmem:[%s6683_s6 + $0x2d0] sm:$0xff] }
 0x3b8   :  { %2709 = vmatprep.subr.bf16.mxu0 %v4234_v41  ;;  %2668 = vmatprep.subr.bf16.mxu1 %v4360_v42  ;;  %v1097_v41 = vld [vmem:[%s6683_s6 + $0x2f0] sm:$0xff]  ;;  %v1220_v42 = vld [vmem:[%s6683_s6 + $0x6c8] sm:$0xff] }
 0x3b9   :  { %v4298_v47 = vcombine.high %v1093_v40, %v1097_v41  ;;  %v4297_v61 = vcombine.low %v1093_v40, %v1097_v41  ;;  %v4423_v0 = vcombine.low %v1220_v42, %v1224_v44  ;;  %v1026_v40 = vld [vmem:[%s6683_s6 + $0xb8] sm:$0xff] }
 0x3bb   :  { %2710 = vmatpush1.bf16.msra.mxu0 %v4233_v51  ;;  %2669 = vmatpush1.bf16.msra.mxu1 %v4359_v53  ;;  %v4424_v51 = vcombine.high %v1220_v42, %v1224_v44  ;;  %v1101_v53 = vld [vmem:[%s6683_s6 + $0x310] sm:$0xff] }
 0x3bc   :  { %2711 = vmatprep.subr.bf16.mxu0 %v4242_v23  ;;  %2670 = vmatprep.subr.bf16.mxu1 %v4368_v57  ;;  %v1105_v23 = vld [vmem:[%s6683_s6 + $0x330] sm:$0xff]  ;;  %v1228_v57 = vld [vmem:[%s6683_s6 + $0x708] sm:$0xff] }
 0x3bd   :  { %v4306_v1 = vcombine.high %v1101_v53, %v1105_v23  ;;  %v4305_v9 = vcombine.low %v1101_v53, %v1105_v23  ;;  %v4431_v11 = vcombine.low %v1228_v57, %v1232_v58  ;;  %v1165_v23 = vld [vmem:[%s6683_s6 + $0x510] sm:$0xff] }
 0x3bf   :  { %2712 = vmatpush1.bf16.msra.mxu0 %v4241_v3  ;;  %2671 = vmatpush1.bf16.msra.mxu1 %v4367_v4  ;;  %v4432_v3 = vcombine.high %v1228_v57, %v1232_v58  ;;  %v1109_v4 = vld [vmem:[%s6683_s6 + $0x350] sm:$0xff] }
 0x3c0   :  { %2713 = vmatprep.subr.bf16.mxu0 %v4250_v5  ;;  %2672 = vmatprep.subr.bf16.mxu1 %v4376_v6  ;;  %v1113_v5 = vld [vmem:[%s6683_s6 + $0x370] sm:$0xff]  ;;  %v1236_v6 = vld [vmem:[%s6683_s6 + $0x748] sm:$0xff] }
 0x3c1   :  { %v4314_v12 = vcombine.high %v1109_v4, %v1113_v5  ;;  %v4313_v7 = vcombine.low %v1109_v4, %v1113_v5  ;;  %v4439_v10 = vcombine.low %v1236_v6, %v1240_v8  ;;  %v1169_v57 = vld [vmem:[%s6683_s6 + $0x530] sm:$0xff] }
 0x3c2   :  { %v1173_v5 = vld [vmem:[%s6683_s6 + $0x550] sm:$0xff] }
 0x3c3   :  { %2714 = vmatpush1.bf16.msra.mxu0 %v4249_v49  ;;  %2673 = vmatpush1.bf16.msra.mxu1 %v4375_v2  ;;  %v4440_v49 = vcombine.high %v1236_v6, %v1240_v8  ;;  %v1117_v2 = vld [vmem:[%s6683_s6 + $0x390] sm:$0xff] }
 0x3c4   :  { %2715 = vmatprep.subr.bf16.mxu0 %v4258_v43  ;;  %2674 = vmatprep.subr.bf16.mxu1 %v4384_v13  ;;  %v1121_v43 = vld [vmem:[%s6683_s6 + $0x3b0] sm:$0xff]  ;;  %v1244_v13 = vld [vmem:[%s6683_s6 + $0x788] sm:$0xff] }
 0x3c5   :  { %v4322_v15 = vcombine.high %v1117_v2, %v1121_v43  ;;  %v4321_v52 = vcombine.low %v1117_v2, %v1121_v43  ;;  %v4447_v54 = vcombine.low %v1244_v13, %v1248_v14  ;;  %v1177_v6 = vld [vmem:[%s6683_s6 + $0x570] sm:$0xff]  ;;  %v4369_v2 = vcombine.low %v1165_v23, %v1169_v57 }
 0x3c6   :  { %v1181_v43 = vld [vmem:[%s6683_s6 + $0x590] sm:$0xff] }
 0x3c7   :  { %2716 = vmatpush1.bf16.msra.mxu0 %v4257_v16  ;;  %2675 = vmatpush1.bf16.msra.mxu1 %v4383_v22  ;;  %v4448_v16 = vcombine.high %v1244_v13, %v1248_v14  ;;  %v1125_v22 = vld [vmem:[%s6683_s6 + $0x3d0] sm:$0xff] }
 0x3c8   :  { %2717 = vmatprep.subr.bf16.mxu0 %v4266_v17  ;;  %2676 = vmatprep.subr.bf16.mxu1 %v4392_v18  ;;  %v1129_v17 = vld [vmem:[%s6683_s6 + $0x3f0] sm:$0xff]  ;;  %v1252_v18 = vld [vmem:[%s6683_s6 + $0x7c8] sm:$0xff] }
 0x3c9   :  { %v4330_v55 = vcombine.high %v1125_v22, %v1129_v17  ;;  %v4329_v28 = vcombine.low %v1125_v22, %v1129_v17  ;;  %v4455_v29 = vcombine.low %v1252_v18, %v1256_v26  ;;  %v1185_v13 = vld [vmem:[%s6683_s6 + $0x5b0] sm:$0xff]  ;;  %v4377_v22 = vcombine.low %v1173_v5, %v1177_v6 }
 0x3ca   :  { %v1189_v17 = vld [vmem:[%s6683_s6 + $0x5d0] sm:$0xff] }
 0x3cb   :  { %2718 = vmatpush1.bf16.msra.mxu0 %v4265_v56  ;;  %2677 = vmatpush1.bf16.msra.mxu1 %v4391_v19  ;;  %v4456_v56 = vcombine.high %v1252_v18, %v1256_v26  ;;  %v1133_v19 = vld [vmem:[%s6683_s6 + $0x410] sm:$0xff] }
 0x3cc   :  { %2719 = vmatprep.subr.bf16.mxu0 %v4274_v20  ;;  %2678 = vmatprep.subr.bf16.mxu1 %v4400_v21  ;;  %v1137_v20 = vld [vmem:[%s6683_s6 + $0x430] sm:$0xff]  ;;  %v1006_v21 = vld [vmem:[%s6683_s6 + $0x18] sm:$0xff] }
 0x3cd   :  { %v4338_v30 = vcombine.high %v1133_v19, %v1137_v20  ;;  %v4337_v36 = vcombine.low %v1133_v19, %v1137_v20  ;;  %v4211_v37 = vcombine.low %v1006_v21, %v1010_v25  ;;  %v1193_v18 = vld [vmem:[%s6683_s6 + $0x5f0] sm:$0xff]  ;;  %v4385_v19 = vcombine.low %v1181_v43, %v1185_v13 }
 0x3ce   :  { %v1197_v20 = vld [vmem:[%s6683_s6 + $0x610] sm:$0xff] }
 0x3cf   :  { %2720 = vmatpush1.bf16.msra.mxu0 %v4273_v31  ;;  %2679 = vmatpush1.bf16.msra.mxu1 %v4399_v32  ;;  %v4212_v31 = vcombine.high %v1006_v21, %v1010_v25  ;;  %v1141_v32 = vld [vmem:[%s6683_s6 + $0x450] sm:$0xff] }
 0x3d0   :  { %2721 = vmatprep.subr.bf16.mxu0 %v4282_v33  ;;  %2680 = vmatprep.subr.bf16.mxu1 %v4408_v34  ;;  %v1145_v33 = vld [vmem:[%s6683_s6 + $0x470] sm:$0xff]  ;;  %v1014_v34 = vld [vmem:[%s6683_s6 + $0x58] sm:$0xff] }
 0x3d1   :  { %v4346_v38 = vcombine.high %v1141_v32, %v1145_v33  ;;  %v4345_v41 = vcombine.low %v1141_v32, %v1145_v33  ;;  %v4219_v42 = vcombine.low %v1014_v34, %v1018_v35  ;;  %v1201_v21 = vld [vmem:[%s6683_s6 + $0x630] sm:$0xff]  ;;  %v4393_v32 = vcombine.low %v1189_v17, %v1193_v18 }
 0x3d2   :  { %v1205_v33 = vld [vmem:[%s6683_s6 + $0x650] sm:$0xff] }
 0x3d3   :  { %2722 = vmatpush1.bf16.msra.mxu0 %v4281_v59  ;;  %2681 = vmatpush1.bf16.msra.mxu1 %v4407_v60  ;;  %v4220_v59 = vcombine.high %v1014_v34, %v1018_v35  ;;  %v1149_v60 = vld [vmem:[%s6683_s6 + $0x490] sm:$0xff] }
 0x3d4   :  { %2723 = vmatprep.subr.bf16.mxu0 %v4290_v62  ;;  %2682 = vmatprep.subr.bf16.mxu1 %v4416_v39  ;;  %v1153_v62 = vld [vmem:[%s6683_s6 + $0x4b0] sm:$0xff]  ;;  %v1022_v39 = vld [vmem:[%s6683_s6 + $0x98] sm:$0xff] }
 0x3d5   :  { %v4354_v44 = vcombine.high %v1149_v60, %v1153_v62  ;;  %v4353_v53 = vcombine.low %v1149_v60, %v1153_v62  ;;  %v4227_v58 = vcombine.low %v1022_v39, %v1026_v40  ;;  %v1209_v34 = vld [vmem:[%s6683_s6 + $0x670] sm:$0xff]  ;;  %v4401_v60 = vcombine.low %v1197_v20, %v1201_v21 }
 0x3d6   :  { %v1213_v62 = vld [vmem:[%s6683_s6 + $0x690] sm:$0xff] }
 0x3d7   :  { %2724 = vmatpush1.bf16.msra.mxu0 %v4289_v45  ;;  %2683 = vmatpush1.bf16.msra.mxu1 %v4415_v46  ;;  %v1157_v45 = vld [vmem:[%s6683_s6 + $0x4d0] sm:$0xff]  ;;  %v4228_v46 = vcombine.high %v1022_v39, %v1026_v40 }
 0x3d8   :  { %2725 = vmatprep.subr.bf16.mxu0 %v4298_v47  ;;  %2684 = vmatprep.subr.bf16.mxu1 %v4424_v51  ;;  %v1161_v47 = vld [vmem:[%s6683_s6 + $0x4f0] sm:$0xff]  ;;  %v1030_v51 = vld [vmem:[%s6683_s6 + $0xd8] sm:$0xff] }
 0x3d9   :  { %v4361_v4 = vcombine.low %v1157_v45, %v1161_v47  ;;  %v1217_v39 = vld [vmem:[%s6683_s6 + $0x6b0] sm:$0xff] }
 0x3db   :  { %2726 = vmatpush1.bf16.msra.mxu0 %v4297_v61  ;;  %2685 = vmatpush1.bf16.msra.mxu1 %v4423_v0  ;;  %v4362_v61 = vcombine.high %v1157_v45, %v1161_v47  ;;  %v1038_v0 = vld [vmem:[%s6683_s6 + $0x118] sm:$0xff]  ;;  %v1221_v47 = vld [vmem:[%s6683_s6 + $0x6d0] sm:$0xff] }
 0x3dc   :  { %2727 = vmatprep.subr.bf16.mxu0 %v4306_v1  ;;  %2686 = vmatprep.subr.bf16.mxu1 %v4432_v3  ;;  %v1042_v1 = vld [vmem:[%s6683_s6 + $0x138] sm:$0xff] }
 0x3dd   :  { %v4243_v14 = vcombine.low %v1038_v0, %v1042_v1  ;;  %v1090_v45 = vld [vmem:[%s6683_s6 + $0x2b8] sm:$0xff] }
 0x3df   :  { %2728 = vmatpush1.bf16.msra.mxu0 %v4305_v9  ;;  %2687 = vmatpush1.bf16.msra.mxu1 %v4431_v11  ;;  %v4370_v9 = vcombine.high %v1165_v23, %v1169_v57  ;;  %v1046_v11 = vld [vmem:[%s6683_s6 + $0x158] sm:$0xff] }
 0x3e0   :  { %2729 = vmatprep.subr.bf16.mxu0 %v4314_v12  ;;  %2688 = vmatprep.subr.bf16.mxu1 %v4440_v49  ;;  %v1050_v12 = vld [vmem:[%s6683_s6 + $0x178] sm:$0xff]  ;;  %v4244_v49 = vcombine.high %v1038_v0, %v1042_v1  ;;  %v1229_v0 = vld [vmem:[%s6683_s6 + $0x710] sm:$0xff] }
 0x3e1   :  { %v4251_v26 = vcombine.low %v1046_v11, %v1050_v12  ;;  %v1094_v57 = vld [vmem:[%s6683_s6 + $0x2d8] sm:$0xff]  ;;  %v1233_v1 = vld [vmem:[%s6683_s6 + $0x730] sm:$0xff] }
 0x3e3   :  { %2730 = vmatpush1.bf16.msra.mxu0 %v4313_v7  ;;  %2689 = vmatpush1.bf16.msra.mxu1 %v4439_v10  ;;  %v4378_v7 = vcombine.high %v1173_v5, %v1177_v6  ;;  %v1054_v10 = vld [vmem:[%s6683_s6 + $0x198] sm:$0xff] }
 0x3e4   :  { %2731 = vmatprep.subr.bf16.mxu0 %v4322_v15  ;;  %2690 = vmatprep.subr.bf16.mxu1 %v4448_v16  ;;  %v1058_v15 = vld [vmem:[%s6683_s6 + $0x1b8] sm:$0xff]  ;;  %v4252_v16 = vcombine.high %v1046_v11, %v1050_v12  ;;  %v1237_v11 = vld [vmem:[%s6683_s6 + $0x750] sm:$0xff] }
 0x3e5   :  { %v4259_v25 = vcombine.low %v1054_v10, %v1058_v15  ;;  %v1102_v6 = vld [vmem:[%s6683_s6 + $0x318] sm:$0xff]  ;;  %v1241_v12 = vld [vmem:[%s6683_s6 + $0x770] sm:$0xff] }
 0x3e7   :  { %2732 = vmatpush1.bf16.msra.mxu0 %v4321_v52  ;;  %2691 = vmatpush1.bf16.msra.mxu1 %v4447_v54  ;;  %v4386_v52 = vcombine.high %v1181_v43, %v1185_v13  ;;  %v4260_v54 = vcombine.high %v1054_v10, %v1058_v15  ;;  %v1110_v13 = vld [vmem:[%s6683_s6 + $0x358] sm:$0xff]  ;;  %v1245_v10 = vld [vmem:[%s6683_s6 + $0x790] sm:$0xff] }
 0x3e8   :  { %2733 = vmatprep.subr.bf16.mxu0 %v4330_v55  ;;  %2692 = vmatprep.subr.bf16.mxu1 %v4456_v56  ;;  %v1062_v55 = vld [vmem:[%s6683_s6 + $0x1d8] sm:$0xff]  ;;  %v1249_v15 = vld [vmem:[%s6683_s6 + $0x7b0] sm:$0xff] }
 0x3e9   :  { %v1066_v56 = vld [vmem:[%s6683_s6 + $0x1f8] sm:$0xff] }
 0x3ea   :  { %v4267_v35 = vcombine.low %v1062_v55, %v1066_v56 }
 0x3eb   :  { %2734 = vmatpush1.bf16.msra.mxu0 %v4329_v28  ;;  %2693 = vmatpush1.bf16.msra.mxu1 %v4455_v29  ;;  %v4394_v28 = vcombine.high %v1189_v17, %v1193_v18  ;;  %v4268_v29 = vcombine.high %v1062_v55, %v1066_v56  ;;  %v1118_v18 = vld [vmem:[%s6683_s6 + $0x398] sm:$0xff]  ;;  %v4450_v56 = vcombine.high %v1245_v10, %v1249_v15 }
 0x3ec   :  { %2744 = vmatprep.subr.bf16.mxu0 %v4338_v30  ;;  %2785 = vmatprep.subr.bf16.mxu1 %v4212_v31  ;;  %v1070_v30 = vld [vmem:[%s6683_s6 + $0x218] sm:$0xff] }
 0x3ed   :  { %v1074_v31 = vld [vmem:[%s6683_s6 + $0x238] sm:$0xff] }
 0x3ee   :  { %2736 = vmatmul.mubr.bf16.vlgmr.msra.gmra.mrb[8].mxu0 %v5571_v63  ;;  %2695 = vmatmul.mubr.bf16.vlgmr.msra.gmra.mrb[16].mxu1 %v5707_v27  ;;  %v4275_v40 = vcombine.low %v1070_v30, %v1074_v31 }
 0x3ef   :  { %2745 = vmatpush1.bf16.msra.mxu0 %v4337_v36  ;;  %2776 = vmatprep.mubr.bf16.mxu0 %v5705_v24  ;;  %v4402_v36 = vcombine.high %v1197_v20, %v1201_v21  ;;  %v1257_v20 = vld [vmem:[%s6683_s6 + $0x7f0] sm:$0xff]  ;;  %v1126_v21 = vld [vmem:[%s6683_s6 + $0x3d8] sm:$0xff] }
 0x3f0   :  { %2786 = vmatpush1.bf16.msra.mxu1 %v4211_v37  ;;  %2817 = vmatprep.mubr.bf16.mxu1 %v5569_v50  ;;  %v1034_v50 = vld [vmem:[%s6683_s6 + $0xf8] sm:$0xff]  ;;  %v4276_v37 = vcombine.high %v1070_v30, %v1074_v31 }
 0x3f1   :  { %2746 = vmatprep.subr.bf16.mxu0 %v4346_v38  ;;  %2787 = vmatprep.subr.bf16.mxu1 %v4220_v59  ;;  %v4236_v3 = vcombine.high %v1030_v51, %v1034_v50  ;;  %v4235_v8 = vcombine.low %v1030_v51, %v1034_v50  ;;  %v1078_v38 = vld [vmem:[%s6683_s6 + $0x258] sm:$0xff]  ;;  %v1225_v51 = vld [vmem:[%s6683_s6 + $0x6f0] sm:$0xff] }
 0x3f2   :  { %v1082_v59 = vld [vmem:[%s6683_s6 + $0x278] sm:$0xff] }
 0x3f3   :  { %2747 = vmatpush1.bf16.msra.mxu0 %v4345_v41  ;;  %v4410_v41 = vcombine.high %v1205_v33, %v1209_v34  ;;  %v4283_v50 = vcombine.low %v1078_v38, %v1082_v59 }
 0x3f4   :  { %2788 = vmatpush1.bf16.msra.mxu1 %v4219_v42  ;;  %2748 = vmatprep.subr.bf16.mxu0 %v4354_v44  ;;  %v4284_v42 = vcombine.high %v1078_v38, %v1082_v59  ;;  %v1086_v44 = vld [vmem:[%s6683_s6 + $0x298] sm:$0xff] }
 0x3f5   :  { %2789 = vmatprep.subr.bf16.mxu1 %v4228_v46  ;;  %v4409_v46 = vcombine.low %v1205_v33, %v1209_v34  ;;  %v4292_v23 = vcombine.high %v1086_v44, %v1090_v45  ;;  %v1138_v33 = vld [vmem:[%s6683_s6 + $0x438] sm:$0xff] }
 0x3f6   :  { %v1142_v38 = vld [vmem:[%s6683_s6 + $0x458] sm:$0xff] }
 0x3f7   :  { %2749 = vmatpush1.bf16.msra.mxu0 %v4353_v53  ;;  %v4418_v53 = vcombine.high %v1213_v62, %v1217_v39  ;;  %v1146_v59 = vld [vmem:[%s6683_s6 + $0x478] sm:$0xff] }
 0x3f8   :  { %2790 = vmatpush1.bf16.msra.mxu1 %v4227_v58  ;;  %2750 = vmatprep.subr.bf16.mxu0 %v4362_v61  ;;  %v1098_v58 = vld [vmem:[%s6683_s6 + $0x2f8] sm:$0xff]  ;;  %v4417_v61 = vcombine.low %v1213_v62, %v1217_v39  ;;  %v4348_v39 = vcombine.high %v1142_v38, %v1146_v59 }
 0x3f9   :  { %2791 = vmatprep.subr.bf16.mxu1 %v4236_v3  ;;  %v4291_v3 = vcombine.low %v1086_v44, %v1090_v45  ;;  %v4300_v5 = vcombine.high %v1094_v57, %v1098_v58  ;;  %v4770_v44 = vld [vmem:[%s6684_s7 + $0x10] ss:$8 sps:$4 sm:$0xff]   ;;  %v4347_v45 = vcombine.low %v1142_v38, %v1146_v59  ;;  %v4799_v38 = vld [vmem:[%s6684_s7 + $0xa4] ss:$8 sps:$4 sm:$0xff]  }
 0x3fb   :  { %2751 = vmatpush1.bf16.msra.mxu0 %v4361_v4  ;;  %v4426_v4 = vcombine.high %v1221_v47, %v1225_v51 }
 0x3fc   :  { %2792 = vmatpush1.bf16.msra.mxu1 %v4235_v8  ;;  %2752 = vmatprep.subr.bf16.mxu0 %v4370_v9  ;;  %v1106_v8 = vld [vmem:[%s6683_s6 + $0x338] sm:$0xff]  ;;  %v4425_v9 = vcombine.low %v1221_v47, %v1225_v51 }
 0x3fd   :  { %2793 = vmatprep.subr.bf16.mxu1 %v4244_v49  ;;  %v4299_v49 = vcombine.low %v1094_v57, %v1098_v58  ;;  %v4308_v43 = vcombine.high %v1102_v6, %v1106_v8  ;;  %v1162_v51 = vld [vmem:[%s6683_s6 + $0x4f8] sm:$0xff] }
 0x3fe   :  { %v1166_v57 = vld [vmem:[%s6683_s6 + $0x518] sm:$0xff] }
 0x3ff   :  { %2753 = vmatpush1.bf16.msra.mxu0 %v4369_v2  ;;  %v4434_v2 = vcombine.high %v1229_v0, %v1233_v1  ;;  %v1170_v58 = vld [vmem:[%s6683_s6 + $0x538] sm:$0xff] }
 0x400   :  { %2794 = vmatpush1.bf16.msra.mxu1 %v4243_v14  ;;  %2754 = vmatprep.subr.bf16.mxu0 %v4378_v7  ;;  %v1114_v14 = vld [vmem:[%s6683_s6 + $0x378] sm:$0xff]  ;;  %v4433_v7 = vcombine.low %v1229_v0, %v1233_v1  ;;  %v4781_v1 = vld [vmem:[%s6684_s7 + $0x44] ss:$8 sps:$4 sm:$0xff]  }
 0x401   :  { %2795 = vmatprep.subr.bf16.mxu1 %v4252_v16  ;;  %v4307_v16 = vcombine.low %v1102_v6, %v1106_v8  ;;  %v4316_v17 = vcombine.high %v1110_v13, %v1114_v14  ;;  %v4315_v55 = vcombine.low %v1110_v13, %v1114_v14  ;;  %v4779_v6 = vld [vmem:[%s6684_s7 + $0x40] ss:$8 sps:$4 sm:$0xff]   ;;  %v4371_v8 = vcombine.low %v1166_v57, %v1170_v58  ;;  %v4787_v13 = vld [vmem:[%s6684_s7 + $0x64] ss:$8 sps:$4 sm:$0xff]  }
 0x403   :  { %2755 = vmatpush1.bf16.msra.mxu0 %v4377_v22  ;;  %v4442_v22 = vcombine.high %v1237_v11, %v1241_v12 }
 0x404   :  { %2796 = vmatpush1.bf16.msra.mxu1 %v4251_v26  ;;  %2756 = vmatprep.subr.bf16.mxu0 %v4386_v52  ;;  %v1122_v26 = vld [vmem:[%s6683_s6 + $0x3b8] sm:$0xff]  ;;  %v4441_v52 = vcombine.low %v1237_v11, %v1241_v12 }
 0x405   :  { %2797 = vmatprep.subr.bf16.mxu1 %v4260_v54  ;;  %v1253_v54 = vld [vmem:[%s6683_s6 + $0x7d0] sm:$0xff]  ;;  %v1182_v12 = vld [vmem:[%s6683_s6 + $0x598] sm:$0xff] }
 0x406   :  { %v4458_v30 = vcombine.high %v1253_v54, %v1257_v20  ;;  %v4457_v34 = vcombine.low %v1253_v54, %v1257_v20 }
 0x407   :  { %2757 = vmatpush1.bf16.msra.mxu0 %v4385_v19  ;;  %v4324_v19 = vcombine.high %v1118_v18, %v1122_v26 }
 0x408   :  { %2798 = vmatpush1.bf16.msra.mxu1 %v4259_v25  ;;  %2758 = vmatprep.subr.bf16.mxu0 %v4394_v28  ;;  %v1130_v25 = vld [vmem:[%s6683_s6 + $0x3f8] sm:$0xff]  ;;  %v4449_v28 = vcombine.low %v1245_v10, %v1249_v15 }
 0x409   :  { %2799 = vmatprep.subr.bf16.mxu1 %v4268_v29  ;;  %v4323_v29 = vcombine.low %v1118_v18, %v1122_v26  ;;  %v4332_v31 = vcombine.high %v1126_v21, %v1130_v25  ;;  %v1190_v15 = vld [vmem:[%s6683_s6 + $0x5d8] sm:$0xff] }
 0x40b   :  { %2759 = vmatpush1.bf16.msra.mxu0 %v4393_v32  ;;  %v1134_v32 = vld [vmem:[%s6683_s6 + $0x418] sm:$0xff] }
 0x40c   :  { %2800 = vmatpush1.bf16.msra.mxu1 %v4267_v35  ;;  %2760 = vmatprep.subr.bf16.mxu0 %v4402_v36  ;;  %v4331_v35 = vcombine.low %v1126_v21, %v1130_v25  ;;  %v4769_v36 = vld [vmem:[%s6684_s7 + $0x4] ss:$8 sps:$4 sm:$0xff]   ;;  %v4339_v62 = vcombine.low %v1134_v32, %v1138_v33 }
 0x40d   :  { %2801 = vmatprep.subr.bf16.mxu1 %v4276_v37  ;;  %v4340_v37 = vcombine.high %v1134_v32, %v1138_v33  ;;  %v4793_v21 = vld [vmem:[%s6684_s7 + $0x84] ss:$8 sps:$4 sm:$0xff]   ;;  %v4796_v32 = vld [vmem:[%s6684_s7 + $0x94] ss:$8 sps:$4 sm:$0xff]  }
 0x40f   :  { %2761 = vmatpush1.bf16.msra.mxu0 %v4401_v60  ;;  %v4767_v60 = vld [vmem:[%s6684_s7] ss:$8 sps:$4 sm:$0xff]  }
 0x410   :  { %2802 = vmatpush1.bf16.msra.mxu1 %v4275_v40  ;;  %2762 = vmatprep.subr.bf16.mxu0 %v4410_v41  ;;  %v4772_v40 = vld [vmem:[%s6684_s7 + $0x14] ss:$8 sps:$4 sm:$0xff]  }
 0x411   :  { %2803 = vmatprep.subr.bf16.mxu1 %v4284_v42  ;;  %v1150_v41 = vld [vmem:[%s6683_s6 + $0x498] sm:$0xff] }
 0x412   :  { %v1154_v42 = vld [vmem:[%s6683_s6 + $0x4b8] sm:$0xff] }
 0x413   :  { %2763 = vmatpush1.bf16.msra.mxu0 %v4409_v46  ;;  %v4775_v46 = vld [vmem:[%s6684_s7 + $0x24] ss:$8 sps:$4 sm:$0xff]   ;;  %v4356_v47 = vcombine.high %v1150_v41, %v1154_v42 }
 0x414   :  { %2804 = vmatpush1.bf16.msra.mxu1 %v4283_v50  ;;  %2764 = vmatprep.subr.bf16.mxu0 %v4418_v53  ;;  %v4355_v50 = vcombine.low %v1150_v41, %v1154_v42  ;;  %v4778_v53 = vld [vmem:[%s6684_s7 + $0x34] ss:$8 sps:$4 sm:$0xff]  }
 0x415   :  { %2805 = vmatprep.subr.bf16.mxu1 %v4292_v23  ;;  %v4802_v41 = vld [vmem:[%s6684_s7 + $0xb4] ss:$8 sps:$4 sm:$0xff]  }
 0x417   :  { %2765 = vmatpush1.bf16.msra.mxu0 %v4417_v61  ;;  %v4776_v61 = vld [vmem:[%s6684_s7 + $0x30] ss:$8 sps:$4 sm:$0xff]  }
 0x418   :  { %2806 = vmatpush1.bf16.msra.mxu1 %v4291_v3  ;;  %2766 = vmatprep.subr.bf16.mxu0 %v4426_v4  ;;  %v4372_v3 = vcombine.high %v1166_v57, %v1170_v58  ;;  %v1174_v4 = vld [vmem:[%s6683_s6 + $0x558] sm:$0xff] }
 0x419   :  { %2807 = vmatprep.subr.bf16.mxu1 %v4300_v5  ;;  %v1178_v5 = vld [vmem:[%s6683_s6 + $0x578] sm:$0xff] }
 0x41a   :  { %v4380_v11 = vcombine.high %v1174_v4, %v1178_v5  ;;  %v4808_v57 = vld [vmem:[%s6684_s7 + $0xd4] ss:$8 sps:$4 sm:$0xff]  }
 0x41b   :  { %2767 = vmatpush1.bf16.msra.mxu0 %v4425_v9  ;;  %v4784_v9 = vld [vmem:[%s6684_s7 + $0x54] ss:$8 sps:$4 sm:$0xff]  }
 0x41c   :  { %2808 = vmatpush1.bf16.msra.mxu1 %v4299_v49  ;;  %2768 = vmatprep.subr.bf16.mxu0 %v4434_v2  ;;  %v1186_v49 = vld [vmem:[%s6683_s6 + $0x5b8] sm:$0xff] }
 0x41d   :  { %2809 = vmatprep.subr.bf16.mxu1 %v4308_v43  ;;  %v4782_v2 = vld [vmem:[%s6684_s7 + $0x50] ss:$8 sps:$4 sm:$0xff]   ;;  %v4379_v43 = vcombine.low %v1174_v4, %v1178_v5  ;;  %v4387_v26 = vcombine.low %v1182_v12, %v1186_v49  ;;  %v4811_v4 = vld [vmem:[%s6684_s7 + $0xe4] ss:$8 sps:$4 sm:$0xff]  }
 0x41f   :  { %2769 = vmatpush1.bf16.msra.mxu0 %v4433_v7  ;;  %v4388_v7 = vcombine.high %v1182_v12, %v1186_v49  ;;  %v4814_v12 = vld [vmem:[%s6684_s7 + $0xf4] ss:$8 sps:$4 sm:$0xff]  }
 0x420   :  { %2810 = vmatpush1.bf16.msra.mxu1 %v4307_v16  ;;  %2770 = vmatprep.subr.bf16.mxu0 %v4442_v22  ;;  %v1194_v16 = vld [vmem:[%s6683_s6 + $0x5f8] sm:$0xff] }
 0x421   :  { %2811 = vmatprep.subr.bf16.mxu1 %v4316_v17  ;;  %v4785_v17 = vld [vmem:[%s6684_s7 + $0x60] ss:$8 sps:$4 sm:$0xff]   ;;  %v4396_v54 = vcombine.high %v1190_v15, %v1194_v16  ;;  %v4395_v20 = vcombine.low %v1190_v15, %v1194_v16 }
 0x423   :  { %2771 = vmatpush1.bf16.msra.mxu0 %v4441_v52  ;;  %v4790_v52 = vld [vmem:[%s6684_s7 + $0x74] ss:$8 sps:$4 sm:$0xff]  }
 0x424   :  { %2812 = vmatpush1.bf16.msra.mxu1 %v4315_v55  ;;  %2772 = vmatprep.subr.bf16.mxu0 %v4450_v56  ;;  %v1198_v55 = vld [vmem:[%s6683_s6 + $0x618] sm:$0xff] }
 0x425   :  { %2813 = vmatprep.subr.bf16.mxu1 %v4324_v19  ;;  %v1202_v56 = vld [vmem:[%s6683_s6 + $0x638] sm:$0xff] }
 0x426   :  { %v4788_v19 = vld [vmem:[%s6684_s7 + $0x70] ss:$8 sps:$4 sm:$0xff]   ;;  %v4404_v25 = vcombine.high %v1198_v55, %v1202_v56 }
 0x427   :  { %2773 = vmatpush1.bf16.msra.mxu0 %v4449_v28  ;;  %v1206_v28 = vld [vmem:[%s6683_s6 + $0x658] sm:$0xff] }
 0x428   :  { %2814 = vmatpush1.bf16.msra.mxu1 %v4323_v29  ;;  %2774 = vmatprep.subr.bf16.mxu0 %v4458_v30  ;;  %v1210_v29 = vld [vmem:[%s6683_s6 + $0x678] sm:$0xff]  ;;  %v4791_v30 = vld [vmem:[%s6684_s7 + $0x80] ss:$8 sps:$4 sm:$0xff]  }
 0x429   :  { %2815 = vmatprep.subr.bf16.mxu1 %v4332_v31  ;;  %v4403_v31 = vcombine.low %v1198_v55, %v1202_v56  ;;  %v4412_v33 = vcombine.high %v1206_v28, %v1210_v29 }
 0x42b   :  { %2775 = vmatpush1.bf16.msra.mxu0 %v4457_v34  ;;  %v1214_v34 = vld [vmem:[%s6683_s6 + $0x698] sm:$0xff] }
 0x42c   :  { %2816 = vmatpush1.bf16.msra.mxu1 %v4331_v35  ;;  %3947 = vmatprep.subr.bf16.mxu0 %v4769_v36  ;;  %v1218_v35 = vld [vmem:[%s6683_s6 + $0x6b8] sm:$0xff] }
 0x42d   :  { %2826 = vmatprep.subr.bf16.mxu1 %v4340_v37  ;;  %v4794_v36 = vld [vmem:[%s6684_s7 + $0x90] ss:$8 sps:$4 sm:$0xff]   ;;  %v4411_v37 = vcombine.low %v1206_v28, %v1210_v29  ;;  %v4420_v59 = vcombine.high %v1214_v34, %v1218_v35 }
 0x42e   :  { %2777 = vmatmul.mubr.bf16.vlgmr.msra.gmra.mrb[8].mxu0 %v5707_v27 }
 0x42f   :  { %2818 = vmatmul.mubr.bf16.vlgmr.msra.gmra.mrb[20].mxu1 %v5571_v63  ;;  %3948 = vmatpush1.bf16.msra.mxu0 %v4767_v60  ;;  %v1158_v63 = vld [vmem:[%s6683_s6 + $0x4d8] sm:$0xff] }
 0x430   :  { %2827 = vmatpush1.bf16.msra.mxu1 %v4339_v62  ;;  %2858 = vmatprep.mubr.bf16.mxu1 %v5705_v24  ;;  %v4773_v24 = vld [vmem:[%s6684_s7 + $0x20] ss:$8 sps:$4 sm:$0xff]   ;;  %v4364_v23 = vcombine.high %v1158_v63, %v1162_v51  ;;  %v4363_v0 = vcombine.low %v1158_v63, %v1162_v51  ;;  %v1222_v60 = vld [vmem:[%s6683_s6 + $0x6d8] sm:$0xff]  ;;  %v4805_v63 = vld [vmem:[%s6684_s7 + $0xc4] ss:$8 sps:$4 sm:$0xff]  }
 0x431   :  { %2828 = vmatprep.subr.bf16.mxu1 %v4348_v39  ;;  %3949 = vmatprep.subr.bf16.mxu0 %v4772_v40  ;;  %v1226_v62 = vld [vmem:[%s6683_s6 + $0x6f8] sm:$0xff]  ;;  %v4797_v39 = vld [vmem:[%s6684_s7 + $0xa0] ss:$8 sps:$4 sm:$0xff]   ;;  %v4419_v40 = vcombine.low %v1214_v34, %v1218_v35 }
 0x432   :  { %v4428_v42 = vcombine.high %v1222_v60, %v1226_v62 }
 0x433   :  { %3950 = vmatpush1.bf16.msra.mxu0 %v4770_v44  ;;  %v1230_v44 = vld [vmem:[%s6683_s6 + $0x718] sm:$0xff] }
 0x434   :  { %2829 = vmatpush1.bf16.msra.mxu1 %v4347_v45  ;;  %3951 = vmatprep.subr.bf16.mxu0 %v4775_v46  ;;  %v1234_v45 = vld [vmem:[%s6683_s6 + $0x738] sm:$0xff] }
 0x435   :  { %2830 = vmatprep.subr.bf16.mxu1 %v4356_v47  ;;  %v4800_v46 = vld [vmem:[%s6684_s7 + $0xb0] ss:$8 sps:$4 sm:$0xff]   ;;  %v4427_v47 = vcombine.low %v1222_v60, %v1226_v62  ;;  %v4436_v51 = vcombine.high %v1230_v44, %v1234_v45 }
 0x437   :  { %3952 = vmatpush1.bf16.msra.mxu0 %v4773_v24  ;;  %v1238_v24 = vld [vmem:[%s6683_s6 + $0x758] sm:$0xff] }
 0x438   :  { %2831 = vmatpush1.bf16.msra.mxu1 %v4355_v50  ;;  %3953 = vmatprep.subr.bf16.mxu0 %v4778_v53  ;;  %v1242_v50 = vld [vmem:[%s6683_s6 + $0x778] sm:$0xff]  ;;  %v4803_v53 = vld [vmem:[%s6684_s7 + $0xc0] ss:$8 sps:$4 sm:$0xff]  }
 0x439   :  { %2832 = vmatprep.subr.bf16.mxu1 %v4364_v23  ;;  %v4435_v23 = vcombine.low %v1230_v44, %v1234_v45  ;;  %v4444_v58 = vcombine.high %v1238_v24, %v1242_v50 }
 0x43b   :  { %3954 = vmatpush1.bf16.msra.mxu0 %v4776_v61  ;;  %v1246_v61 = vld [vmem:[%s6683_s6 + $0x798] sm:$0xff] }
 0x43c   :  { %2833 = vmatpush1.bf16.msra.mxu1 %v4363_v0  ;;  %3955 = vmatprep.subr.bf16.mxu0 %v4781_v1  ;;  %v1250_v0 = vld [vmem:[%s6683_s6 + $0x7b8] sm:$0xff] }
 0x43d   :  { %2834 = vmatprep.subr.bf16.mxu1 %v4372_v3  ;;  %v4806_v1 = vld [vmem:[%s6684_s7 + $0xd0] ss:$8 sps:$4 sm:$0xff]   ;;  %v4443_v3 = vcombine.low %v1238_v24, %v1242_v50  ;;  %v4452_v5 = vcombine.high %v1246_v61, %v1250_v0 }
 0x43f   :  { %3956 = vmatpush1.bf16.msra.mxu0 %v4779_v6  ;;  %v1254_v6 = vld [vmem:[%s6683_s6 + $0x7d8] sm:$0xff] }
 0x440   :  { %2835 = vmatpush1.bf16.msra.mxu1 %v4371_v8  ;;  %3957 = vmatprep.subr.bf16.mxu0 %v4784_v9  ;;  %v1258_v8 = vld [vmem:[%s6683_s6 + $0x7f8] sm:$0xff]  ;;  %v4809_v9 = vld [vmem:[%s6684_s7 + $0xe0] ss:$8 sps:$4 sm:$0xff]  }
 0x441   :  { %v6165_v14 = vpop.f32.mrb[12].mxu1  ;;  %2836 = vmatprep.subr.bf16.mxu1 %v4380_v11  ;;  %v4451_v11 = vcombine.low %v1246_v61, %v1250_v0  ;;  %v4460_v49 = vcombine.high %v1254_v6, %v1258_v8 }
 0x442   :  { %v6167_v10 = vpop.f32.mrb[13].mxu1 }
 0x443   :  { %v2577_v22 = vpop.f32.mrb[14].mxu1  ;;  %3958 = vmatpush1.bf16.msra.mxu0 %v4782_v2  ;;  %v4812_v2 = vld [vmem:[%s6684_s7 + $0xf0] ss:$8 sps:$4 sm:$0xff]  }
 0x444   :  { %2837 = vmatpush1.bf16.msra.mxu1 %v4379_v43  ;;  %v2578_v18 = vpop.f32.mrb[15].mxu1  ;;  %3959 = vmatprep.subr.bf16.mxu0 %v4787_v13  ;;  %v4459_v43 = vcombine.low %v1254_v6, %v1258_v8  ;;  %v4817_v13 = vld [vmem:[%s6684_s7 + $0x104] ss:$8 sps:$4 sm:$0xff]  }
 0x445   :  { %2838 = vmatprep.subr.bf16.mxu1 %v4388_v7 }
 0x447   :  { %3960 = vmatpush1.bf16.msra.mxu0 %v4785_v17 }
 0x448   :  { %2839 = vmatpush1.bf16.msra.mxu1 %v4387_v26  ;;  %3961 = vmatprep.subr.bf16.mxu0 %v4790_v52 }
 0x449   :  { %2840 = vmatprep.subr.bf16.mxu1 %v4396_v54 }
 0x44b   :  { %3962 = vmatpush1.bf16.msra.mxu0 %v4788_v19 }
 0x44c   :  { %2841 = vmatpush1.bf16.msra.mxu1 %v4395_v20  ;;  %3963 = vmatprep.subr.bf16.mxu0 %v4793_v21 }
 0x44d   :  { %2842 = vmatprep.subr.bf16.mxu1 %v4404_v25 }
 0x44f   :  { %3964 = vmatpush1.bf16.msra.mxu0 %v4791_v30 }
 0x450   :  { %2843 = vmatpush1.bf16.msra.mxu1 %v4403_v31  ;;  %3965 = vmatprep.subr.bf16.mxu0 %v4796_v32 }
 0x451   :  { %2844 = vmatprep.subr.bf16.mxu1 %v4412_v33 }
 0x453   :  { %3966 = vmatpush1.bf16.msra.mxu0 %v4794_v36 }
 0x454   :  { %2845 = vmatpush1.bf16.msra.mxu1 %v4411_v37  ;;  %3967 = vmatprep.subr.bf16.mxu0 %v4799_v38 }
 0x455   :  { %2846 = vmatprep.subr.bf16.mxu1 %v4420_v59 }
 0x457   :  { %3968 = vmatpush1.bf16.msra.mxu0 %v4797_v39 }
 0x458   :  { %2847 = vmatpush1.bf16.msra.mxu1 %v4419_v40  ;;  %3969 = vmatprep.subr.bf16.mxu0 %v4802_v41 }
 0x459   :  { %2848 = vmatprep.subr.bf16.mxu1 %v4428_v42 }
 0x45b   :  { %3970 = vmatpush1.bf16.msra.mxu0 %v4800_v46 }
 0x45c   :  { %2849 = vmatpush1.bf16.msra.mxu1 %v4427_v47  ;;  %3971 = vmatprep.subr.bf16.mxu0 %v4805_v63 }
 0x45d   :  { %2850 = vmatprep.subr.bf16.mxu1 %v4436_v51 }
 0x45f   :  { %3972 = vmatpush1.bf16.msra.mxu0 %v4803_v53  ;;  %v6287_v53 = vsub.s32 4, %v5214_v48 }
 0x460   :  { %2851 = vmatpush1.bf16.msra.mxu1 %v4435_v23  ;;  %3973 = vmatprep.subr.bf16.mxu0 %v4808_v57  ;;  %v6292_v23 = vld [vmem:[%s6682_s8] sm:$0xff] }
 0x461   :  { %2852 = vmatprep.subr.bf16.mxu1 %v4444_v58  ;;  %v6298_v58 = vld [vmem:[%s6682_s8 + $0x8] sm:$0xff] }
 0x463   :  { %3974 = vmatpush1.bf16.msra.mxu0 %v4806_v1 }
 0x464   :  { %2853 = vmatpush1.bf16.msra.mxu1 %v4443_v3  ;;  %3975 = vmatprep.subr.bf16.mxu0 %v4811_v4  ;;  %v6302_v3 = vsub.s32 5, %v5214_v48 }
 0x465   :  { %2854 = vmatprep.subr.bf16.mxu1 %v4452_v5 }
 0x467   :  { %3976 = vmatpush1.bf16.msra.mxu0 %v4809_v9 }
 0x468   :  { %2855 = vmatpush1.bf16.msra.mxu1 %v4451_v11  ;;  %3977 = vmatprep.subr.bf16.mxu0 %v4814_v12 }
 0x469   :  { %2856 = vmatprep.subr.bf16.mxu1 %v4460_v49 }
 0x46b   :  { %3978 = vmatpush1.bf16.msra.mxu0 %v4812_v2 }
 0x46c   :  { %2857 = vmatpush1.bf16.msra.mxu1 %v4459_v43  ;;  %3988 = vmatprep.subr.bf16.mxu0 %v4817_v13 }
 0x46f   :  { %2859 = vmatmul.mubr.bf16.vlgmr.msra.gmra.mrb[20].mxu1 %v5707_v27 }
 0x481   :  { %v2614_v7 = vpop.f32.mrb[4].mxu0 }
 0x482   :  { %v2615_v15 = vadd.f32 %v2614_v7, %v6165_v14  ;;  %v2616_v16 = vpop.f32.mrb[5].mxu0 }
 0x483   :  { %v2617_v22 = vadd.f32 %v2616_v16, %v6167_v10  ;;  %v2618_v17 = vpop.f32.mrb[6].mxu0 }
 0x484   :  { %v2867_v18 = vrot.slane %v2615_v15, 4  ;;  %v2923_v26 = vmul.f32 %v2615_v15, %v2615_v15  ;;  %v2619_v52 = vpop.f32.mrb[7].mxu0 }
 0x485   :  { %v2873_v54 = vrot.slane %v2617_v22, 4  ;;  %v2924_v55 = vmul.f32 %v2617_v22, %v2617_v22 }
 0x486   :  { %v2868_v56 = vadd.f32 %v2867_v18, %v2615_v15  ;;  %v2931_v19 = vrot.slane %v2923_v26, 4 }
 0x487   :  { %v2874_v20 = vadd.f32 %v2873_v54, %v2617_v22  ;;  %v2937_v21 = vrot.slane %v2924_v55, 4  ;;  %v4815_v54 = vld [vmem:[%s6684_s7 + $0x100] ss:$8 sps:$4 sm:$0xff]  }
 0x488   :  { %v2869_v25 = vrot.slane %v2868_v56, 2  ;;  %v2932_v28 = vadd.f32 %v2931_v19, %v2923_v26  ;;  %v4821_v19 = vld [vmem:[%s6684_s7 + $0x120] ss:$8 sps:$4 sm:$0xff]  }
 0x489   :  { %v2875_v29 = vrot.slane %v2874_v20, 2  ;;  %v2938_v27 = vadd.f32 %v2937_v21, %v2924_v55  ;;  %v4824_v21 = vld [vmem:[%s6684_s7 + $0x130] ss:$8 sps:$4 sm:$0xff]  }
 0x48a   :  { %v2870_v30 = vadd.f32 %v2869_v25, %v2868_v56  ;;  %v2933_v31 = vrot.slane %v2932_v28, 2  ;;  %v4823_v56 = vld [vmem:[%s6684_s7 + $0x124] ss:$8 sps:$4 sm:$0xff]  }
 0x48b   :  { %v2876_v14 = vadd.f32 %v2875_v29, %v2874_v20  ;;  %v2939_v32 = vrot.slane %v2938_v27, 2  ;;  %v4826_v20 = vld [vmem:[%s6684_s7 + $0x134] ss:$8 sps:$4 sm:$0xff]  }
 0x48c   :  { %v2871_v33 = vrot.slane %v2870_v30, 1  ;;  %v2934_v10 = vadd.f32 %v2933_v31, %v2932_v28  ;;  %v4829_v28 = vld [vmem:[%s6684_s7 + $0x144] ss:$8 sps:$4 sm:$0xff]  }
 0x48d   :  { %v2877_v34 = vrot.slane %v2876_v14, 1  ;;  %v2940_v35 = vadd.f32 %v2939_v32, %v2938_v27 }
 0x48e   :  { %v2872_v36 = vadd.f32 %v2871_v33, %v2870_v30  ;;  %v2935_v37 = vrot.slane %v2934_v10, 1 }
 0x48f   :  { %v2878_v38 = vadd.f32 %v2877_v34, %v2876_v14  ;;  %v2941_v59 = vrot.slane %v2940_v35, 1 }
 0x490   :  { %v2915_v60 = vmul.f32 0.125, %v2872_v36  ;;  %v2936_v62 = vadd.f32 %v2935_v37, %v2934_v10 }
 0x491   :  { %v2916_v39 = vmul.f32 0.125, %v2878_v38  ;;  %v2942_v40 = vadd.f32 %v2941_v59, %v2940_v35  ;;  %v4827_v35 = vld [vmem:[%s6684_s7 + $0x140] ss:$8 sps:$4 sm:$0xff]   ;;  %v4832_v38 = vld [vmem:[%s6684_s7 + $0x154] ss:$8 sps:$4 sm:$0xff]  }
 0x492   :  { %v2979_v41 = vmul.f32 0.125, %v2936_v62  ;;  %v2987_v42 = vmul.f32 %v2915_v60, %v2915_v60 }
 0x493   :  { %v2980_v44 = vmul.f32 0.125, %v2942_v40  ;;  %v2988_v45 = vmul.f32 %v2916_v39, %v2916_v39 }
 0x494   :  { %v2995_v46 = vsub.f32 %v2979_v41, %v2987_v42  ;;  %v4830_v42 = vld [vmem:[%s6684_s7 + $0x150] ss:$8 sps:$4 sm:$0xff]  }
 0x495   :  { %v2996_v47 = vsub.f32 %v2980_v44, %v2988_v45 }
 0x496   :  { %v3003_v63 = vadd.f32 0.8, %v2995_v46  ;;  %v4835_v46 = vld [vmem:[%s6684_s7 + $0x164] ss:$8 sps:$4 sm:$0xff]  }
 0x497   :  { %v3004_v51 = vadd.f32 0.8, %v2996_v47 }
 0x498   :  { %4971 = vrsqrt.f32 %v3003_v63 }
 0x499   :  { %4973 = vrsqrt.f32 %v3004_v51 }
 0x4a2   :  { %v4972_v24 = vpop.eup %4971 }
 0x4a3   :  { %v4974_v50 = vpop.eup %4973  ;;  %v3019_v57 = vmul.f32 %v6292_v23, %v4972_v24 }
 0x4a4   :  { %v3020_v61 = vmul.f32 %v6298_v58, %v4974_v50 }
 0x4a5   :  { %v3027_v0 = vmul.f32 %v3019_v57, %v2915_v60  ;;  %v3070_v5 = vrot.slane %v3019_v57, %v6287_v53 }
 0x4a6   :  { %v3028_v1 = vmul.f32 %v3020_v61, %v2916_v39  ;;  %v3074_v8 = vrot.slane %v3020_v61, %v6287_v53  ;;  %v4833_v61 = vld [vmem:[%s6684_s7 + $0x160] ss:$8 sps:$4 sm:$0xff]  }
 0x4a7   :  { %v3043_v4 = vrot.slane %v3027_v0, 7  ;;  %v3099_v12 = vmul.f32 %v3070_v5, %v2615_v15  ;;  %v4820_v15 = vld [vmem:[%s6684_s7 + $0x114] ss:$8 sps:$4 sm:$0xff]  }
 0x4a8   :  { %v3044_v6 = vrot.slane %v3028_v1, 7  ;;  %v3100_v2 = vmul.f32 %v3074_v8, %v2617_v22  ;;  %v4818_v22 = vld [vmem:[%s6684_s7 + $0x110] ss:$8 sps:$4 sm:$0xff]  }
 0x4a9   :  { %v3059_v9 = vsub.f32 %v6292_v23, %v3043_v4  ;;  %v4838_v4 = vld [vmem:[%s6684_s7 + $0x174] ss:$8 sps:$4 sm:$0xff]  }
 0x4aa   :  { %v3060_v11 = vsub.f32 %v6298_v58, %v3044_v6 }
 0x4ab   :  { %v3110_v49 = vrot.slane %v3059_v9, %v6302_v3 }
 0x4ac   :  { %v3114_v43 = vrot.slane %v3060_v11, %v6302_v3 }
 0x4ad   :  { %v3139_v13 = vadd.f32 %v3110_v49, %v3099_v12  ;;  %v4836_v49 = vld [vmem:[%s6684_s7 + $0x170] ss:$8 sps:$4 sm:$0xff]  }
 0x4ae   :  { %v3140_v7 = vadd.f32 %v3114_v43, %v3100_v2 }
 0x4af   :  { %v3147_v16 = vmul.f32 0.2, %v3139_v13 }
 0x4b0   :  { %v3148_v17 = vmul.f32 0.2, %v3140_v7 }
 0x4b1   :  { %v3155_v18 = vmax.f32 %v3139_v13, %v3147_v16  ;;  %v4841_v13 = vld [vmem:[%s6684_s7 + $0x184] ss:$8 sps:$4 sm:$0xff]  }
 0x4b2   :  { %v3156_v26 = vmax.f32 %v3140_v7, %v3148_v17 }
 0x4b3   :  { %v3163_v55 = vpack.c.bf16 %v3155_v18, %v3155_v18  ;;  %v4839_v18 = vld [vmem:[%s6684_s7 + $0x180] ss:$8 sps:$4 sm:$0xff]  }
 0x4b4   :  { %v3164_v52 = vpack.c.bf16 %v3156_v26, %v3156_v26 }
 0x4b6   :  { %3979 = vmatprep.mubr.bf16.mxu0 %v3164_v52  ;;  %v4844_v52 = vld [vmem:[%s6684_s7 + $0x194] ss:$8 sps:$4 sm:$0xff]  }
 0x4b7   :  { %3980 = vmatmul.mubr.bf16.vlgmr.msra.gmra.mrb[12].mxu0 %v3163_v55  ;;  %v4847_v55 = vld [vmem:[%s6684_s7 + $0x1a4] ss:$8 sps:$4 sm:$0xff]  }
 0x4b8   :  { %3989 = vmatpush1.bf16.msra.mxu0 %v4815_v54  ;;  %v4842_v54 = vld [vmem:[%s6684_s7 + $0x190] ss:$8 sps:$4 sm:$0xff]  }
 0x4b9   :  { %3990 = vmatprep.subr.bf16.mxu0 %v4820_v15  ;;  %v4845_v15 = vld [vmem:[%s6684_s7 + $0x1a0] ss:$8 sps:$4 sm:$0xff]  }
 0x4bc   :  { %3991 = vmatpush1.bf16.msra.mxu0 %v4818_v22  ;;  %v4850_v22 = vld [vmem:[%s6684_s7 + $0x1b4] ss:$8 sps:$4 sm:$0xff]  }
 0x4bd   :  { %3992 = vmatprep.subr.bf16.mxu0 %v4823_v56 }
 0x4c0   :  { %3993 = vmatpush1.bf16.msra.mxu0 %v4821_v19  ;;  %v4848_v19 = vld [vmem:[%s6684_s7 + $0x1b0] ss:$8 sps:$4 sm:$0xff]  }
 0x4c1   :  { %v6331_v25 = vpop.f32.mrb[16].mxu1  ;;  %3994 = vmatprep.subr.bf16.mxu0 %v4826_v20 }
 0x4c2   :  { %v2879_v29 = vrot.slane %v6331_v25, 4  ;;  %v2925_v27 = vmul.f32 %v6331_v25, %v6331_v25  ;;  %v6339_v30 = vpop.f32.mrb[17].mxu1 }
 0x4c3   :  { %v2885_v31 = vrot.slane %v6339_v30, 4  ;;  %v2926_v14 = vmul.f32 %v6339_v30, %v6339_v30  ;;  %v2700_v32 = vpop.f32.mrb[18].mxu1 }
 0x4c4   :  { %v2880_v33 = vadd.f32 %v2879_v29, %v6331_v25  ;;  %v2943_v10 = vrot.slane %v2925_v27, 4  ;;  %3995 = vmatpush1.bf16.msra.mxu0 %v4824_v21  ;;  %v2701_v34 = vpop.f32.mrb[19].mxu1  ;;  %v4993_v21 = vld [vmem:[%s6682_s8 + $0x10] sm:$0xff]  ;;  %v4853_v29 = vld [vmem:[%s6684_s7 + $0x1c4] ss:$8 sps:$4 sm:$0xff]  }
 0x4c5   :  { %v2886_v36 = vadd.f32 %v2885_v31, %v6339_v30  ;;  %v2949_v37 = vrot.slane %v2926_v14, 4  ;;  %3996 = vmatprep.subr.bf16.mxu0 %v4829_v28 }
 0x4c6   :  { %v2881_v59 = vrot.slane %v2880_v33, 2  ;;  %v2944_v60 = vadd.f32 %v2943_v10, %v2925_v27  ;;  %v4994_v27 = vld [vmem:[%s6682_s8 + $0x18] sm:$0xff] }
 0x4c7   :  { %v2887_v62 = vrot.slane %v2886_v36, 2  ;;  %v2950_v39 = vadd.f32 %v2949_v37, %v2926_v14 }
 0x4c8   :  { %v2882_v40 = vadd.f32 %v2881_v59, %v2880_v33  ;;  %v2945_v41 = vrot.slane %v2944_v60, 2  ;;  %3997 = vmatpush1.bf16.msra.mxu0 %v4827_v35  ;;  %v4851_v33 = vld [vmem:[%s6684_s7 + $0x1c0] ss:$8 sps:$4 sm:$0xff]   ;;  %v4856_v35 = vld [vmem:[%s6684_s7 + $0x1d4] ss:$8 sps:$4 sm:$0xff]  }
 0x4c9   :  { %v2888_v44 = vadd.f32 %v2887_v62, %v2886_v36  ;;  %v2951_v45 = vrot.slane %v2950_v39, 2  ;;  %3998 = vmatprep.subr.bf16.mxu0 %v4832_v38  ;;  %v4854_v59 = vld [vmem:[%s6684_s7 + $0x1d0] ss:$8 sps:$4 sm:$0xff]  }
 0x4ca   :  { %v2883_v47 = vrot.slane %v2882_v40, 1  ;;  %v2946_v63 = vadd.f32 %v2945_v41, %v2944_v60 }
 0x4cb   :  { %v2889_v51 = vrot.slane %v2888_v44, 1  ;;  %v2952_v24 = vadd.f32 %v2951_v45, %v2950_v39  ;;  %v4857_v45 = vld [vmem:[%s6684_s7 + $0x1e0] ss:$8 sps:$4 sm:$0xff]  }
 0x4cc   :  { %v2884_v50 = vadd.f32 %v2883_v47, %v2882_v40  ;;  %v2947_v57 = vrot.slane %v2946_v63, 1  ;;  %3999 = vmatpush1.bf16.msra.mxu0 %v4830_v42  ;;  %v4859_v40 = vld [vmem:[%s6684_s7 + $0x1e4] ss:$8 sps:$4 sm:$0xff]  }
 0x4cd   :  { %v2890_v0 = vadd.f32 %v2889_v51, %v2888_v44  ;;  %v2953_v1 = vrot.slane %v2952_v24, 1  ;;  %4000 = vmatprep.subr.bf16.mxu0 %v4835_v46 }
 0x4ce   :  { %v2917_v5 = vmul.f32 0.125, %v2884_v50  ;;  %v2948_v6 = vadd.f32 %v2947_v57, %v2946_v63  ;;  %v4865_v50 = vld [vmem:[%s6684_s7 + $0x204] ss:$8 sps:$4 sm:$0xff]  }
 0x4cf   :  { %v2918_v8 = vmul.f32 0.125, %v2890_v0  ;;  %v2954_v9 = vadd.f32 %v2953_v1, %v2952_v24  ;;  %v4868_v1 = vld [vmem:[%s6684_s7 + $0x214] ss:$8 sps:$4 sm:$0xff]  }
 0x4d0   :  { %v2981_v11 = vmul.f32 0.125, %v2948_v6  ;;  %v2989_v12 = vmul.f32 %v2917_v5, %v2917_v5  ;;  %4001 = vmatpush1.bf16.msra.mxu0 %v4833_v61  ;;  %v4863_v61 = vld [vmem:[%s6684_s7 + $0x200] ss:$8 sps:$4 sm:$0xff]  }
 0x4d1   :  { %v2982_v2 = vmul.f32 0.125, %v2954_v9  ;;  %v2990_v43 = vmul.f32 %v2918_v8, %v2918_v8  ;;  %4002 = vmatprep.subr.bf16.mxu0 %v4838_v4  ;;  %v4866_v4 = vld [vmem:[%s6684_s7 + $0x210] ss:$8 sps:$4 sm:$0xff]   ;;  %v4869_v6 = vld [vmem:[%s6684_s7 + $0x220] ss:$8 sps:$4 sm:$0xff]  }
 0x4d2   :  { %v2997_v7 = vsub.f32 %v2981_v11, %v2989_v12  ;;  %v4872_v9 = vld [vmem:[%s6684_s7 + $0x230] ss:$8 sps:$4 sm:$0xff]   ;;  %v4877_v12 = vld [vmem:[%s6684_s7 + $0x244] ss:$8 sps:$4 sm:$0xff]  }
 0x4d3   :  { %v2998_v16 = vsub.f32 %v2982_v2, %v2990_v43 }
 0x4d4   :  { %v3005_v17 = vadd.f32 0.8, %v2997_v7  ;;  %4003 = vmatpush1.bf16.msra.mxu0 %v4836_v49 }
 0x4d5   :  { %v3006_v26 = vadd.f32 0.8, %v2998_v16  ;;  %4004 = vmatprep.subr.bf16.mxu0 %v4841_v13 }
 0x4d6   :  { %4975 = vrsqrt.f32 %v3005_v17 }
 0x4d7   :  { %4977 = vrsqrt.f32 %v3006_v26 }
 0x4d8   :  { %4005 = vmatpush1.bf16.msra.mxu0 %v4839_v18 }
 0x4d9   :  { %4006 = vmatprep.subr.bf16.mxu0 %v4844_v52  ;;  %v4875_v52 = vld [vmem:[%s6684_s7 + $0x240] ss:$8 sps:$4 sm:$0xff]  }
 0x4dc   :  { %4007 = vmatpush1.bf16.msra.mxu0 %v4842_v54 }
 0x4dd   :  { %4008 = vmatprep.subr.bf16.mxu0 %v4847_v55 }
 0x4e0   :  { %v4976_v56 = vpop.eup %4975  ;;  %4009 = vmatpush1.bf16.msra.mxu0 %v4845_v15  ;;  %v4880_v15 = vld [vmem:[%s6684_s7 + $0x254] ss:$8 sps:$4 sm:$0xff]  }
 0x4e1   :  { %v4978_v20 = vpop.eup %4977  ;;  %v3021_v28 = vmul.f32 %v4993_v21, %v4976_v56  ;;  %4010 = vmatprep.subr.bf16.mxu0 %v4850_v22 }
 0x4e2   :  { %v3022_v31 = vmul.f32 %v4994_v27, %v4978_v20 }
 0x4e3   :  { %v3029_v14 = vmul.f32 %v3021_v28, %v2917_v5  ;;  %v3078_v34 = vrot.slane %v3021_v28, %v6287_v53  ;;  %v4871_v5 = vld [vmem:[%s6684_s7 + $0x224] ss:$8 sps:$4 sm:$0xff]  }
 0x4e4   :  { %v3030_v32 = vmul.f32 %v3022_v31, %v2918_v8  ;;  %4011 = vmatpush1.bf16.msra.mxu0 %v4848_v19  ;;  %v3082_v37 = vrot.slane %v3022_v31, %v6287_v53  ;;  %v4874_v8 = vld [vmem:[%s6684_s7 + $0x234] ss:$8 sps:$4 sm:$0xff]  }
 0x4e5   :  { %v3045_v10 = vrot.slane %v3029_v14, 7  ;;  %4012 = vmatprep.subr.bf16.mxu0 %v4853_v29  ;;  %v3101_v62 = vmul.f32 %v3078_v34, %v6331_v25  ;;  %v4862_v25 = vld [vmem:[%s6684_s7 + $0x1f4] ss:$8 sps:$4 sm:$0xff]   ;;  %v4878_v29 = vld [vmem:[%s6684_s7 + $0x250] ss:$8 sps:$4 sm:$0xff]  }
 0x4e6   :  { %v3046_v36 = vrot.slane %v3030_v32, 7  ;;  %v3102_v41 = vmul.f32 %v3082_v37, %v6339_v30  ;;  %v4860_v30 = vld [vmem:[%s6684_s7 + $0x1f0] ss:$8 sps:$4 sm:$0xff]   ;;  %v4883_v14 = vld [vmem:[%s6684_s7 + $0x264] ss:$8 sps:$4 sm:$0xff]  }
 0x4e7   :  { %v3061_v38 = vsub.f32 %v4993_v21, %v3045_v10  ;;  %v4881_v37 = vld [vmem:[%s6684_s7 + $0x260] ss:$8 sps:$4 sm:$0xff]  }
 0x4e8   :  { %4013 = vmatpush1.bf16.msra.mxu0 %v4851_v33  ;;  %v3062_v60 = vsub.f32 %v4994_v27, %v3046_v36 }
 0x4e9   :  { %v3118_v39 = vrot.slane %v3061_v38, %v6302_v3  ;;  %4014 = vmatprep.subr.bf16.mxu0 %v4856_v35 }
 0x4ea   :  { %v3122_v42 = vrot.slane %v3062_v60, %v6302_v3  ;;  %v4886_v60 = vld [vmem:[%s6684_s7 + $0x274] ss:$8 sps:$4 sm:$0xff]  }
 0x4eb   :  { %v3141_v44 = vadd.f32 %v3118_v39, %v3101_v62 }
 0x4ec   :  { %4015 = vmatpush1.bf16.msra.mxu0 %v4854_v59  ;;  %v3142_v46 = vadd.f32 %v3122_v42, %v3102_v41 }
 0x4ed   :  { %v3149_v47 = vmul.f32 0.2, %v3141_v44  ;;  %4016 = vmatprep.subr.bf16.mxu0 %v4859_v40 }
 0x4ee   :  { %v3150_v63 = vmul.f32 0.2, %v3142_v46 }
 0x4ef   :  { %v3157_v24 = vmax.f32 %v3141_v44, %v3149_v47 }
 0x4f0   :  { %4017 = vmatpush1.bf16.msra.mxu0 %v4857_v45  ;;  %v3158_v51 = vmax.f32 %v3142_v46, %v3150_v63  ;;  %v4884_v45 = vld [vmem:[%s6684_s7 + $0x270] ss:$8 sps:$4 sm:$0xff]  }
 0x4f1   :  { %4018 = vmatprep.subr.bf16.mxu0 %v4862_v25  ;;  %v3165_v0 = vpack.c.bf16 %v3157_v24, %v3157_v24  ;;  %v4889_v25 = vld [vmem:[%s6684_s7 + $0x284] ss:$8 sps:$4 sm:$0xff]   ;;  %v4887_v24 = vld [vmem:[%s6684_s7 + $0x280] ss:$8 sps:$4 sm:$0xff]  }
 0x4f2   :  { %v3166_v57 = vpack.c.bf16 %v3158_v51, %v3158_v51 }
 0x4f4   :  { %4019 = vmatpush1.bf16.msra.mxu0 %v4860_v30  ;;  %4020 = vmatprep.mubr.bf16.mxu0 %v3166_v57  ;;  %v4892_v57 = vld [vmem:[%s6684_s7 + $0x294] ss:$8 sps:$4 sm:$0xff]  }
 0x4f5   :  { %4029 = vmatprep.subr.bf16.mxu0 %v4865_v50 }
 0x4f7   :  { %4021 = vmatmul.mubr.bf16.vlgmr.msra.gmra.mrb[12].mxu0 %v3165_v0  ;;  %v4895_v0 = vld [vmem:[%s6684_s7 + $0x2a4] ss:$8 sps:$4 sm:$0xff]  }
 0x4f8   :  { %4030 = vmatpush1.bf16.msra.mxu0 %v4863_v61  ;;  %v4890_v61 = vld [vmem:[%s6684_s7 + $0x290] ss:$8 sps:$4 sm:$0xff]  }
 0x4f9   :  { %4031 = vmatprep.subr.bf16.mxu0 %v4868_v1  ;;  %v4893_v1 = vld [vmem:[%s6684_s7 + $0x2a0] ss:$8 sps:$4 sm:$0xff]  }
 0x4fc   :  { %4032 = vmatpush1.bf16.msra.mxu0 %v4866_v4  ;;  %v4898_v4 = vld [vmem:[%s6684_s7 + $0x2b4] ss:$8 sps:$4 sm:$0xff]  }
 0x4fd   :  { %4033 = vmatprep.subr.bf16.mxu0 %v4871_v5  ;;  %v37_v5 = vld [vmem:[%s6682_s8 + $0x20] sm:$0xff] }
 0x500   :  { %4034 = vmatpush1.bf16.msra.mxu0 %v4869_v6  ;;  %v38_v6 = vld [vmem:[%s6682_s8 + $0x28] sm:$0xff] }
 0x501   :  { %v6451_v11 = vpop.f32.mrb[8].mxu0  ;;  %4035 = vmatprep.subr.bf16.mxu0 %v4874_v8 }
 0x502   :  { %v2891_v49 = vrot.slane %v6451_v11, 4  ;;  %v2927_v2 = vmul.f32 %v6451_v11, %v6451_v11  ;;  %v6459_v43 = vpop.f32.mrb[9].mxu0 }
 0x503   :  { %v2897_v13 = vrot.slane %v6459_v43, 4  ;;  %v2928_v7 = vmul.f32 %v6459_v43, %v6459_v43  ;;  %v2782_v16 = vpop.f32.mrb[10].mxu0 }
 0x504   :  { %v2892_v17 = vadd.f32 %v2891_v49, %v6451_v11  ;;  %v2955_v18 = vrot.slane %v2927_v2, 4  ;;  %v2783_v26 = vpop.f32.mrb[11].mxu0  ;;  %4036 = vmatpush1.bf16.msra.mxu0 %v4872_v9  ;;  %v4896_v9 = vld [vmem:[%s6684_s7 + $0x2b0] ss:$8 sps:$4 sm:$0xff]  }
 0x505   :  { %v2898_v54 = vadd.f32 %v2897_v13, %v6459_v43  ;;  %v2961_v55 = vrot.slane %v2928_v7, 4  ;;  %4037 = vmatprep.subr.bf16.mxu0 %v4877_v12 }
 0x506   :  { %v2893_v22 = vrot.slane %v2892_v17, 2  ;;  %v2956_v56 = vadd.f32 %v2955_v18, %v2927_v2  ;;  %v4901_v2 = vld [vmem:[%s6684_s7 + $0x2c4] ss:$8 sps:$4 sm:$0xff]  }
 0x507   :  { %v2899_v19 = vrot.slane %v2898_v54, 2  ;;  %v2962_v20 = vadd.f32 %v2961_v55, %v2928_v7 }
 0x508   :  { %v2894_v21 = vadd.f32 %v2893_v22, %v2892_v17  ;;  %v2957_v28 = vrot.slane %v2956_v56, 2  ;;  %4038 = vmatpush1.bf16.msra.mxu0 %v4875_v52  ;;  %v4899_v17 = vld [vmem:[%s6684_s7 + $0x2c0] ss:$8 sps:$4 sm:$0xff]   ;;  %v4904_v52 = vld [vmem:[%s6684_s7 + $0x2d4] ss:$8 sps:$4 sm:$0xff]  }
 0x509   :  { %v2900_v27 = vadd.f32 %v2899_v19, %v2898_v54  ;;  %v2963_v31 = vrot.slane %v2962_v20, 2  ;;  %4039 = vmatprep.subr.bf16.mxu0 %v4880_v15  ;;  %v4902_v22 = vld [vmem:[%s6684_s7 + $0x2d0] ss:$8 sps:$4 sm:$0xff]  }
 0x50a   :  { %v2895_v32 = vrot.slane %v2894_v21, 1  ;;  %v2958_v33 = vadd.f32 %v2957_v28, %v2956_v56 }
 0x50b   :  { %v2901_v10 = vrot.slane %v2900_v27, 1  ;;  %v2964_v34 = vadd.f32 %v2963_v31, %v2962_v20  ;;  %v4905_v31 = vld [vmem:[%s6684_s7 + $0x2e0] ss:$8 sps:$4 sm:$0xff]  }
 0x50c   :  { %v2896_v35 = vadd.f32 %v2895_v32, %v2894_v21  ;;  %v2959_v36 = vrot.slane %v2958_v33, 1  ;;  %4040 = vmatpush1.bf16.msra.mxu0 %v4878_v29  ;;  %v4907_v21 = vld [vmem:[%s6684_s7 + $0x2e4] ss:$8 sps:$4 sm:$0xff]  }
 0x50d   :  { %v2902_v38 = vadd.f32 %v2901_v10, %v2900_v27  ;;  %v2965_v59 = vrot.slane %v2964_v34, 1  ;;  %4041 = vmatprep.subr.bf16.mxu0 %v4883_v14 }
 0x50e   :  { %v2919_v62 = vmul.f32 0.125, %v2896_v35  ;;  %v2960_v39 = vadd.f32 %v2959_v36, %v2958_v33  ;;  %v4913_v35 = vld [vmem:[%s6684_s7 + $0x304] ss:$8 sps:$4 sm:$0xff]  }
 0x50f   :  { %v2920_v40 = vmul.f32 0.125, %v2902_v38  ;;  %v2966_v41 = vadd.f32 %v2965_v59, %v2964_v34  ;;  %v4916_v59 = vld [vmem:[%s6684_s7 + $0x314] ss:$8 sps:$4 sm:$0xff]  }
 0x510   :  { %v2983_v42 = vmul.f32 0.125, %v2960_v39  ;;  %v2991_v44 = vmul.f32 %v2919_v62, %v2919_v62  ;;  %4042 = vmatpush1.bf16.msra.mxu0 %v4881_v37  ;;  %v4911_v37 = vld [vmem:[%s6684_s7 + $0x300] ss:$8 sps:$4 sm:$0xff]  }
 0x511   :  { %v2984_v46 = vmul.f32 0.125, %v2966_v41  ;;  %v2992_v47 = vmul.f32 %v2920_v40, %v2920_v40  ;;  %4043 = vmatprep.subr.bf16.mxu0 %v4886_v60  ;;  %v4914_v60 = vld [vmem:[%s6684_s7 + $0x310] ss:$8 sps:$4 sm:$0xff]   ;;  %v4917_v39 = vld [vmem:[%s6684_s7 + $0x320] ss:$8 sps:$4 sm:$0xff]  }
 0x512   :  { %v2999_v63 = vsub.f32 %v2983_v42, %v2991_v44  ;;  %v4920_v41 = vld [vmem:[%s6684_s7 + $0x330] ss:$8 sps:$4 sm:$0xff]   ;;  %v4925_v42 = vld [vmem:[%s6684_s7 + $0x344] ss:$8 sps:$4 sm:$0xff]  }
 0x513   :  { %v3000_v30 = vsub.f32 %v2984_v46, %v2992_v47 }
 0x514   :  { %v3007_v51 = vadd.f32 0.8, %v2999_v63  ;;  %4044 = vmatpush1.bf16.msra.mxu0 %v4884_v45 }
 0x515   :  { %v3008_v50 = vadd.f32 0.8, %v3000_v30  ;;  %4045 = vmatprep.subr.bf16.mxu0 %v4889_v25 }
 0x516   :  { %4979 = vrsqrt.f32 %v3007_v51  ;;  %v4923_v51 = vld [vmem:[%s6684_s7 + $0x340] ss:$8 sps:$4 sm:$0xff]  }
 0x517   :  { %4981 = vrsqrt.f32 %v3008_v50 }
 0x518   :  { %4046 = vmatpush1.bf16.msra.mxu0 %v4887_v24 }
 0x519   :  { %4047 = vmatprep.subr.bf16.mxu0 %v4892_v57 }
 0x51c   :  { %4048 = vmatpush1.bf16.msra.mxu0 %v4890_v61  ;;  %v4928_v61 = vld [vmem:[%s6684_s7 + $0x354] ss:$8 sps:$4 sm:$0xff]  }
 0x51d   :  { %4049 = vmatprep.subr.bf16.mxu0 %v4895_v0 }
 0x520   :  { %v4980_v8 = vpop.eup %4979  ;;  %4050 = vmatpush1.bf16.msra.mxu0 %v4893_v1 }
 0x521   :  { %v4982_v12 = vpop.eup %4981  ;;  %v3023_v49 = vmul.f32 %v4980_v8, %v37_v5  ;;  %4051 = vmatprep.subr.bf16.mxu0 %v4898_v4 }
 0x522   :  { %v3024_v13 = vmul.f32 %v4982_v12, %v38_v6 }
 0x523   :  { %v3031_v7 = vmul.f32 %v3023_v49, %v2919_v62  ;;  %v3086_v26 = vrot.slane %v3023_v49, %v6287_v53  ;;  %v4919_v62 = vld [vmem:[%s6684_s7 + $0x324] ss:$8 sps:$4 sm:$0xff]  }
 0x524   :  { %v3032_v16 = vmul.f32 %v3024_v13, %v2920_v40  ;;  %4052 = vmatpush1.bf16.msra.mxu0 %v4896_v9  ;;  %v3090_v55 = vrot.slane %v3024_v13, %v6287_v53  ;;  %v4922_v40 = vld [vmem:[%s6684_s7 + $0x334] ss:$8 sps:$4 sm:$0xff]   ;;  %v4926_v9 = vld [vmem:[%s6684_s7 + $0x350] ss:$8 sps:$4 sm:$0xff]  }
 0x525   :  { %v3047_v18 = vrot.slane %v3031_v7, 7  ;;  %4053 = vmatprep.subr.bf16.mxu0 %v4901_v2  ;;  %v3103_v19 = vmul.f32 %v3086_v26, %v6451_v11  ;;  %v4910_v11 = vld [vmem:[%s6684_s7 + $0x2f4] ss:$8 sps:$4 sm:$0xff]   ;;  %v4931_v2 = vld [vmem:[%s6684_s7 + $0x364] ss:$8 sps:$4 sm:$0xff]  }
 0x526   :  { %v3048_v54 = vrot.slane %v3032_v16, 7  ;;  %v3104_v28 = vmul.f32 %v3090_v55, %v6459_v43  ;;  %v4908_v43 = vld [vmem:[%s6684_s7 + $0x2f0] ss:$8 sps:$4 sm:$0xff]  }
 0x527   :  { %v3063_v15 = vsub.f32 %v37_v5, %v3047_v18 }
 0x528   :  { %4054 = vmatpush1.bf16.msra.mxu0 %v4899_v17  ;;  %v3064_v56 = vsub.f32 %v38_v6, %v3048_v54 }
 0x529   :  { %v3126_v20 = vrot.slane %v3063_v15, %v6302_v3  ;;  %4055 = vmatprep.subr.bf16.mxu0 %v4904_v52  ;;  %v4929_v52 = vld [vmem:[%s6684_s7 + $0x360] ss:$8 sps:$4 sm:$0xff]   ;;  %v4934_v15 = vld [vmem:[%s6684_s7 + $0x374] ss:$8 sps:$4 sm:$0xff]  }
 0x52a   :  { %v3130_v29 = vrot.slane %v3064_v56, %v6302_v3 }
 0x52b   :  { %v3143_v27 = vadd.f32 %v3126_v20, %v3103_v19 }
 0x52c   :  { %4056 = vmatpush1.bf16.msra.mxu0 %v4902_v22  ;;  %v3144_v14 = vadd.f32 %v3130_v29, %v3104_v28  ;;  %v4932_v29 = vld [vmem:[%s6684_s7 + $0x370] ss:$8 sps:$4 sm:$0xff]  }
 0x52d   :  { %v3151_v32 = vmul.f32 0.2, %v3143_v27  ;;  %4057 = vmatprep.subr.bf16.mxu0 %v4907_v21 }
 0x52e   :  { %v3152_v33 = vmul.f32 0.2, %v3144_v14 }
 0x52f   :  { %v3159_v34 = vmax.f32 %v3143_v27, %v3151_v32 }
 0x530   :  { %4058 = vmatpush1.bf16.msra.mxu0 %v4905_v31  ;;  %v3160_v10 = vmax.f32 %v3144_v14, %v3152_v33  ;;  %v4937_v14 = vld [vmem:[%s6684_s7 + $0x384] ss:$8 sps:$4 sm:$0xff]  }
 0x531   :  { %4059 = vmatprep.subr.bf16.mxu0 %v4910_v11  ;;  %v3167_v38 = vpack.c.bf16 %v3159_v34, %v3159_v34 }
 0x532   :  { %v3168_v36 = vpack.c.bf16 %v3160_v10, %v3160_v10  ;;  %v4935_v10 = vld [vmem:[%s6684_s7 + $0x380] ss:$8 sps:$4 sm:$0xff]  }
 0x534   :  { %4060 = vmatpush1.bf16.msra.mxu0 %v4908_v43  ;;  %4061 = vmatprep.mubr.bf16.mxu0 %v3168_v36 }
 0x535   :  { %4070 = vmatprep.subr.bf16.mxu0 %v4913_v35  ;;  %v4940_v35 = vld [vmem:[%s6684_s7 + $0x394] ss:$8 sps:$4 sm:$0xff]  }
 0x537   :  { %4062 = vmatmul.mubr.bf16.vlgmr.msra.gmra.mrb[12].mxu0 %v3167_v38  ;;  %v4943_v38 = vld [vmem:[%s6684_s7 + $0x3a4] ss:$8 sps:$4 sm:$0xff]  }
 0x538   :  { %4071 = vmatpush1.bf16.msra.mxu0 %v4911_v37  ;;  %v4938_v37 = vld [vmem:[%s6684_s7 + $0x390] ss:$8 sps:$4 sm:$0xff]  }
 0x539   :  { %4072 = vmatprep.subr.bf16.mxu0 %v4916_v59  ;;  %v4941_v59 = vld [vmem:[%s6684_s7 + $0x3a0] ss:$8 sps:$4 sm:$0xff]  }
 0x53c   :  { %4073 = vmatpush1.bf16.msra.mxu0 %v4914_v60  ;;  %v4946_v60 = vld [vmem:[%s6684_s7 + $0x3b4] ss:$8 sps:$4 sm:$0xff]  }
 0x53d   :  { %4074 = vmatprep.subr.bf16.mxu0 %v4919_v62  ;;  %v39_v62 = vld [vmem:[%s6682_s8 + $0x30] sm:$0xff] }
 0x540   :  { %4075 = vmatpush1.bf16.msra.mxu0 %v4917_v39  ;;  %v40_v39 = vld [vmem:[%s6682_s8 + $0x38] sm:$0xff] }
 0x541   :  { %4076 = vmatprep.subr.bf16.mxu0 %v4922_v40  ;;  %v4944_v40 = vld [vmem:[%s6684_s7 + $0x3b0] ss:$8 sps:$4 sm:$0xff]  }
 0x542   :  { %v6574_v44 = vpop.f32.mrb[20].mxu1 }
 0x543   :  { %v2903_v45 = vrot.slane %v6574_v44, 4  ;;  %v2929_v46 = vmul.f32 %v6574_v44, %v6574_v44  ;;  %v6579_v47 = vpop.f32.mrb[21].mxu1 }
 0x544   :  { %v2909_v25 = vrot.slane %v6579_v47, 4  ;;  %v2930_v63 = vmul.f32 %v6579_v47, %v6579_v47  ;;  %v2864_v30 = vpop.f32.mrb[22].mxu1  ;;  %4077 = vmatpush1.bf16.msra.mxu0 %v4920_v41 }
 0x545   :  { %v2904_v24 = vadd.f32 %v2903_v45, %v6574_v44  ;;  %v2967_v50 = vrot.slane %v2929_v46, 4  ;;  %v2865_v57 = vpop.f32.mrb[23].mxu1  ;;  %4078 = vmatprep.subr.bf16.mxu0 %v4925_v42  ;;  %v4949_v42 = vld [vmem:[%s6684_s7 + $0x3c4] ss:$8 sps:$4 sm:$0xff]   ;;  %v4947_v30 = vld [vmem:[%s6684_s7 + $0x3c0] ss:$8 sps:$4 sm:$0xff]  }
 0x546   :  { %v2910_v0 = vadd.f32 %v2909_v25, %v6579_v47  ;;  %v2973_v1 = vrot.slane %v2930_v63, 4 }
 0x547   :  { %v2905_v4 = vrot.slane %v2904_v24, 2  ;;  %v2968_v5 = vadd.f32 %v2967_v50, %v2929_v46 }
 0x548   :  { %v2911_v6 = vrot.slane %v2910_v0, 2  ;;  %v2974_v8 = vadd.f32 %v2973_v1, %v2930_v63  ;;  %4079 = vmatpush1.bf16.msra.mxu0 %v4923_v51 }
 0x549   :  { %v2906_v12 = vadd.f32 %v2905_v4, %v2904_v24  ;;  %v2969_v49 = vrot.slane %v2968_v5, 2  ;;  %4080 = vmatprep.subr.bf16.mxu0 %v4928_v61  ;;  %v4952_v24 = vld [vmem:[%s6684_s7 + $0x3d4] ss:$8 sps:$4 sm:$0xff]   ;;  %v4950_v4 = vld [vmem:[%s6684_s7 + $0x3d0] ss:$8 sps:$4 sm:$0xff]  }
 0x54a   :  { %v2912_v13 = vadd.f32 %v2911_v6, %v2910_v0  ;;  %v2975_v7 = vrot.slane %v2974_v8, 2 }
 0x54b   :  { %v2907_v16 = vrot.slane %v2906_v12, 1  ;;  %v2970_v17 = vadd.f32 %v2969_v49, %v2968_v5  ;;  %v4955_v5 = vld [vmem:[%s6684_s7 + $0x3e4] ss:$8 sps:$4 sm:$0xff]  }
 0x54c   :  { %v2913_v18 = vrot.slane %v2912_v13, 1  ;;  %v2976_v26 = vadd.f32 %v2975_v7, %v2974_v8  ;;  %4081 = vmatpush1.bf16.msra.mxu0 %v4926_v9 }
 0x54d   :  { %v2908_v54 = vadd.f32 %v2907_v16, %v2906_v12  ;;  %v2971_v55 = vrot.slane %v2970_v17, 1  ;;  %4082 = vmatprep.subr.bf16.mxu0 %v4931_v2  ;;  %v4953_v2 = vld [vmem:[%s6684_s7 + $0x3e0] ss:$8 sps:$4 sm:$0xff]  }
 0x54e   :  { %v2914_v22 = vadd.f32 %v2913_v18, %v2912_v13  ;;  %v2977_v56 = vrot.slane %v2976_v26, 1  ;;  %v4958_v13 = vld [vmem:[%s6684_s7 + $0x3f4] ss:$8 sps:$4 sm:$0xff]  }
 0x54f   :  { %v2921_v19 = vmul.f32 0.125, %v2908_v54  ;;  %v2972_v20 = vadd.f32 %v2971_v55, %v2970_v17 }
 0x550   :  { %v2922_v21 = vmul.f32 0.125, %v2914_v22  ;;  %v2978_v28 = vadd.f32 %v2977_v56, %v2976_v26  ;;  %4083 = vmatpush1.bf16.msra.mxu0 %v4929_v52  ;;  %v3301_v52 = vsub.s32 6, %v5214_v48 }
 0x551   :  { %v2985_v27 = vmul.f32 0.125, %v2972_v20  ;;  %v2993_v31 = vmul.f32 %v2921_v19, %v2921_v19  ;;  %4084 = vmatprep.subr.bf16.mxu0 %v4934_v15 }
 0x552   :  { %v2986_v32 = vmul.f32 0.125, %v2978_v28  ;;  %v2994_v11 = vmul.f32 %v2922_v21, %v2922_v21  ;;  %v3302_v54 = vrot.slane %v6292_v23, %v3301_v52  ;;  %v3306_v55 = vrot.slane %v6298_v58, %v3301_v52 }
 0x553   :  { %v3001_v33 = vsub.f32 %v2985_v27, %v2993_v31 }
 0x554   :  { %v3002_v43 = vsub.f32 %v2986_v32, %v2994_v11  ;;  %4085 = vmatpush1.bf16.msra.mxu0 %v4932_v29 }
 0x555   :  { %v3009_v34 = vadd.f32 0.8, %v3001_v33  ;;  %4086 = vmatprep.subr.bf16.mxu0 %v4937_v14 }
 0x556   :  { %v3010_v36 = vadd.f32 0.8, %v3002_v43 }
 0x557   :  { %4983 = vrsqrt.f32 %v3009_v34 }
 0x558   :  { %4985 = vrsqrt.f32 %v3010_v36  ;;  %4087 = vmatpush1.bf16.msra.mxu0 %v4935_v10 }
 0x559   :  { %4088 = vmatprep.subr.bf16.mxu0 %v4940_v35 }
 0x55c   :  { %4089 = vmatpush1.bf16.msra.mxu0 %v4938_v37 }
 0x55d   :  { %4090 = vmatprep.subr.bf16.mxu0 %v4943_v38 }
 0x560   :  { %4091 = vmatpush1.bf16.msra.mxu0 %v4941_v59 }
 0x561   :  { %v4984_v41 = vpop.eup %4983  ;;  %4092 = vmatprep.subr.bf16.mxu0 %v4946_v60 }
 0x562   :  { %v4986_v45 = vpop.eup %4985  ;;  %v3025_v46 = vmul.f32 %v4984_v41, %v39_v62 }
 0x563   :  { %v3026_v25 = vmul.f32 %v4986_v45, %v40_v39 }
 0x564   :  { %v3033_v63 = vmul.f32 %v3025_v46, %v2921_v19  ;;  %4093 = vmatpush1.bf16.msra.mxu0 %v4944_v40  ;;  %v3094_v57 = vrot.slane %v3025_v46, %v6287_v53 }
 0x565   :  { %v3034_v51 = vmul.f32 %v3026_v25, %v2922_v21  ;;  %4094 = vmatprep.subr.bf16.mxu0 %v4949_v42  ;;  %v3098_v0 = vrot.slane %v3026_v25, %v6287_v53 }
 0x566   :  { %v3049_v50 = vrot.slane %v3033_v63, 7  ;;  %v3105_v8 = vmul.f32 %v3094_v57, %v6574_v44 }
 0x567   :  { %v3050_v61 = vrot.slane %v3034_v51, 7  ;;  %v3106_v12 = vmul.f32 %v3098_v0, %v6579_v47  ;;  %v4956_v47 = vld [vmem:[%s6684_s7 + $0x3f0] ss:$8 sps:$4 sm:$0xff]  }
 0x568   :  { %v3065_v1 = vsub.f32 %v39_v62, %v3049_v50  ;;  %4095 = vmatpush1.bf16.msra.mxu0 %v4947_v30 }
 0x569   :  { %4096 = vmatprep.subr.bf16.mxu0 %v4952_v24  ;;  %v3066_v6 = vsub.f32 %v40_v39, %v3050_v61 }
 0x56a   :  { %v3134_v9 = vrot.slane %v3065_v1, %v6302_v3 }
 0x56b   :  { %v3138_v53 = vrot.slane %v3066_v6, %v6302_v3 }
 0x56c   :  { %v3145_v49 = vadd.f32 %v3134_v9, %v3105_v8  ;;  %4097 = vmatpush1.bf16.msra.mxu0 %v4950_v4 }
 0x56d   :  { %4098 = vmatprep.subr.bf16.mxu0 %v4955_v5  ;;  %v3146_v7 = vadd.f32 %v3138_v53, %v3106_v12 }
 0x56e   :  { %v3153_v16 = vmul.f32 0.2, %v3145_v49 }
 0x56f   :  { %v3154_v44 = vmul.f32 0.2, %v3146_v7 }
 0x570   :  { %4099 = vmatpush1.bf16.msra.mxu0 %v4953_v2  ;;  %v3161_v17 = vmax.f32 %v3145_v49, %v3153_v16 }
 0x571   :  { %4100 = vmatprep.subr.bf16.mxu0 %v4958_v13  ;;  %v3162_v3 = vmax.f32 %v3146_v7, %v3154_v44 }
 0x572   :  { %v3169_v26 = vpack.c.bf16 %v3161_v17, %v3161_v17 }
 0x573   :  { %v3170_v18 = vpack.c.bf16 %v3162_v3, %v3162_v3 }
 0x574   :  { %4101 = vmatpush1.bf16.msra.mxu0 %v4956_v47 }
 0x575   :  { %4102 = vmatprep.mubr.bf16.mxu0 %v3170_v18 }
 0x577   :  { %4103 = vmatmul.mubr.bf16.vlgmr.msra.gmra.mrb[12].mxu0 %v3169_v26 }
 0x64a   :  { %v4104_v15 = vpop.f32.mrb[12].mxu0 }
 0x64b   :  { %v4610_v22 = vadd.f32 %v4104_v15, %v3302_v54  ;;  %v4106_v56 = vpop.f32.mrb[13].mxu0 }
 0x64c   :  { %v4611_v19 = vadd.f32 %v4106_v56, %v3306_v55  ;;  %v4108_v20 = vpop.f32.mrb[14].mxu0 }
 0x64d   :  { %4987 = vtanh.f32 %v4610_v22  ;;  %v4109_v21 = vpop.f32.mrb[15].mxu0 }
 0x64e   :  { %4989 = vtanh.f32 %v4611_v19 }
 0x657   :  { %v4988_v28 = vpop.eup %4987 }
 0x658   :  { %v4990_v29 = vpop.eup %4989  ;;  %4113 = vst [vmem:[%s6685_s9] sm:$0xff] %v4988_v28 }
 0x659   :  { %4114 = vst [vmem:[%s6685_s9 + $0x8] sm:$0xff] %v4990_v29 }

</bundles_post_ra>
